<compile_context>
chip_gen: v7x
topology: tpu7x:2x2x1
jax: 0.10.0
libtpu: 0.0.40
codegen_flags: <defaults>
</compile_context>

<pallas_src>
import jax
import jax.numpy as jnp
from jax.experimental import pallas as pl
from jax.experimental.pallas import tpu as pltpu

LANE = 128  # pad every feature dim to one full lane tile


def _round_up(n, m):
    return ((n + m - 1) // m) * m


def _solution_u_kernel(x_ref,
                       w1, b1, w2, b2, w3, b3, w4, b4, w5, b5,
                       o_ref):
    """One batch tile: full fused forward of Solution_u (inference)."""
    h = x_ref[...].astype(jnp.float32)
    # --- encoder ---
    h = jnp.sin(jnp.dot(h, w1[...], preferred_element_type=jnp.float32) + b1[...])
    h = jnp.sin(jnp.dot(h, w2[...], preferred_element_type=jnp.float32) + b2[...])
    # nn.Dropout(p=0.2) is identity at inference.
    h = jnp.dot(h, w3[...], preferred_element_type=jnp.float32) + b3[...]
    # --- predictor ---  (leading Dropout is identity at inference)
    h = jnp.sin(jnp.dot(h, w4[...], preferred_element_type=jnp.float32) + b4[...])
    h = jnp.dot(h, w5[...], preferred_element_type=jnp.float32) + b5[...]
    o_ref[...] = h.astype(o_ref.dtype)


def solution_u_forward(x, params, *, tile_b=1024):
    """x: (B, 17) float array. params: list of (W, b) with W of shape (in, out).

    Returns (B, 1) like Solution_u.forward.
    """
    B, d_in = x.shape
    out_dim = params[-1][0].shape[1]

    # Pad features of x to 128 lanes (zero columns).
    x_pad = jnp.zeros((B, LANE), x.dtype).at[:, :d_in].set(x)

    # Pick a batch tile: sized for v7x's smaller VMEM (<=1024 rows f32 easily
    # fits), capped to the (8-row aligned) batch for tiny test batches.
    tile_b = max(8, min(tile_b, _round_up(B, 8)))
    B_pad = _round_up(B, tile_b)
    if B_pad != B:
        x_pad = jnp.pad(x_pad, ((0, B_pad - B), (0, 0)))

    # Pad every weight to (128, 128) and every bias to (1, 128) with zeros.
    flat = []
    for w, b in params:
        di, do = w.shape
        wp = jnp.zeros((LANE, LANE), jnp.float32).at[:di, :do].set(
            w.astype(jnp.float32))
        bp = jnp.zeros((1, LANE), jnp.float32).at[:, :do].set(
            b.astype(jnp.float32).reshape(1, -1))
        flat += [wp, bp]

    grid = (B_pad // tile_b,)
    x_spec = pl.BlockSpec((tile_b, LANE), lambda i: (i, 0))
    w_spec = pl.BlockSpec((LANE, LANE), lambda i: (0, 0))   # resident
    b_spec = pl.BlockSpec((1, LANE), lambda i: (0, 0))      # resident
    in_specs = [x_spec]
    for _ in params:
        in_specs += [w_spec, b_spec]
    out_spec = pl.BlockSpec((tile_b, LANE), lambda i: (i, 0))  # lane-dense out

    out = pl.pallas_call(
        _solution_u_kernel,
        out_shape=jax.ShapeDtypeStruct((B_pad, LANE), jnp.float32),
        grid=grid,
        in_specs=in_specs,
        out_specs=out_spec,
        compiler_params=pltpu.CompilerParams(
            dimension_semantics=("parallel",)),
    )(x_pad, *flat)

    return out[:B, :out_dim].astype(x.dtype)


def init_params(key, dtype=jnp.float32):
    """Matches Solution_u layer shapes & init: xavier_normal_ weights, zero bias.

    Weights stored (in_dim, out_dim) (transposed vs. PyTorch's (out, in)).
    Layer shapes: (17,60), (60,60), (60,32), (32,32), (32,1).
    """
    dims = [(17, 60), (60, 60), (60, 32), (32, 32), (32, 1)]
    params = []
    for d_in, d_out in dims:
        key, kw = jax.random.split(key)
        std = (2.0 / (d_in + d_out)) ** 0.5  # xavier normal
        w = (std * jax.random.normal(kw, (d_in, d_out))).astype(dtype)
        b = jnp.zeros((d_out,), dtype)       # nn.init.constant_(bias, 0)
        params.append((w, b))
    return params


def solution_u_reference(x, params):
    """Pure-JAX reference of Solution_u.forward (eval mode)."""
    h = x.astype(jnp.float32)
    (w1, b1), (w2, b2), (w3, b3), (w4, b4), (w5, b5) = params
    h = jnp.sin(h @ w1 + b1)
    h = jnp.sin(h @ w2 + b2)
    h = h @ w3 + b3           # dropout = identity at inference
    h = jnp.sin(h @ w4 + b4)  # predictor (leading dropout = identity)
    h = h @ w5 + b5
    return h.astype(x.dtype)


# TODO(synk): training-mode stochastic Dropout(p=0.2) not implemented; the
# kernel matches the module's inference (eval) forward where Dropout is identity.

if __name__ == "__main__":
    key = jax.random.PRNGKey(0)
    batch, input_dim = 64, 17

    kx, kp = jax.random.split(key)
    x = jax.random.normal(kx, (batch, input_dim), dtype=jnp.float32)
    params = init_params(kp)

    out = solution_u_forward(x, params)
    out = jax.block_until_ready(out)

    ref = solution_u_reference(x, params)
    assert out.shape == (batch, 1), out.shape
    assert jnp.allclose(out, ref, atol=1e-5, rtol=1e-5), "mismatch vs JAX reference"

    print("KERNEL_OK")
</pallas_src>

<mosaic_0001>
module attributes {stable_mosaic.version = 11 : i64} {
  func.func @_solution_u_kernel(%arg0: i32, %arg1: memref<64x128xf32, #tpu.memory_space<vmem>>, %arg2: memref<128x128xf32, #tpu.memory_space<vmem>>, %arg3: memref<1x128xf32, #tpu.memory_space<vmem>>, %arg4: memref<128x128xf32, #tpu.memory_space<vmem>>, %arg5: memref<1x128xf32, #tpu.memory_space<vmem>>, %arg6: memref<128x128xf32, #tpu.memory_space<vmem>>, %arg7: memref<1x128xf32, #tpu.memory_space<vmem>>, %arg8: memref<128x128xf32, #tpu.memory_space<vmem>>, %arg9: memref<1x128xf32, #tpu.memory_space<vmem>>, %arg10: memref<128x128xf32, #tpu.memory_space<vmem>>, %arg11: memref<1x128xf32, #tpu.memory_space<vmem>>, %arg12: memref<64x128xf32, #tpu.memory_space<vmem>>) attributes {dimension_semantics = [#tpu.dimension_semantics<parallel>], iteration_bounds = array<i64: 1>, scalar_prefetch = 0 : i64, scratch_operands = 0 : i64, tpu.core_type = #tpu.core_type<tc>, window_params = [{transform_indices = @transform_0, window_bounds = array<i64: 64, 128>}, {pipeline_mode = #tpu.pipeline_mode<synchronous>, transform_indices = @transform_1, window_bounds = array<i64: 128, 128>}, {pipeline_mode = #tpu.pipeline_mode<synchronous>, transform_indices = @transform_2, window_bounds = array<i64: 1, 128>}, {pipeline_mode = #tpu.pipeline_mode<synchronous>, transform_indices = @transform_3, window_bounds = array<i64: 128, 128>}, {pipeline_mode = #tpu.pipeline_mode<synchronous>, transform_indices = @transform_4, window_bounds = array<i64: 1, 128>}, {pipeline_mode = #tpu.pipeline_mode<synchronous>, transform_indices = @transform_5, window_bounds = array<i64: 128, 128>}, {pipeline_mode = #tpu.pipeline_mode<synchronous>, transform_indices = @transform_6, window_bounds = array<i64: 1, 128>}, {pipeline_mode = #tpu.pipeline_mode<synchronous>, transform_indices = @transform_7, window_bounds = array<i64: 128, 128>}, {pipeline_mode = #tpu.pipeline_mode<synchronous>, transform_indices = @transform_8, window_bounds = array<i64: 1, 128>}, {pipeline_mode = #tpu.pipeline_mode<synchronous>, transform_indices = @transform_9, window_bounds = array<i64: 128, 128>}, {pipeline_mode = #tpu.pipeline_mode<synchronous>, transform_indices = @transform_10, window_bounds = array<i64: 1, 128>}, {transform_indices = @transform_11, window_bounds = array<i64: 64, 128>}]} {
    %c0 = arith.constant 0 : index
    %c0_0 = arith.constant 0 : index
    %0 = vector.load %arg1[%c0, %c0_0] : memref<64x128xf32, #tpu.memory_space<vmem>>, vector<64x128xf32>
    %c0_1 = arith.constant 0 : index
    %c0_2 = arith.constant 0 : index
    %1 = vector.load %arg2[%c0_1, %c0_2] : memref<128x128xf32, #tpu.memory_space<vmem>>, vector<128x128xf32>
    %cst = arith.constant dense<0.000000e+00> : vector<64x128xf32>
    %2 = tpu.matmul %0, %1, %cst {dimension_numbers = #tpu.dot_dimension_numbers<[1], [0], [0], [1], [0, 0, 1, 1], [], []>} : vector<64x128xf32>, vector<128x128xf32>, vector<64x128xf32> -> vector<64x128xf32>
    %c0_3 = arith.constant 0 : index
    %c0_4 = arith.constant 0 : index
    %3 = vector.load %arg3[%c0_3, %c0_4] : memref<1x128xf32, #tpu.memory_space<vmem>>, vector<1x128xf32>
    %4 = vector.broadcast %3 : vector<1x128xf32> to vector<64x128xf32>
    %5 = arith.addf %2, %4 : vector<64x128xf32>
    %6 = math.sin %5 : vector<64x128xf32>
    %c0_5 = arith.constant 0 : index
    %c0_6 = arith.constant 0 : index
    %7 = vector.load %arg4[%c0_5, %c0_6] : memref<128x128xf32, #tpu.memory_space<vmem>>, vector<128x128xf32>
    %cst_7 = arith.constant dense<0.000000e+00> : vector<64x128xf32>
    %8 = tpu.matmul %6, %7, %cst_7 {dimension_numbers = #tpu.dot_dimension_numbers<[1], [0], [0], [1], [0, 0, 1, 1], [], []>} : vector<64x128xf32>, vector<128x128xf32>, vector<64x128xf32> -> vector<64x128xf32>
    %c0_8 = arith.constant 0 : index
    %c0_9 = arith.constant 0 : index
    %9 = vector.load %arg5[%c0_8, %c0_9] : memref<1x128xf32, #tpu.memory_space<vmem>>, vector<1x128xf32>
    %10 = vector.broadcast %9 : vector<1x128xf32> to vector<64x128xf32>
    %11 = arith.addf %8, %10 : vector<64x128xf32>
    %12 = math.sin %11 : vector<64x128xf32>
    %c0_10 = arith.constant 0 : index
    %c0_11 = arith.constant 0 : index
    %13 = vector.load %arg6[%c0_10, %c0_11] : memref<128x128xf32, #tpu.memory_space<vmem>>, vector<128x128xf32>
    %cst_12 = arith.constant dense<0.000000e+00> : vector<64x128xf32>
    %14 = tpu.matmul %12, %13, %cst_12 {dimension_numbers = #tpu.dot_dimension_numbers<[1], [0], [0], [1], [0, 0, 1, 1], [], []>} : vector<64x128xf32>, vector<128x128xf32>, vector<64x128xf32> -> vector<64x128xf32>
    %c0_13 = arith.constant 0 : index
    %c0_14 = arith.constant 0 : index
    %15 = vector.load %arg7[%c0_13, %c0_14] : memref<1x128xf32, #tpu.memory_space<vmem>>, vector<1x128xf32>
    %16 = vector.broadcast %15 : vector<1x128xf32> to vector<64x128xf32>
    %17 = arith.addf %14, %16 : vector<64x128xf32>
    %c0_15 = arith.constant 0 : index
    %c0_16 = arith.constant 0 : index
    %18 = vector.load %arg8[%c0_15, %c0_16] : memref<128x128xf32, #tpu.memory_space<vmem>>, vector<128x128xf32>
    %cst_17 = arith.constant dense<0.000000e+00> : vector<64x128xf32>
    %19 = tpu.matmul %17, %18, %cst_17 {dimension_numbers = #tpu.dot_dimension_numbers<[1], [0], [0], [1], [0, 0, 1, 1], [], []>} : vector<64x128xf32>, vector<128x128xf32>, vector<64x128xf32> -> vector<64x128xf32>
    %c0_18 = arith.constant 0 : index
    %c0_19 = arith.constant 0 : index
    %20 = vector.load %arg9[%c0_18, %c0_19] : memref<1x128xf32, #tpu.memory_space<vmem>>, vector<1x128xf32>
    %21 = vector.broadcast %20 : vector<1x128xf32> to vector<64x128xf32>
    %22 = arith.addf %19, %21 : vector<64x128xf32>
    %23 = math.sin %22 : vector<64x128xf32>
    %c0_20 = arith.constant 0 : index
    %c0_21 = arith.constant 0 : index
    %24 = vector.load %arg10[%c0_20, %c0_21] : memref<128x128xf32, #tpu.memory_space<vmem>>, vector<128x128xf32>
    %cst_22 = arith.constant dense<0.000000e+00> : vector<64x128xf32>
    %25 = tpu.matmul %23, %24, %cst_22 {dimension_numbers = #tpu.dot_dimension_numbers<[1], [0], [0], [1], [0, 0, 1, 1], [], []>} : vector<64x128xf32>, vector<128x128xf32>, vector<64x128xf32> -> vector<64x128xf32>
    %c0_23 = arith.constant 0 : index
    %c0_24 = arith.constant 0 : index
    %26 = vector.load %arg11[%c0_23, %c0_24] : memref<1x128xf32, #tpu.memory_space<vmem>>, vector<1x128xf32>
    %27 = vector.broadcast %26 : vector<1x128xf32> to vector<64x128xf32>
    %28 = arith.addf %25, %27 : vector<64x128xf32>
    %c0_25 = arith.constant 0 : index
    %c0_26 = arith.constant 0 : index
    %29 = vector.load %arg12[%c0_25, %c0_26] : memref<64x128xf32, #tpu.memory_space<vmem>>, vector<64x128xf32>
    tpu.vector_store %arg12[%c0_25, %c0_26], %28 {strides = array<i32>} : memref<64x128xf32, #tpu.memory_space<vmem>>, vector<64x128xf32>,
    return
  }
  func.func @transform_0(%arg0: i32) -> (i32, i32) {
    %c0_i32 = arith.constant 0 : i32
    %c0_i32_0 = arith.constant 0 : i32
    return %arg0, %c0_i32 : i32, i32
  }
  func.func @transform_1(%arg0: i32) -> (i32, i32) {
    %c0_i32 = arith.constant 0 : i32
    %c0_i32_0 = arith.constant 0 : i32
    %c0_i32_1 = arith.constant 0 : i32
    return %c0_i32, %c0_i32_0 : i32, i32
  }
  func.func @transform_2(%arg0: i32) -> (i32, i32) {
    %c0_i32 = arith.constant 0 : i32
    %c0_i32_0 = arith.constant 0 : i32
    %c0_i32_1 = arith.constant 0 : i32
    return %c0_i32, %c0_i32_0 : i32, i32
  }
  func.func @transform_3(%arg0: i32) -> (i32, i32) {
    %c0_i32 = arith.constant 0 : i32
    %c0_i32_0 = arith.constant 0 : i32
    %c0_i32_1 = arith.constant 0 : i32
    return %c0_i32, %c0_i32_0 : i32, i32
  }
  func.func @transform_4(%arg0: i32) -> (i32, i32) {
    %c0_i32 = arith.constant 0 : i32
    %c0_i32_0 = arith.constant 0 : i32
    %c0_i32_1 = arith.constant 0 : i32
    return %c0_i32, %c0_i32_0 : i32, i32
  }
  func.func @transform_5(%arg0: i32) -> (i32, i32) {
    %c0_i32 = arith.constant 0 : i32
    %c0_i32_0 = arith.constant 0 : i32
    %c0_i32_1 = arith.constant 0 : i32
    return %c0_i32, %c0_i32_0 : i32, i32
  }
  func.func @transform_6(%arg0: i32) -> (i32, i32) {
    %c0_i32 = arith.constant 0 : i32
    %c0_i32_0 = arith.constant 0 : i32
    %c0_i32_1 = arith.constant 0 : i32
    return %c0_i32, %c0_i32_0 : i32, i32
  }
  func.func @transform_7(%arg0: i32) -> (i32, i32) {
    %c0_i32 = arith.constant 0 : i32
    %c0_i32_0 = arith.constant 0 : i32
    %c0_i32_1 = arith.constant 0 : i32
    return %c0_i32, %c0_i32_0 : i32, i32
  }
  func.func @transform_8(%arg0: i32) -> (i32, i32) {
    %c0_i32 = arith.constant 0 : i32
    %c0_i32_0 = arith.constant 0 : i32
    %c0_i32_1 = arith.constant 0 : i32
    return %c0_i32, %c0_i32_0 : i32, i32
  }
  func.func @transform_9(%arg0: i32) -> (i32, i32) {
    %c0_i32 = arith.constant 0 : i32
    %c0_i32_0 = arith.constant 0 : i32
    %c0_i32_1 = arith.constant 0 : i32
    return %c0_i32, %c0_i32_0 : i32, i32
  }
  func.func @transform_10(%arg0: i32) -> (i32, i32) {
    %c0_i32 = arith.constant 0 : i32
    %c0_i32_0 = arith.constant 0 : i32
    %c0_i32_1 = arith.constant 0 : i32
    return %c0_i32, %c0_i32_0 : i32, i32
  }
  func.func @transform_11(%arg0: i32) -> (i32, i32) {
    %c0_i32 = arith.constant 0 : i32
    %c0_i32_0 = arith.constant 0 : i32
    return %arg0, %c0_i32 : i32, i32
  }
}

</mosaic_0001>

<bundles_post_ra>
// kernel: tpu_custom_call.1
= control target key start
LH: loop header
LB: loop body
LE: loop exit
PB: predicated region body
PF: predicated region fallthrough
CT: control target
= control target key end

     0   :  { %16 = vsyncpa [#allocation3], 0  ;;  %s6690_s0 = inlined_call_operand.hbm [shape: f32[64,128], index: 0, kind: input, shape index: {}]   ;;  %s6691_s1 = inlined_call_operand.hbm [shape: f32[128,128], index: 1, kind: input, shape index: {}]   ;;  %s6692_s2 = inlined_call_operand.vmem [shape: f32[1,128], index: 2, kind: input, shape index: {}]   ;;  %s6693_s3 = inlined_call_operand.hbm [shape: f32[128,128], index: 3, kind: input, shape index: {}]   ;;  %s6694_s4 = inlined_call_operand.vmem [shape: f32[1,128], index: 4, kind: input, shape index: {}]   ;;  %s6695_s5 = inlined_call_operand.hbm [shape: f32[128,128], index: 5, kind: input, shape index: {}]   ;;  %s6696_s6 = inlined_call_operand.vmem [shape: f32[1,128], index: 6, kind: input, shape index: {}]   ;;  %s6697_s7 = inlined_call_operand.hbm [shape: f32[128,128], index: 7, kind: input, shape index: {}]   ;;  %s6698_s8 = inlined_call_operand.vmem [shape: f32[1,128], index: 8, kind: input, shape index: {}]   ;;  %s6699_s9 = inlined_call_operand.hbm [shape: f32[128,128], index: 9, kind: input, shape index: {}]   ;;  %s6700_s10 = inlined_call_operand.vmem [shape: f32[1,128], index: 10, kind: input, shape index: {}]   ;;  %s6701_s11 = inlined_call_operand.hbm [shape: f32[64,128], index: 11, kind: output, shape index: {}]  }
   0x1   :  { %17 = vsyncpa [#allocation6], 0 }
   0x2   :  { %18 = vsyncpa [#allocation9], 0 }
   0x3   :  { %19 = vsyncpa [#allocation12], 0 }
   0x4   :  { %20 = vsyncpa [#allocation4], 0  ;;  %s4281_s17 = smov [#allocation5]   ;;  %s4282_s19 = smov [#allocation8]  }
   0x5   :  { %s38_s18 = sshll.u32 %s4281_s17, 4  ;;  %s66_s20 = sshll.u32 %s4282_s19, 4  ;;  %s39_s18 = int_to_ptr.vmem [resolvable:$true] %s38_s18  ;;  %s4356_s20 = int_to_ptr.vmem [resolvable:$true] %s66_s20 }
   0x6   :  { %s4117_s23 = scalar_lea.hbm %s6691_s1, 2048 }
   0x7   :  { %p4118_p0 = scmp.ne.s32.totalorder %s6691_s1, %s4117_s23  ;;  %p4121_p1 = scmp.lt.u32.totalorder %s4117_s23, %s6691_s1 }
   0x9   :  { %p4123_p2 = pnand %p4121_p1, %p4118_p0 }
   0xb   :  { %4126 = shalt.err (!%p4123_p2)
}
   0xc   :  { %s4127_s28 = scalar_lea.vmem %s39_s18, 2048  ;;  %p4132_p4 = scmp.lt.s32.totalorder %s39_s18, %s39_s18 }
   0xd   :  { %p4128_p3 = scmp.ne.s32.totalorder %s39_s18, %s4127_s28  ;;  %p4133_p5 = scmp.lt.s32.totalorder %s4127_s28, %s4127_s28 }
   0xf   :  { %p4134_p6 = por %p4133_p5, %p4132_p4 }
  0x11   :  { %p4135_p7 = pnand %p4134_p6, %p4128_p3 }
  0x13   :  { %4138 = shalt.err (!%p4135_p7)
}
  0x14   :  { %s4283_s29 = smov 128   ;;  %s4284_s30 = smov 8  }
  0x15   :  { %44 = dma.hbm_to_vmem [thread:$0]  %s6691_s1, 2048, %s39_s18, [#allocation6], %s4283_s29, %s4283_s29, %s4284_s30  }
  0x16   :  { %s4139_s16 = scalar_lea.hbm %s6695_s5, 2048 }
  0x17   :  { %p4140_p8 = scmp.ne.s32.totalorder %s6695_s5, %s4139_s16  ;;  %p4143_p9 = scmp.lt.u32.totalorder %s4139_s16, %s6695_s5 }
  0x19   :  { %p4145_p10 = pnand %p4143_p9, %p4140_p8 }
  0x1b   :  { %4148 = shalt.err (!%p4145_p10)
}
  0x1c   :  { %s4149_s23 = scalar_lea.vmem %s4356_s20, 2048  ;;  %p4154_p12 = scmp.lt.s32.totalorder %s4356_s20, %s4356_s20 }
  0x1d   :  { %p4150_p11 = scmp.ne.s32.totalorder %s4356_s20, %s4149_s23  ;;  %p4155_p13 = scmp.lt.s32.totalorder %s4149_s23, %s4149_s23 }
  0x1f   :  { %p4156_p0 = por %p4155_p13, %p4154_p12 }
  0x21   :  { %p4157_p1 = pnand %p4156_p0, %p4150_p11 }
  0x23   :  { %4160 = shalt.err (!%p4157_p1)
}
  0x24   :  { %72 = dma.hbm_to_vmem [thread:$0]  %s6695_s5, 2048, %s4356_s20, [#allocation9], %s4283_s29, %s4283_s29, %s4284_s30  }
  0x25   :  { %s4285_s24 = smov [#allocation2]   ;;  %s4286_s26 = smov [#allocation7]  }
  0x26   :  { %s26_s25 = sshll.u32 %s4285_s24, 4  ;;  %s52_s27 = sshll.u32 %s4286_s26, 4  ;;  %s27_s25 = int_to_ptr.vmem [resolvable:$true] %s26_s25  ;;  %s4393_s27 = int_to_ptr.vmem [resolvable:$true] %s52_s27 }
  0x27   :  { %s4161_s13 = scalar_lea.hbm %s6690_s0, 1024 }
  0x28   :  { %p4162_p2 = scmp.ne.s32.totalorder %s6690_s0, %s4161_s13  ;;  %p4165_p3 = scmp.lt.u32.totalorder %s4161_s13, %s6690_s0 }
  0x2a   :  { %p4167_p4 = pnand %p4165_p3, %p4162_p2 }
  0x2c   :  { %4170 = shalt.err (!%p4167_p4)
}
  0x2d   :  { %s4171_s5 = scalar_lea.vmem %s27_s25, 1024  ;;  %p4176_p6 = scmp.lt.s32.totalorder %s27_s25, %s27_s25 }
  0x2e   :  { %p4172_p5 = scmp.ne.s32.totalorder %s27_s25, %s4171_s5  ;;  %p4177_p7 = scmp.lt.s32.totalorder %s4171_s5, %s4171_s5 }
  0x30   :  { %p4178_p8 = por %p4177_p7, %p4176_p6 }
  0x32   :  { %p4179_p9 = pnand %p4178_p8, %p4172_p5 }
  0x34   :  { %4182 = shalt.err (!%p4179_p9)
}
  0x35   :  { %32 = dma.hbm_to_vmem [thread:$0]  %s6690_s0, 1024, %s27_s25, [#allocation3], %s4283_s29, %s4283_s29, %s4284_s30  }
  0x36   :  { %s4183_s23 = scalar_lea.hbm %s6693_s3, 2048 }
  0x37   :  { %p4184_p10 = scmp.ne.s32.totalorder %s6693_s3, %s4183_s23  ;;  %p4187_p11 = scmp.lt.u32.totalorder %s4183_s23, %s6693_s3 }
  0x39   :  { %p4189_p12 = pnand %p4187_p11, %p4184_p10 }
  0x3b   :  { %4192 = shalt.err (!%p4189_p12)
}
  0x3c   :  { %s4193_s28 = scalar_lea.vmem %s4393_s27, 2048  ;;  %p4198_p0 = scmp.lt.s32.totalorder %s4393_s27, %s4393_s27 }
  0x3d   :  { %p4194_p13 = scmp.ne.s32.totalorder %s4393_s27, %s4193_s28  ;;  %p4199_p1 = scmp.lt.s32.totalorder %s4193_s28, %s4193_s28 }
  0x3f   :  { %p4200_p2 = por %p4199_p1, %p4198_p0 }
  0x41   :  { %p4201_p3 = pnand %p4200_p2, %p4194_p13 }
  0x43   :  { %4204 = shalt.err (!%p4201_p3)
}
  0x44   :  { %58 = dma.hbm_to_vmem [thread:$0]  %s6693_s3, 2048, %s4393_s27, [#allocation6], %s4283_s29, %s4283_s29, %s4284_s30  }
  0x45   :  { %s4287_s12 = smov [#allocation10]   ;;  %s4288_s14 = smov [#allocation11]  }
  0x46   :  { %s80_s13 = sshll.u32 %s4287_s12, 4  ;;  %s94_s15 = sshll.u32 %s4288_s14, 4  ;;  %s81_s13 = int_to_ptr.vmem [resolvable:$true] %s80_s13  ;;  %s4430_s15 = int_to_ptr.vmem [resolvable:$true] %s94_s15 }
  0x47   :  { %s4205_s5 = scalar_lea.hbm %s6697_s7, 2048 }
  0x48   :  { %p4206_p4 = scmp.ne.s32.totalorder %s6697_s7, %s4205_s5  ;;  %p4209_p5 = scmp.lt.u32.totalorder %s4205_s5, %s6697_s7 }
  0x4a   :  { %p4211_p6 = pnand %p4209_p5, %p4206_p4 }
  0x4c   :  { %4214 = shalt.err (!%p4211_p6)
}
  0x4d   :  { %s4215_s3 = scalar_lea.vmem %s81_s13, 2048  ;;  %p4220_p8 = scmp.lt.s32.totalorder %s81_s13, %s81_s13 }
  0x4e   :  { %p4216_p7 = scmp.ne.s32.totalorder %s81_s13, %s4215_s3  ;;  %p4221_p9 = scmp.lt.s32.totalorder %s4215_s3, %s4215_s3 }
  0x50   :  { %p4222_p10 = por %p4221_p9, %p4220_p8 }
  0x52   :  { %p4223_p11 = pnand %p4222_p10, %p4216_p7 }
  0x54   :  { %4226 = shalt.err (!%p4223_p11)
}
  0x55   :  { %86 = dma.hbm_to_vmem [thread:$0]  %s6697_s7, 2048, %s81_s13, [#allocation9], %s4283_s29, %s4283_s29, %s4284_s30  }
  0x56   :  { %s4227_s24 = scalar_lea.hbm %s6699_s9, 2048 }
  0x57   :  { %p4228_p12 = scmp.ne.s32.totalorder %s6699_s9, %s4227_s24  ;;  %p4231_p13 = scmp.lt.u32.totalorder %s4227_s24, %s6699_s9 }
  0x59   :  { %p4233_p0 = pnand %p4231_p13, %p4228_p12 }
  0x5b   :  { %4236 = shalt.err (!%p4233_p0)
}
  0x5c   :  { %s4237_s12 = scalar_lea.vmem %s4430_s15, 2048  ;;  %p4242_p2 = scmp.lt.s32.totalorder %s4430_s15, %s4430_s15 }
  0x5d   :  { %p4238_p1 = scmp.ne.s32.totalorder %s4430_s15, %s4237_s12  ;;  %p4243_p3 = scmp.lt.s32.totalorder %s4237_s12, %s4237_s12 }
  0x5f   :  { %p4244_p4 = por %p4243_p3, %p4242_p2 }
  0x61   :  { %p4245_p5 = pnand %p4244_p4, %p4238_p1 }
  0x63   :  { %4248 = shalt.err (!%p4245_p5)
}
  0x64   :  { %100 = dma.hbm_to_vmem [thread:$0]  %s6699_s9, 2048, %s4430_s15, [#allocation12], %s4283_s29, %s4283_s29, %s4284_s30  }
  0x65   :  { %4271 = dma.done.wait [#allocation3], 1024  }
  0x66   :  { %4272 = vsyncadd [#allocation3], 4294966272 }
  0x67   :  { %4273 = dma.done.wait [#allocation6], 4096  }
  0x68   :  { %4274 = vsyncadd [#allocation6], 4294963200 }
  0x69   :  { %4275 = dma.done.wait [#allocation9], 4096  }
  0x6a   :  { %4276 = vsyncadd [#allocation9], 4294963200 }
  0x6b   :  { %4277 = dma.done.wait [#allocation12], 2048  }
  0x6c   :  { %4278 = vsyncadd [#allocation12], 4294965248  ;;  %v129_v0 = vld [vmem:[#allocation5] sm:$0xff]  ;;  %v130_v1 = vld [vmem:[#allocation5 + $0x8] sm:$0xff]  ;;  %v6719_v57 = vmov 683565275  }
  0x6d   :  { %v131_v2 = vld [vmem:[#allocation5 + $0x10] sm:$0xff]  ;;  %v3734_v3 = vpack.c.bf16 %v130_v1, %v129_v0  ;;  %v132_v4 = vld [vmem:[#allocation5 + $0x18] sm:$0xff]  ;;  %v133_v6 = vld [vmem:[#allocation5 + $0x20] sm:$0xff]  ;;  %v6717_v59 = vmov 2475754826   ;;  %s4295_s20 = smov [#allocation13]  }
  0x6e   :  { %v3738_v5 = vpack.c.bf16 %v132_v4, %v131_v2  ;;  %v134_v7 = vld [vmem:[#allocation5 + $0x28] sm:$0xff]  ;;  %v121_v9 = vld [vmem:[#allocation2] sm:$0xff]  ;;  %v135_v10 = vld [vmem:[#allocation5 + $0x30] sm:$0xff]  ;;  %v6708_v63 = vmov 2131351028  }
  0x6f   :  { %3735 = vmatprep.subr.bf16.mxu0 %v3734_v3  ;;  %v3742_v8 = vpack.c.bf16 %v134_v7, %v133_v6  ;;  %v136_v11 = vld [vmem:[#allocation5 + $0x38] sm:$0xff]  ;;  %3546 = vmatprep.mubr.f32.mxu0 %v121_v9  ;;  %v137_v13 = vld [vmem:[#allocation5 + $0x40] sm:$0xff]  ;;  %v138_v14 = vld [vmem:[#allocation5 + $0x48] sm:$0xff]  ;;  %v6714_v2 = vmov 2102212464  }
  0x70   :  { %3737 = vmatpush3.bf16.msra.mxu0 %v3734_v3  ;;  %v3746_v12 = vpack.c.bf16 %v136_v11, %v135_v10  ;;  %v3750_v15 = vpack.c.bf16 %v138_v14, %v137_v13  ;;  %v139_v16 = vld [vmem:[#allocation5 + $0x50] sm:$0xff]  ;;  %v140_v17 = vld [vmem:[#allocation5 + $0x58] sm:$0xff]  ;;  %v141_v19 = vld [vmem:[#allocation5 + $0x60] sm:$0xff] }
  0x71   :  { %3739 = vmatprep.subr.bf16.mxu0 %v3738_v5  ;;  %v3754_v18 = vpack.c.bf16 %v140_v17, %v139_v16  ;;  %v142_v20 = vld [vmem:[#allocation5 + $0x68] sm:$0xff]  ;;  %v143_v22 = vld [vmem:[#allocation5 + $0x70] sm:$0xff]  ;;  %v144_v23 = vld [vmem:[#allocation5 + $0x78] sm:$0xff] }
  0x72   :  { %v3758_v21 = vpack.c.bf16 %v142_v20, %v141_v19  ;;  %v3762_v24 = vpack.c.bf16 %v144_v23, %v143_v22  ;;  %v122_v25 = vld [vmem:[#allocation2 + $0x8] sm:$0xff]  ;;  %v123_v26 = vld [vmem:[#allocation2 + $0x10] sm:$0xff]  ;;  %v124_v27 = vld [vmem:[#allocation2 + $0x18] sm:$0xff] }
  0x73   :  { %v125_v28 = vld [vmem:[#allocation2 + $0x20] sm:$0xff]  ;;  %v126_v29 = vld [vmem:[#allocation2 + $0x28] sm:$0xff]  ;;  %v127_v30 = vld [vmem:[#allocation2 + $0x30] sm:$0xff] }
  0x74   :  { %3741 = vmatpush3.bf16.msra.mxu0 %v3738_v5  ;;  %v128_v31 = vld [vmem:[#allocation2 + $0x38] sm:$0xff]  ;;  %v4470_v32 = vld [vmem:[%s6692_s2] ss:$0 sm:$0xff]  ;;  %v6712_v5 = vmov 920167782  }
  0x75   :  { %3743 = vmatprep.subr.bf16.mxu0 %v3742_v8 }
  0x78   :  { %3745 = vmatpush3.bf16.msra.mxu0 %v3742_v8  ;;  %v6710_v8 = vmov 1326507024  }
  0x79   :  { %3747 = vmatprep.subr.bf16.mxu0 %v3746_v12 }
  0x7c   :  { %3749 = vmatpush3.bf16.msra.mxu0 %v3746_v12 }
  0x7d   :  { %3751 = vmatprep.subr.bf16.mxu0 %v3750_v15 }
  0x80   :  { %3753 = vmatpush3.bf16.msra.mxu0 %v3750_v15 }
  0x81   :  { %3755 = vmatprep.subr.bf16.mxu0 %v3754_v18 }
  0x84   :  { %3757 = vmatpush3.bf16.msra.mxu0 %v3754_v18 }
  0x85   :  { %3759 = vmatprep.subr.bf16.mxu0 %v3758_v21 }
  0x88   :  { %3761 = vmatpush3.bf16.msra.mxu0 %v3758_v21 }
  0x89   :  { %3763 = vmatprep.subr.bf16.mxu0 %v3762_v24 }
  0x8c   :  { %3765 = vmatpush3.bf16.msra.mxu0 %v3762_v24 }
  0x8f   :  { %3547 = vmatmul.mubr.f32.vlgmr.msra.gmra.mrb[0].mxu0 %v122_v25 }
  0x90   :  { %3549 = vmatprep.mubr.f32.mxu0 %v123_v26 }
  0x93   :  { %3550 = vmatmul.mubr.f32.gmra.mrb[2].mxu0 %v124_v27 }
  0x94   :  { %3552 = vmatprep.mubr.f32.mxu0 %v125_v28 }
  0x97   :  { %3553 = vmatmul.mubr.f32.gmra.mrb[4].mxu0 %v126_v29 }
  0x98   :  { %3555 = vmatprep.mubr.f32.mxu0 %v127_v30 }
  0x9b   :  { %3556 = vmatmul.mubr.f32.gmra.mrb[6].mxu0 %v128_v31 }
 0x162   :  { %v3548_v33 = vpop.f32.mrb[0].mxu0 }
 0x163   :  { %v4473_v34 = vadd.f32 %v3548_v33, %v4470_v32  ;;  %v4475_v35 = vpop.f32.mrb[1].mxu0 }
 0x165   :  { %v364_v36 = vand.u32 2139095040, %v4473_v34  ;;  %v6707_v46 = vand.u32 2147483647, %v4473_v34 }
 0x166   :  { %v3551_v37 = vpop.f32.mrb[2].mxu0 }
 0x167   :  { %v365_v38 = vshrl.u32 %v364_v36, 23  ;;  %v4479_v39 = vadd.f32 %v3551_v37, %v4470_v32  ;;  %v228_v40 = vpop.f32.mrb[3].mxu0  ;;  %v368_v53 = vand.u32 8388607, %v6707_v46 }
 0x168   :  { %v4488_v47 = vadd.f32 %v4470_v32, %v228_v40 }
 0x169   :  { %v3298_v41 = vadd.s32 4294967169, %v365_v38  ;;  %v572_v42 = vand.u32 2139095040, %v4479_v39  ;;  %v369_v14 = vor.u32 8388608, %v368_v53  ;;  %v6705_v18 = vand.u32 2147483647, %v4479_v39 }
 0x16a   :  { %v4482_v43 = vpop.f32.mrb[4].mxu0  ;;  %v468_v55 = vand.u32 2139095040, %v4488_v47 }
 0x16b   :  { %v371_v44 = vadd.s32 1, %v3298_v41  ;;  %v4484_v45 = vpop.f32.mrb[5].mxu0  ;;  %v573_v49 = vshrl.u32 %v572_v42, 23  ;;  %v409_v27 = vshll.u32 %v369_v14, 8  ;;  %v576_v31 = vand.u32 8388607, %v6705_v18 }
 0x16c   :  { %v469_v13 = vshrl.u32 %v468_v55, 23 }
 0x16d   :  { %vm372_vm0 = vcmp.gt.s32.totalorder %v371_v44, 0  ;;  %v3306_v61 = vadd.s32 4294967169, %v573_v49 }
 0x16e   :  { %v373_v48 = vsel %vm372_vm0, %v371_v44, 0  ;;  %v4490_v50 = vpop.f32.mrb[6].mxu0  ;;  %v3302_v25 = vadd.s32 4294967169, %v469_v13  ;;  %v4544_v44 = vadd.f32 %v4470_v32, %v4475_v35 }
 0x16f   :  { %v375_v51 = vand.u32 31, %v373_v48  ;;  %v4492_v52 = vpop.f32.mrb[7].mxu0  ;;  %v4497_v56 = vshrl.u32 %v373_v48, 5  ;;  %v579_v19 = vadd.s32 1, %v3306_v61 }
 0x170   :  { %v475_v37 = vadd.s32 1, %v3302_v25  ;;  %6751 = vst [vmem:[#allocation19_spill] sm:$0xff] %v4544_v44 }
 0x171   :  { %v376_v54 = vsub.s32 32, %v375_v51  ;;  %v378_v58 = vshll.u32 %v6719_v57, %v375_v51  ;;  %v381_v60 = vshll.u32 %v6717_v59, %v375_v51  ;;  %v384_v1 = vshll.u32 %v6708_v63, %v375_v51 }
 0x172   :  { %v387_v4 = vshll.u32 %v6714_v2, %v375_v51  ;;  %v390_v7 = vshll.u32 %v6712_v5, %v375_v51  ;;  %vm393_vm1 = vcmp.lt.s32.totalorder %v4497_v56, 1  ;;  %vm396_vm2 = vcmp.lt.s32.totalorder %v4497_v56, 4 }
 0x173   :  { %v379_v62 = vshrl.u32 %v6717_v59, %v376_v54  ;;  %v382_v0 = vshrl.u32 %v6708_v63, %v376_v54  ;;  %v385_v3 = vshrl.u32 %v6714_v2, %v376_v54  ;;  %v388_v6 = vshrl.u32 %v6712_v5, %v376_v54 }
 0x174   :  { %v391_v9 = vshrl.u32 %v6710_v8, %v376_v54  ;;  %vm395_vm3 = vcmp.lt.s32.totalorder %v4497_v56, 3  ;;  %vm394_vm4 = vcmp.lt.s32.totalorder %v4497_v56, 2  ;;  %vm580_vm5 = vcmp.gt.s32.totalorder %v579_v19, 0 }
 0x175   :  { %v380_v10 = vor.u32 %v379_v62, %v378_v58  ;;  %v383_v11 = vor.u32 %v382_v0, %v381_v60  ;;  %v386_v12 = vor.u32 %v385_v3, %v384_v1  ;;  %v389_v15 = vor.u32 %v388_v6, %v387_v4 }
 0x176   :  { %v392_v16 = vor.u32 %v391_v9, %v390_v7  ;;  %v581_v36 = vsel %vm580_vm5, %v579_v19, 0  ;;  %v377_v38 = vshrl.u32 %v6719_v57, %v376_v54  ;;  %v577_v51 = vor.u32 8388608, %v576_v31 }
 0x177   :  { %v401_v17 = vsel %vm393_vm1, %v380_v10, %v383_v11  ;;  %v402_v20 = vsel %vm396_vm2, %v389_v15, 920167782  ;;  %v405_v21 = vsel %vm393_vm1, %v383_v11, %v386_v12  ;;  %v398_v33 = vsel %vm396_vm2, %v386_v12, 2102212464 }
 0x178   :  { %v406_v22 = vsel %vm396_vm2, %v392_v16, 1326507024  ;;  %v403_v23 = vsel %vm395_vm3, %v386_v12, %v402_v20  ;;  %v583_v42 = vand.u32 31, %v581_v36  ;;  %v397_v48 = vsel %vm393_vm1, %v377_v38, %v380_v10 }
 0x179   :  { %v407_v24 = vsel %vm395_vm3, %v389_v15, %v406_v22  ;;  %v404_v26 = vsel %vm394_vm4, %v401_v17, %v403_v23  ;;  %v399_v49 = vsel %vm395_vm3, %v383_v11, %v398_v33  ;;  %v4550_v55 = vshrl.u32 %v581_v36, 5 }
 0x17a   :  { %v408_v28 = vsel %vm394_vm4, %v405_v21, %v407_v24  ;;  %v4530_v29 = vmul.u32.u64.low %v409_v27, %v404_v26  ;;  %v4531_v30 = vmul.u32.u64.high %v409_v27, %v404_v26, %v4530_v29  ;;  %v584_v53 = vsub.s32 32, %v583_v42 }
 0x17b   :  { %v4539_v40 = vmul.u32.u64.low %v409_v27, %v408_v28  ;;  %v4540_v41 = vmul.u32.u64.high %v409_v27, %v408_v28, %v4539_v40  ;;  %v586_v54 = vshll.u32 %v6719_v57, %v583_v42  ;;  %v589_v58 = vshll.u32 %v6717_v59, %v583_v42 }
 0x17c   :  { %vm476_vm6 = vcmp.gt.s32.totalorder %v475_v37, 0  ;;  %v587_v60 = vshrl.u32 %v6717_v59, %v584_v53  ;;  %v590_v35 = vshrl.u32 %v6708_v63, %v584_v53  ;;  %v592_v61 = vshll.u32 %v6708_v63, %v583_v42 }
 0x17d   :  { %v595_v62 = vshll.u32 %v6714_v2, %v583_v42  ;;  %v593_v0 = vshrl.u32 %v6714_v2, %v584_v53  ;;  %v596_v1 = vshrl.u32 %v6712_v5, %v584_v53  ;;  %v598_v3 = vshll.u32 %v6712_v5, %v583_v42 }
 0x17e   :  { %v599_v4 = vshrl.u32 %v6710_v8, %v584_v53  ;;  %v400_v6 = vsel %vm394_vm4, %v397_v48, %v399_v49  ;;  %v419_v7 = vadd.s32 1, %v4531_v30  ;;  %v588_v9 = vor.u32 %v587_v60, %v586_v54 }
 0x17f   :  { %v591_v10 = vor.u32 %v590_v35, %v589_v58  ;;  %v594_v11 = vor.u32 %v593_v0, %v592_v61  ;;  %v597_v12 = vor.u32 %v596_v1, %v595_v62  ;;  %vm601_vm7 = vcmp.lt.s32.totalorder %v4550_v55, 1 }
 0x180   :  { %v600_v13 = vor.u32 %v599_v4, %v598_v3  ;;  %vm418_vm8 = vc.u32 %v4540_v41, %v4530_v29  ;;  %vm604_vm9 = vcmp.lt.s32.totalorder %v4550_v55, 4  ;;  %v477_v56 = vsel %vm476_vm6, %v475_v37, 0 }
 0x181   :  { %v609_v14 = vsel %vm601_vm7, %v588_v9, %v591_v10  ;;  %vm603_vm10 = vcmp.lt.s32.totalorder %v4550_v55, 3  ;;  %v610_v15 = vsel %vm604_vm9, %v597_v12, 920167782  ;;  %v613_v16 = vsel %vm601_vm7, %v591_v10, %v594_v11 }
 0x182   :  { %v614_v17 = vsel %vm604_vm9, %v600_v13, 1326507024  ;;  %vm602_vm11 = vcmp.lt.s32.totalorder %v4550_v55, 2  ;;  %v611_v19 = vsel %vm603_vm10, %v594_v11, %v610_v15  ;;  %v420_v21 = vsel %vm418_vm8, %v419_v7, %v4531_v30 }
 0x183   :  { %v615_v20 = vsel %vm603_vm10, %v597_v12, %v614_v17  ;;  %v612_v22 = vsel %vm602_vm11, %v609_v14, %v611_v19  ;;  %v479_v23 = vand.u32 31, %v477_v56  ;;  %v416_v24 = vmul.u32 %v409_v27, %v400_v6 }
 0x184   :  { %v616_v25 = vsel %vm602_vm11, %v613_v16, %v615_v20  ;;  %v617_v26 = vshll.u32 %v577_v51, 8  ;;  %v260_v28 = vand.u32 2139095040, %v4544_v44  ;;  %v606_v40 = vsel %vm604_vm9, %v594_v11, 2102212464 }
 0x185   :  { %v4590_v31 = vsub.s32 32, %v479_v23  ;;  %v421_v33 = vadd.s32 %v420_v21, %v416_v24  ;;  %v585_v42 = vshrl.u32 %v6719_v57, %v584_v53  ;;  %v6706_v48 = vand.u32 2147483647, %v4488_v47 }
 0x186   :  { %v4592_v36 = vmul.u32.u64.low %v617_v26, %v612_v22  ;;  %v4593_v37 = vmul.u32.u64.high %v617_v26, %v612_v22, %v4592_v36  ;;  %v4596_v38 = vmul.u32.u64.low %v617_v26, %v616_v25  ;;  %v4597_v30 = vmul.u32.u64.high %v617_v26, %v616_v25, %v4596_v38 }
 0x187   :  { %v261_v27 = vshrl.u32 %v260_v28, 23  ;;  %v492_v49 = vshrl.u32 %v6712_v5, %v4590_v31  ;;  %v422_v51 = vadd.s32 536870912, %v421_v33  ;;  %v495_v54 = vshrl.u32 %v6710_v8, %v4590_v31 }
 0x188   :  { %v605_v58 = vsel %vm601_vm7, %v585_v42, %v588_v9  ;;  %v607_v60 = vsel %vm603_vm10, %v591_v10, %v606_v40  ;;  %v4611_v35 = vshrl.u32 %v477_v56, 5  ;;  %v491_v61 = vshll.u32 %v6714_v2, %v479_v23 }
 0x189   :  { %v483_v53 = vshrl.u32 %v6717_v59, %v4590_v31  ;;  %v486_v62 = vshrl.u32 %v6708_v63, %v4590_v31  ;;  %v489_v0 = vshrl.u32 %v6714_v2, %v4590_v31  ;;  %v494_v1 = vshll.u32 %v6712_v5, %v479_v23 }
 0x18a   :  { %v3294_v3 = vadd.s32 4294967169, %v261_v27  ;;  %v472_v4 = vand.u32 8388607, %v6706_v48  ;;  %v482_v6 = vshll.u32 %v6719_v57, %v479_v23  ;;  %v493_v7 = vor.u32 %v492_v49, %v491_v61 }
 0x18b   :  { %v627_v9 = vadd.s32 1, %v4593_v37  ;;  %v485_v10 = vshll.u32 %v6717_v59, %v479_v23  ;;  %v488_v11 = vshll.u32 %v6708_v63, %v479_v23  ;;  %v496_v12 = vor.u32 %v495_v54, %v494_v1 }
 0x18c   :  { %v4627_v13 = vshrl.u32 %v422_v51, 30  ;;  %v608_v14 = vsel %vm602_vm11, %v605_v58, %v607_v60  ;;  %vm626_vm12 = vc.u32 %v4597_v30, %v4592_v36  ;;  %v4635_v56 = vadd.f32 %v4482_v43, %v4470_v32 }
 0x18d   :  { %v484_v15 = vor.u32 %v483_v53, %v482_v6  ;;  %v487_v16 = vor.u32 %v486_v62, %v485_v10  ;;  %v490_v17 = vor.u32 %v489_v0, %v488_v11  ;;  %vm500_vm13 = vcmp.lt.s32.totalorder %v4611_v35, 4 }
 0x18e   :  { %6752 = vst [vmem:[#allocation20_spill] sm:$0xff] %v4635_v56  ;;  %v506_v19 = vsel %vm500_vm13, %v493_v7, 920167782  ;;  %v267_v20 = vadd.s32 1, %v3294_v3  ;;  %v628_v21 = vsel %vm626_vm12, %v627_v9, %v4593_v37  ;;  %v510_v55 = vsel %vm500_vm13, %v496_v12, 1326507024 }
 0x18f   :  { %v624_v22 = vmul.u32 %v617_v26, %v608_v14  ;;  %vm497_vm14 = vcmp.lt.s32.totalorder %v4611_v35, 1  ;;  %vm499_vm15 = vcmp.lt.s32.totalorder %v4611_v35, 3  ;;  %v780_v43 = vand.u32 2139095040, %v4635_v56 }
 0x190   :  { %v424_v23 = vshll.u32 %v4627_v13, 30  ;;  %v473_v24 = vor.u32 8388608, %v472_v4  ;;  %v505_v25 = vsel %vm497_vm14, %v484_v15, %v487_v16  ;;  %v507_v28 = vsel %vm499_vm15, %v490_v17, %v506_v19 }
 0x191   :  { %v4651_v37 = vadd.s32 %v628_v21, %v624_v22  ;;  %v509_v26 = vsel %vm497_vm14, %v487_v16, %v490_v17  ;;  %v511_v38 = vsel %vm499_vm15, %v493_v7, %v510_v55  ;;  %v781_v40 = vshrl.u32 %v780_v43, 23 }
 0x192   :  { %vm498_vm0 = vcmp.lt.s32.totalorder %v4611_v35, 2  ;;  %v4660_v49 = vsub.s32 %v421_v33, %v424_v23  ;;  %v4664_v54 = vshll.u32 %v473_v24, 8  ;;  %vm268_vm1 = vcmp.gt.s32.totalorder %v267_v20, 0 }
 0x193   :  { %v508_v27 = vsel %vm498_vm0, %v505_v25, %v507_v28  ;;  %v3314_v42 = vadd.s32 4294967169, %v781_v40  ;;  %v512_v51 = vsel %vm498_vm0, %v509_v26, %v511_v38  ;;  %v630_v58 = vadd.s32 536870912, %v4651_v37 }
 0x194   :  { %v4669_v61 = vadd.f32 %v4470_v32, %v4484_v45  ;;  %v481_v53 = vshrl.u32 %v6719_v57, %v4590_v31  ;;  %v502_v33 = vsel %vm500_vm13, %v490_v17, 2102212464  ;;  %v427_v4 = vsub.s32 0, %v4660_v49 }
 0x195   :  { %v787_v60 = vadd.s32 1, %v3314_v42  ;;  %v4676_v62 = vmul.u32.u64.low %v4664_v54, %v508_v27  ;;  %v4677_v0 = vmul.u32.u64.high %v4664_v54, %v508_v27, %v4676_v62  ;;  %v4685_v45 = vsel %vm268_vm1, %v267_v20, 0 }
 0x196   :  { %6753 = vst [vmem:[#allocation21_spill] sm:$0xff] %v4669_v61  ;;  %v4681_v1 = vmul.u32.u64.low %v4664_v54, %v512_v51  ;;  %v4682_v3 = vmul.u32.u64.high %v4664_v54, %v512_v51, %v4681_v1  ;;  %v501_v31 = vsel %vm497_vm14, %v481_v53, %v484_v15  ;;  %v4689_v7 = vshrl.u32 %v630_v58, 30 }
 0x197   :  { %vm788_vm2 = vcmp.gt.s32.totalorder %v787_v60, 0  ;;  %v503_v9 = vsel %vm499_vm15, %v487_v16, %v502_v33  ;;  %v676_v11 = vand.u32 2139095040, %v4669_v61  ;;  %v6702_v12 = vand.u32 2147483647, %v4635_v56 }
 0x198   :  { %v789_v6 = vsel %vm788_vm2, %v787_v60, 0  ;;  %6754 = vst [vmem:[#allocation22_spill] sm:$0xff] %v4689_v7  ;;  %v4696_v17 = vmin.u32 %v427_v4, %v4660_v49  ;;  %v4699_v19 = vand.u32 31, %v4685_v45  ;;  %v504_v15 = vsel %vm498_vm0, %v501_v31, %v503_v9 }
 0x199   :  { %v791_v10 = vand.u32 31, %v789_v6  ;;  %v6704_v20 = vand.u32 2147483647, %v4544_v44  ;;  %v632_v21 = vshll.u32 %v4689_v7, 30  ;;  %v677_v22 = vshrl.u32 %v676_v11, 23  ;;  %v1097_v44 = vld [vmem:[#allocation7 + $0x40] sm:$0xff] }
 0x19a   :  { %v784_v43 = vand.u32 8388607, %v6702_v12  ;;  %vm522_vm3 = vc.u32 %v4682_v3, %v4676_v62  ;;  %v523_v35 = vadd.s32 1, %v4677_v0  ;;  %v790_v28 = vshrl.u32 %v789_v6, 5  ;;  %v1099_v7 = vld [vmem:[#allocation7 + $0x50] sm:$0xff] }
 0x19b   :  { %v792_v14 = vsub.s32 32, %v791_v10  ;;  %v794_v23 = vshll.u32 %v6719_v57, %v791_v10  ;;  %v797_v24 = vshll.u32 %v6717_v59, %v791_v10  ;;  %v800_v26 = vshll.u32 %v6708_v63, %v791_v10 }
 0x19c   :  { %v803_v27 = vshll.u32 %v6714_v2, %v791_v10  ;;  %v806_v58 = vshll.u32 %v6712_v5, %v791_v10  ;;  %v3310_v53 = vadd.s32 4294967169, %v677_v22  ;;  %v4721_v33 = vsub.s32 32, %v4699_v19 }
 0x19d   :  { %v795_v16 = vshrl.u32 %v6717_v59, %v792_v14  ;;  %v798_v55 = vshrl.u32 %v6708_v63, %v792_v14  ;;  %v801_v25 = vshrl.u32 %v6714_v2, %v792_v14  ;;  %v804_v42 = vshrl.u32 %v6712_v5, %v792_v14 }
 0x19e   :  { %v807_v60 = vshrl.u32 %v6710_v8, %v792_v14  ;;  %v785_v1 = vor.u32 8388608, %v784_v43  ;;  %v4725_v31 = vand.u32 8388607, %v6704_v20  ;;  %v429_v6 = vclz %v4696_v17 }
 0x19f   :  { %v796_v38 = vor.u32 %v795_v16, %v794_v23  ;;  %v799_v40 = vor.u32 %v798_v55, %v797_v24  ;;  %v802_v51 = vor.u32 %v801_v25, %v800_v26  ;;  %v805_v4 = vor.u32 %v804_v42, %v803_v27 }
 0x1a0   :  { %v520_v9 = vmul.u32 %v4664_v54, %v504_v15  ;;  %v808_v11 = vor.u32 %v807_v60, %v806_v58  ;;  %vm809_vm4 = vcmp.lt.s32.totalorder %v790_v28, 1  ;;  %v4730_v10 = vsub.s32 %v4651_v37, %v632_v21 }
 0x1a1   :  { %v524_v16 = vsel %vm522_vm3, %v523_v35, %v4677_v0  ;;  %vm812_vm5 = vcmp.lt.s32.totalorder %v790_v28, 4  ;;  %v817_v55 = vsel %vm809_vm4, %v796_v38, %v799_v40  ;;  %vm811_vm6 = vcmp.lt.s32.totalorder %v790_v28, 3 }
 0x1a2   :  { %v818_v22 = vsel %vm812_vm5, %v805_v4, 920167782  ;;  %v821_v43 = vsel %vm809_vm4, %v799_v40, %v802_v51  ;;  %v683_v17 = vadd.s32 1, %v3310_v53  ;;  %vm810_vm7 = vcmp.lt.s32.totalorder %v790_v28, 2 }
 0x1a3   :  { %v819_v54 = vsel %vm811_vm6, %v802_v51, %v818_v22  ;;  %v822_v15 = vsel %vm812_vm5, %v808_v11, 1326507024  ;;  %v825_v23 = vshll.u32 %v785_v1, 8  ;;  %v4739_v37 = vadd.s32 %v524_v16, %v520_v9 }
 0x1a4   :  { %v820_v21 = vsel %vm810_vm7, %v817_v55, %v819_v54  ;;  %v823_v24 = vsel %vm811_vm6, %v805_v4, %v822_v15  ;;  %v4745_v0 = vadd.f32 %v4490_v50, %v4470_v32  ;;  %v814_v25 = vsel %vm812_vm5, %v802_v51, 2102212464 }
 0x1a5   :  { %v824_v35 = vsel %vm810_vm7, %v821_v43, %v823_v24  ;;  %v4748_v26 = vmul.u32.u64.low %v825_v23, %v820_v21  ;;  %v4749_v27 = vmul.u32.u64.high %v825_v23, %v820_v21, %v4748_v26  ;;  %v793_v42 = vshrl.u32 %v6719_v57, %v792_v14 }
 0x1a6   :  { %6755 = vst [vmem:[#allocation23_spill] sm:$0xff] %v4745_v0  ;;  %v4753_v58 = vmul.u32.u64.low %v825_v23, %v824_v35  ;;  %v4754_v60 = vmul.u32.u64.high %v825_v23, %v824_v35, %v4753_v58  ;;  %vm684_vm8 = vcmp.gt.s32.totalorder %v683_v17, 0  ;;  %v4757_v53 = vshrl.u32 %v4685_v45, 5 }
 0x1a7   :  { %v635_v1 = vsub.s32 0, %v4730_v10  ;;  %v6703_v50 = vand.u32 2147483647, %v4669_v61  ;;  %v685_v51 = vsel %vm684_vm8, %v683_v17, 0  ;;  %v4763_v4 = vshll.u32 %v6714_v2, %v4699_v19 }
 0x1a8   :  { %v526_v9 = vadd.s32 536870912, %v4739_v37  ;;  %v813_v14 = vsel %vm809_vm4, %v793_v42, %v796_v38  ;;  %v815_v11 = vsel %vm811_vm6, %v799_v40, %v814_v25  ;;  %v4770_v16 = vshrl.u32 %v6712_v5, %v4721_v33 }
 0x1a9   :  { %v4774_v45 = vshll.u32 %v6712_v5, %v4699_v19  ;;  %v835_v55 = vadd.s32 1, %v4749_v27  ;;  %v687_v22 = vand.u32 31, %v685_v51  ;;  %v4777_v43 = vadd.s32 4294967294, %v429_v6 }
 0x1aa   :  { %v4781_v17 = vshrl.u32 %v6710_v8, %v4721_v33  ;;  %vm834_vm9 = vc.u32 %v4754_v60, %v4748_v26  ;;  %v988_v38 = vand.u32 2139095040, %v4745_v0  ;;  %v4787_v40 = vmin.u32 %v635_v1, %v4730_v10 }
 0x1ab   :  { %v816_v54 = vsel %vm810_vm7, %v813_v14, %v815_v11  ;;  %v680_v15 = vand.u32 8388607, %v6703_v50  ;;  %v688_v21 = vsub.s32 32, %v687_v22  ;;  %v4792_v6 = vshrl.u32 %v526_v9, 30 }
 0x1ac   :  { %v836_v24 = vsel %vm834_vm9, %v835_v55, %v4749_v27  ;;  %v690_v25 = vshll.u32 %v6719_v57, %v687_v22  ;;  %v693_v35 = vshll.u32 %v6717_v59, %v687_v22  ;;  %v696_v1 = vshll.u32 %v6708_v63, %v687_v22 }
 0x1ad   :  { %6756 = vst [vmem:[#allocation24_spill] sm:$0xff] %v4792_v6  ;;  %v691_v42 = vshrl.u32 %v6717_v59, %v688_v21  ;;  %v694_v58 = vshrl.u32 %v6708_v63, %v688_v21  ;;  %v697_v28 = vshrl.u32 %v6714_v2, %v688_v21  ;;  %v832_v14 = vmul.u32 %v825_v23, %v816_v54 }
 0x1ae   :  { %v686_v11 = vshrl.u32 %v685_v51, 5  ;;  %v699_v12 = vshll.u32 %v6714_v2, %v687_v22  ;;  %v989_v9 = vshrl.u32 %v988_v38, 23  ;;  %v700_v55 = vshrl.u32 %v6712_v5, %v688_v21  ;;  %v1092_v2 = vld [vmem:[#allocation7 + $0x18] sm:$0xff] }
 0x1af   :  { %v692_v50 = vor.u32 %v691_v42, %v690_v25  ;;  %v695_v20 = vor.u32 %v694_v58, %v693_v35  ;;  %v698_v27 = vor.u32 %v697_v28, %v696_v1  ;;  %vm3301_vm10 = vcmp.lt.s32.totalorder %v4777_v43, 0 }
 0x1b0   :  { %v4804_v18 = vadd.s32 %v836_v24, %v832_v14  ;;  %v702_v48 = vshll.u32 %v6712_v5, %v687_v22  ;;  %v703_v46 = vshrl.u32 %v6710_v8, %v688_v21  ;;  %v637_v63 = vclz %v4787_v40  ;;  %v1090_v8 = vld [vmem:[#allocation7 + $0x8] sm:$0xff]  ;;  %v1091_v5 = vld [vmem:[#allocation7 + $0x10] sm:$0xff] }
 0x1b1   :  { %v528_v23 = vshll.u32 %v4792_v6, 30  ;;  %v681_v51 = vor.u32 8388608, %v680_v15  ;;  %v701_v54 = vor.u32 %v700_v55, %v699_v12  ;;  %vm705_vm11 = vcmp.lt.s32.totalorder %v686_v11, 1 }
 0x1b2   :  { %v704_v38 = vor.u32 %v703_v46, %v702_v48  ;;  %vm708_vm12 = vcmp.lt.s32.totalorder %v686_v11, 4  ;;  %v3322_v25 = vadd.s32 4294967169, %v989_v9  ;;  %vm707_vm13 = vcmp.lt.s32.totalorder %v686_v11, 3  ;;  %v1089_v48 = vld [vmem:[#allocation7] sm:$0xff] }
 0x1b3   :  { %v710_v35 = vsel %vm708_vm12, %v698_v27, 2102212464  ;;  %v713_v42 = vsel %vm705_vm11, %v692_v50, %v695_v20  ;;  %v714_v24 = vsel %vm708_vm12, %v701_v54, 920167782  ;;  %v838_v58 = vadd.s32 536870912, %v4804_v18 }
 0x1b4   :  { %v689_v22 = vshrl.u32 %v6719_v57, %v688_v21  ;;  %vm706_vm14 = vcmp.lt.s32.totalorder %v686_v11, 2  ;;  %v715_v1 = vsel %vm707_vm13, %v698_v27, %v714_v24  ;;  %v717_v15 = vsel %vm705_vm11, %v695_v20, %v698_v27 }
 0x1b5   :  { %v716_v40 = vsel %vm706_vm14, %v713_v42, %v715_v1  ;;  %v718_v12 = vsel %vm708_vm12, %v704_v38, 1326507024  ;;  %v721_v46 = vshll.u32 %v681_v51, 8  ;;  %v711_v14 = vsel %vm707_vm13, %v695_v20, %v710_v35 }
 0x1b6   :  { %v709_v28 = vsel %vm705_vm11, %v689_v22, %v692_v50  ;;  %v719_v9 = vsel %vm707_vm13, %v701_v54, %v718_v12  ;;  %v6716_v55 = vand.u32 2147483647, %v4745_v0  ;;  %v4818_v21 = vsub.s32 %v4739_v37, %v528_v23  ;;  %v1094_v22 = vld [vmem:[#allocation7 + $0x28] sm:$0xff]  ;;  %v1096_v12 = vld [vmem:[#allocation7 + $0x38] sm:$0xff] }
 0x1b7   :  { %v720_v24 = vsel %vm706_vm14, %v717_v15, %v719_v9  ;;  %v4821_v42 = vmul.u32.u64.low %v721_v46, %v716_v40  ;;  %v4822_v1 = vmul.u32.u64.high %v721_v46, %v716_v40, %v4821_v42  ;;  %v4825_v27 = vshrl.u32 %v838_v58, 30  ;;  %v1095_v15 = vld [vmem:[#allocation7 + $0x30] sm:$0xff]  ;;  %v1098_v0 = vld [vmem:[#allocation7 + $0x48] sm:$0xff] }
 0x1b8   :  { %v4827_v51 = vmul.u32.u64.low %v721_v46, %v720_v24  ;;  %v4828_v50 = vmul.u32.u64.high %v721_v46, %v720_v24, %v4827_v51  ;;  %v995_v20 = vadd.s32 1, %v3322_v25  ;;  %v4832_v54 = vor.u32 %v4770_v16, %v4763_v4  ;;  %v1093_v25 = vld [vmem:[#allocation7 + $0x20] sm:$0xff] }
 0x1b9   :  { %6757 = vst [vmem:[#allocation25_spill] sm:$0xff] %v4825_v27  ;;  %v712_v38 = vsel %vm706_vm14, %v709_v28, %v711_v14  ;;  %v3766_v37 = vpack.c.bf16 %v1090_v8, %v1089_v48  ;;  %v3770_v23 = vpack.c.bf16 %v1092_v2, %v1091_v5  ;;  %v4838_v35 = vsel %vm3301_vm10, 0, %v4777_v43 }
 0x1ba   :  { %v288_v58 = vor.u32 %v4781_v17, %v4774_v45  ;;  %vm292_vm15 = vcmp.lt.s32.totalorder %v4757_v53, 4  ;;  %vm996_vm0 = vcmp.gt.s32.totalorder %v995_v20, 0  ;;  %v3308_v40 = vadd.s32 4294967294, %v637_v63 }
 0x1bb   :  { %v531_v4 = vsub.s32 0, %v4818_v21  ;;  %v731_v16 = vadd.s32 1, %v4822_v1  ;;  %v997_v8 = vsel %vm996_vm0, %v995_v20, 0  ;;  %3767 = vmatprep.subr.bf16.mxu1 %v3766_v37  ;;  %v840_v2 = vshll.u32 %v4825_v27, 30 }
 0x1bc   :  { %v728_v5 = vmul.u32 %v721_v46, %v712_v38  ;;  %vm730_vm1 = vc.u32 %v4828_v50, %v4821_v42  ;;  %v992_v45 = vand.u32 8388607, %v6716_v55  ;;  %3769 = vmatpush3.bf16.msra.mxu1 %v3766_v37  ;;  %v4853_v63 = vsel %vm292_vm15, %v4832_v54, 920167782 }
 0x1bd   :  { %v732_v43 = vsel %vm730_vm1, %v731_v16, %v4822_v1  ;;  %v999_v17 = vand.u32 31, %v997_v8  ;;  %3771 = vmatprep.subr.bf16.mxu1 %v3770_v23  ;;  %v3774_v11 = vpack.c.bf16 %v1094_v22, %v1093_v25  ;;  %v4858_v46 = vadd.s32 %v4530_v29, %v4540_v41 }
 0x1be   :  { %v4863_v28 = vsel %vm292_vm15, %v288_v58, 1326507024  ;;  %v733_v14 = vadd.s32 %v732_v43, %v728_v5  ;;  %v437_v9 = vsub.s32 4294967266, %v4838_v35  ;;  %vm3309_vm2 = vcmp.lt.s32.totalorder %v3308_v40, 0 }
 0x1bf   :  { %v4867_v24 = vmin.u32 %v531_v4, %v4818_v21  ;;  %v1000_v1 = vsub.s32 32, %v999_v17  ;;  %v4870_v51 = vsub.s32 %v4804_v18, %v840_v2  ;;  %v993_v29 = vor.u32 8388608, %v992_v45 }
 0x1c0   :  { %v734_v20 = vadd.s32 536870912, %v733_v14  ;;  %3773 = vmatpush3.bf16.msra.mxu1 %v3770_v23  ;;  %v3778_v41 = vpack.c.bf16 %v1096_v12, %v1095_v15  ;;  %v1002_v38 = vshll.u32 %v6719_v57, %v999_v17  ;;  %v1005_v58 = vshll.u32 %v6717_v59, %v999_v17 }
 0x1c1   :  { %v1003_v37 = vshrl.u32 %v6717_v59, %v1000_v1  ;;  %v6758_v25 = vmov 2131351028   ;;  %3775 = vmatprep.subr.bf16.mxu1 %v3774_v11  ;;  %v998_v4 = vshrl.u32 %v997_v8, 5  ;;  %v6760_v18 = vmov 2102212464  }
 0x1c2   :  { %v1006_v22 = vshrl.u32 %v6758_v25, %v1000_v1  ;;  %v4876_v16 = vshrl.u32 %v734_v20, 30  ;;  %v1008_v5 = vshll.u32 %v6758_v25, %v999_v17  ;;  %v1009_v2 = vshrl.u32 %v6760_v18, %v1000_v1 }
 0x1c3   :  { %v1004_v43 = vor.u32 %v1003_v37, %v1002_v38  ;;  %v1011_v23 = vshll.u32 %v6760_v18, %v999_v17  ;;  %v6761_v15 = vmov 920167782   ;;  %v438_v55 = vadd.s32 127, %v437_v9 }
 0x1c4   :  { %6759 = vst [vmem:[#allocation26_spill] sm:$0xff] %v4876_v16  ;;  %v1007_v45 = vor.u32 %v1006_v22, %v1005_v58  ;;  %v1012_v12 = vshrl.u32 %v6761_v15, %v1000_v1  ;;  %v4883_v48 = vsel %vm3309_vm2, 0, %v3308_v40  ;;  %v1010_v59 = vor.u32 %v1009_v2, %v1008_v5  ;;  %3777 = vmatpush3.bf16.msra.mxu1 %v3774_v11 }
 0x1c5   :  { %v4887_v20 = vadd.f32 %v4470_v32, %v4492_v52  ;;  %v533_v8 = vclz %v4867_v24  ;;  %v1014_v38 = vshll.u32 %v6761_v15, %v999_v17  ;;  %v6762_v37 = vmov 1326507024   ;;  %3779 = vmatprep.subr.bf16.mxu1 %v3778_v41 }
 0x1c6   :  { %v1013_v57 = vor.u32 %v1012_v12, %v1011_v23  ;;  %v1015_v58 = vshrl.u32 %v6762_v37, %v1000_v1  ;;  %v843_v22 = vsub.s32 0, %v4870_v51  ;;  %vm1017_vm3 = vcmp.lt.s32.totalorder %v998_v4, 1 }
 0x1c7   :  { %vm1020_vm4 = vcmp.lt.s32.totalorder %v998_v4, 4  ;;  %v1033_v40 = vshll.u32 %v993_v29, 8  ;;  %v736_v9 = vshll.u32 %v4876_v16, 30  ;;  %v1025_v32 = vsel %vm1017_vm3, %v1004_v43, %v1007_v45 }
 0x1c8   :  { %v1016_v5 = vor.u32 %v1015_v58, %v1014_v38  ;;  %v1022_v2 = vsel %vm1020_vm4, %v1010_v59, 2102212464  ;;  %v6763_v52 = vmov 683565275   ;;  %vm1019_vm5 = vcmp.lt.s32.totalorder %v998_v4, 3  ;;  %3781 = vmatpush3.bf16.msra.mxu1 %v3778_v41 }
 0x1c9   :  { %v1001_v11 = vshrl.u32 %v6763_v52, %v1000_v1  ;;  %v1026_v24 = vsel %vm1020_vm4, %v1013_v57, 920167782  ;;  %v884_v17 = vand.u32 2139095040, %v4887_v20  ;;  %vm1018_vm6 = vcmp.lt.s32.totalorder %v998_v4, 2  ;;  %v1100_v1 = vld [vmem:[#allocation7 + $0x58] sm:$0xff] }
 0x1ca   :  { %v1027_v23 = vsel %vm1019_vm5, %v1010_v59, %v1026_v24  ;;  %v1029_v12 = vsel %vm1017_vm3, %v1007_v45, %v1010_v59  ;;  %v1030_v27 = vsel %vm1020_vm4, %v1016_v5, 1326507024  ;;  %v1023_v16 = vsel %vm1019_vm5, %v1007_v45, %v1022_v2 }
 0x1cb   :  { %v1021_v29 = vsel %vm1017_vm3, %v1001_v11, %v1004_v43  ;;  %v1028_v38 = vsel %vm1018_vm6, %v1025_v32, %v1027_v23  ;;  %v1031_v58 = vsel %vm1019_vm5, %v1013_v57, %v1030_v27  ;;  %v4900_v6 = vsub.s32 %v733_v14, %v736_v9 }
 0x1cc   :  { %v1032_v61 = vsel %vm1018_vm6, %v1029_v12, %v1031_v58  ;;  %v4903_v41 = vmul.u32.u64.low %v1033_v40, %v1028_v38  ;;  %v4904_v56 = vmul.u32.u64.high %v1033_v40, %v1028_v38, %v4903_v41  ;;  %v6764_v59 = vsub.s32 32, %v4838_v35  ;;  %v1101_v12 = vld [vmem:[#allocation7 + $0x60] sm:$0xff]  ;;  %v1102_v38 = vld [vmem:[#allocation7 + $0x68] sm:$0xff]  ;;  %v1103_v58 = vld [vmem:[#allocation7 + $0x70] sm:$0xff] }
 0x1cd   :  { %v439_v43 = vshll.u32 %v438_v55, 23  ;;  %v4910_v45 = vmul.u32.u64.low %v1033_v40, %v1032_v61  ;;  %v4911_v2 = vmul.u32.u64.high %v1033_v40, %v1032_v61, %v4910_v45  ;;  %v1024_v57 = vsel %vm1018_vm6, %v1021_v29, %v1023_v16 }
 0x1ce   :  { %v435_v5 = vshrl.u32 %v4858_v46, %v6764_v59  ;;  %v885_v27 = vshrl.u32 %v884_v17, 23  ;;  %v3782_v32 = vpack.c.bf16 %v1098_v0, %v1097_v44  ;;  %v3786_v14 = vpack.c.bf16 %v1100_v1, %v1099_v7 }
 0x1cf   :  { %v434_v9 = vshll.u32 %v4660_v49, %v4838_v35  ;;  %v645_v11 = vsub.s32 4294967266, %v4883_v48  ;;  %v3304_v24 = vadd.s32 4294967294, %v533_v8  ;;  %v3315_v23 = vmin.u32 %v843_v22, %v4870_v51 }
 0x1d0   :  { %v739_v55 = vsub.s32 0, %v4900_v6  ;;  %v1043_v61 = vadd.s32 1, %v4904_v56  ;;  %v6737_v46 = vand.u32 2147483647, %v4887_v20  ;;  %v3318_v16 = vadd.s32 4294967169, %v885_v27  ;;  %3783 = vmatprep.subr.bf16.mxu1 %v3782_v32 }
 0x1d1   :  { %v4921_v44 = vor.u32 %v435_v5, %v434_v9  ;;  %v4923_v7 = vor.u32 4788187, %v439_v43  ;;  %v1040_v49 = vmul.u32 %v1033_v40, %v1024_v57  ;;  %vm1042_vm7 = vc.u32 %v4911_v2, %v4903_v41  ;;  %3785 = vmatpush3.bf16.msra.mxu1 %v3782_v32  ;;  %v1104_v40 = vld [vmem:[#allocation7 + $0x78] sm:$0xff] }
 0x1d2   :  { %v625_v0 = vadd.s32 %v4592_v36, %v4597_v30  ;;  %v1044_v35 = vsel %vm1042_vm7, %v1043_v61, %v4904_v56  ;;  %v891_v4 = vadd.s32 1, %v3318_v16  ;;  %3787 = vmatprep.subr.bf16.mxu1 %v3786_v14  ;;  %v3790_v8 = vpack.c.bf16 %v1102_v38, %v1101_v12 }
 0x1d3   :  { %v641_v22 = vsub.s32 32, %v4883_v48  ;;  %v4931_v17 = vadd.s32 127, %v645_v11  ;;  %vm3305_vm8 = vcmp.lt.s32.totalorder %v3304_v24, 0  ;;  %v1045_v29 = vadd.s32 %v1044_v35, %v1040_v49 }
 0x1d4   :  { %v845_v1 = vclz %v3315_v23  ;;  %v4934_v59 = vmin.u32 %v739_v55, %v4900_v6  ;;  %v888_v36 = vand.u32 8388607, %v6737_v46  ;;  %vm892_vm9 = vcmp.gt.s32.totalorder %v891_v4, 0 }
 0x1d5   :  { %v1046_v5 = vadd.s32 536870912, %v1045_v29  ;;  %v893_v43 = vsel %vm892_vm9, %v891_v4, 0  ;;  %3789 = vmatpush3.bf16.msra.mxu1 %v3786_v14  ;;  %v4944_v57 = vadd.s32 %v4676_v62, %v4682_v3  ;;  %v3794_v32 = vpack.c.bf16 %v1104_v40, %v1103_v58 }
 0x1d6   :  { %v895_v27 = vand.u32 31, %v893_v43  ;;  %3791 = vmatprep.subr.bf16.mxu1 %v3790_v8  ;;  %v4946_v9 = vshrl.u32 %v625_v0, %v641_v22  ;;  %v647_v11 = vshll.u32 %v4931_v17, 23  ;;  %v4950_v23 = vsel %vm3305_vm8, 0, %v3304_v24 }
 0x1d7   :  { %v4952_v12 = vshrl.u32 %v1046_v5, 30  ;;  %v4954_v14 = vadd.s32 4294967294, %v845_v1  ;;  %v741_v38 = vclz %v4934_v59  ;;  %v889_v55 = vor.u32 8388608, %v888_v36 }
 0x1d8   :  { %v896_v61 = vsub.s32 32, %v895_v27  ;;  %v894_v3 = vshrl.u32 %v893_v43, 5  ;;  %v898_v16 = vshll.u32 %v6763_v52, %v895_v27  ;;  %v6766_v49 = vmov 2475754826  }
 0x1d9   :  { %6765 = vst [vmem:[#allocation27_spill] sm:$0xff] %v4952_v12  ;;  %v1048_v62 = vshll.u32 %v4952_v12, 30  ;;  %v901_v0 = vshll.u32 %v6766_v49, %v895_v27  ;;  %3793 = vmatpush3.bf16.msra.mxu1 %v3790_v8  ;;  %v904_v4 = vshll.u32 %v6758_v25, %v895_v27  ;;  %v907_v58 = vshll.u32 %v6760_v18, %v895_v27 }
 0x1da   :  { %v899_v35 = vshrl.u32 %v6766_v49, %v896_v61  ;;  %v902_v24 = vshrl.u32 %v6758_v25, %v896_v61  ;;  %v905_v22 = vshrl.u32 %v6760_v18, %v896_v61  ;;  %3795 = vmatprep.subr.bf16.mxu1 %v3794_v32  ;;  %v908_v40 = vshrl.u32 %v6761_v15, %v896_v61 }
 0x1db   :  { %v4964_v17 = vsub.s32 %v1045_v29, %v1048_v62  ;;  %v910_v1 = vshll.u32 %v6761_v15, %v895_v27  ;;  %v911_v5 = vshrl.u32 %v6762_v37, %v896_v61  ;;  %v929_v45 = vshll.u32 %v889_v55, 8 }
 0x1dc   :  { %v900_v59 = vor.u32 %v899_v35, %v898_v16  ;;  %v903_v36 = vor.u32 %v902_v24, %v901_v0  ;;  %v906_v8 = vor.u32 %v905_v22, %v904_v4  ;;  %v909_v46 = vor.u32 %v908_v40, %v907_v58 }
 0x1dd   :  { %v1051_v43 = vsub.s32 0, %v4964_v17  ;;  %3797 = vmatpush3.bf16.msra.mxu1 %v3794_v32  ;;  %v274_v29 = vshll.u32 %v6763_v52, %v4699_v19  ;;  %v912_v62 = vor.u32 %v911_v5, %v910_v1  ;;  %v275_v56 = vshrl.u32 %v6766_v49, %v4721_v33 }
 0x1de   :  { %v277_v27 = vshll.u32 %v6766_v49, %v4699_v19  ;;  %v278_v16 = vshrl.u32 %v6758_v25, %v4721_v33  ;;  %v897_v0 = vshrl.u32 %v6763_v52, %v896_v61  ;;  %vm913_vm10 = vcmp.lt.s32.totalorder %v894_v3, 1 }
 0x1df   :  { %vm916_vm11 = vcmp.lt.s32.totalorder %v894_v3, 4  ;;  %v280_v32 = vshll.u32 %v6758_v25, %v4699_v19  ;;  %vm915_vm12 = vcmp.lt.s32.totalorder %v894_v3, 3  ;;  %v921_v35 = vsel %vm913_vm10, %v900_v59, %v903_v36 }
 0x1e0   :  { %v918_v55 = vsel %vm916_vm11, %v906_v8, 2102212464  ;;  %v922_v24 = vsel %vm916_vm11, %v909_v46, 920167782  ;;  %v3323_v4 = vmin.u32 %v1051_v43, %v4964_v17  ;;  %vm914_vm13 = vcmp.lt.s32.totalorder %v894_v3, 2 }
 0x1e1   :  { %v923_v22 = vsel %vm915_vm12, %v906_v8, %v922_v24  ;;  %v925_v58 = vsel %vm913_vm10, %v903_v36, %v906_v8  ;;  %v917_v40 = vsel %vm913_vm10, %v897_v0, %v900_v59  ;;  %v926_v5 = vsel %vm916_vm11, %v912_v62, 1326507024 }
 0x1e2   :  { %v924_v1 = vsel %vm914_vm13, %v921_v35, %v923_v22  ;;  %v281_v61 = vshrl.u32 %v6760_v18, %v4721_v33  ;;  %v919_v30 = vsel %vm915_vm12, %v903_v36, %v918_v55  ;;  %v927_v37 = vsel %vm915_vm12, %v909_v46, %v926_v5 }
 0x1e3   :  { %v4986_v15 = vmul.u32.u64.low %v929_v45, %v924_v1  ;;  %v4987_v19 = vmul.u32.u64.high %v929_v45, %v924_v1, %v4986_v15  ;;  %v928_v25 = vsel %vm914_vm13, %v925_v58, %v927_v37  ;;  %v276_v49 = vor.u32 %v275_v56, %v274_v29 }
 0x1e4   :  { %v279_v43 = vor.u32 %v278_v16, %v277_v27  ;;  %v282_v12 = vor.u32 %v281_v61, %v280_v32  ;;  %v4991_v24 = vor.u32 4788187, %v647_v11  ;;  %v541_v59 = vsub.s32 4294967266, %v4950_v23 }
 0x1e5   :  { %v4994_v8 = vmul.u32.u64.low %v929_v45, %v928_v25  ;;  %v4995_v62 = vmul.u32.u64.high %v929_v45, %v928_v25, %v4994_v8  ;;  %vm3317_vm14 = vcmp.lt.s32.totalorder %v4954_v14, 0  ;;  %v3312_v36 = vadd.s32 4294967294, %v741_v38 }
 0x1e6   :  { %v920_v46 = vsel %vm914_vm13, %v917_v40, %v919_v30  ;;  %v265_v0 = vor.u32 8388608, %v4725_v31  ;;  %v1053_v55 = vclz %v3323_v4  ;;  %v939_v37 = vadd.s32 1, %v4987_v19 }
 0x1e7   :  { %vm289_vm0 = vcmp.lt.s32.totalorder %v4757_v53, 1  ;;  %vm291_vm1 = vcmp.lt.s32.totalorder %v4757_v53, 3  ;;  %v542_v30 = vadd.s32 127, %v541_v59  ;;  %v848_v38 = vsel %vm3317_vm14, 0, %v4954_v14 }
 0x1e8   :  { %v297_v56 = vsel %vm289_vm0, %v276_v49, %v279_v43  ;;  %v299_v25 = vsel %vm291_vm1, %v282_v12, %v4853_v63  ;;  %v301_v11 = vsel %vm289_vm0, %v279_v43, %v282_v12  ;;  %v303_v31 = vsel %vm291_vm1, %v4832_v54, %v4863_v28 }
 0x1e9   :  { %v936_v3 = vmul.u32 %v929_v45, %v920_v46  ;;  %vm938_vm2 = vc.u32 %v4995_v62, %v4986_v15  ;;  %vm3313_vm3 = vcmp.lt.s32.totalorder %v3312_v36, 0  ;;  %vm290_vm4 = vcmp.lt.s32.totalorder %v4757_v53, 2 }
 0x1ea   :  { %v940_v29 = vsel %vm938_vm2, %v939_v37, %v4987_v19  ;;  %v294_v63 = vsel %vm292_vm15, %v282_v12, 2102212464  ;;  %v273_v16 = vshrl.u32 %v6763_v52, %v4721_v33  ;;  %v300_v54 = vsel %vm290_vm4, %v297_v56, %v299_v25 }
 0x1eb   :  { %v941_v27 = vadd.s32 %v940_v29, %v936_v3  ;;  %v304_v28 = vsel %vm290_vm4, %v301_v11, %v303_v31  ;;  %v537_v45 = vsub.s32 32, %v4950_v23  ;;  %v853_v14 = vsub.s32 4294967266, %v848_v38 }
 0x1ec   :  { %v3324_v32 = vadd.s32 4294967294, %v1053_v55  ;;  %v305_v35 = vshll.u32 %v265_v0, 8  ;;  %v5028_v4 = vsel %vm3313_vm3, 0, %v3312_v36  ;;  %v293_v12 = vsel %vm289_vm0, %v273_v16, %v276_v49 }
 0x1ed   :  { %v942_v22 = vadd.s32 536870912, %v941_v27  ;;  %v295_v33 = vsel %vm291_vm1, %v279_v43, %v294_v63  ;;  %v6767_v61 = vand.u32 2147483647, %v4923_v7  ;;  %v6768_v19 = vcvt.s32.f32 %v4921_v44 }
 0x1ee   :  { %v5034_v58 = vmul.u32.u64.low %v305_v35, %v304_v28  ;;  %v5035_v40 = vmul.u32.u64.high %v305_v35, %v304_v28, %v5034_v58  ;;  %v5037_v1 = vmul.u32.u64.low %v305_v35, %v300_v54  ;;  %v5038_v5 = vmul.u32.u64.high %v305_v35, %v300_v54, %v5037_v1 }
 0x1ef   :  { %v444_v59 = vmul.f32 %v6768_v19, %v6767_v61  ;;  %v6769_v8 = vshll.u32 %v4730_v10, %v4883_v48  ;;  %v543_v36 = vshll.u32 %v542_v30, 23  ;;  %v5049_v46 = vshrl.u32 %v942_v22, 30 }
 0x1f0   :  { %v849_v43 = vsub.s32 32, %v848_v38  ;;  %v854_v0 = vadd.s32 127, %v853_v14  ;;  %vm3325_vm15 = vcmp.lt.s32.totalorder %v3324_v32, 0  ;;  %v296_v55 = vsel %vm290_vm4, %v293_v12, %v295_v33 }
 0x1f1   :  { %v644_v49 = vor.u32 %v4946_v9, %v6769_v8  ;;  %v649_v37 = vand.u32 2147483647, %v4991_v24  ;;  %v539_v7 = vshrl.u32 %v4944_v57, %v537_v45  ;;  %v749_v44 = vsub.s32 4294967266, %v5028_v4 }
 0x1f2   :  { %v944_v56 = vshll.u32 %v5049_v46, 30  ;;  %v538_v10 = vshll.u32 %v4818_v21, %v4950_v23  ;;  %v833_v48 = vadd.s32 %v4748_v26, %v4754_v60  ;;  %vm314_vm5 = vc.u32 %v5035_v40, %v5037_v1 }
 0x1f3   :  { %v315_v53 = vadd.s32 1, %v5038_v5  ;;  %v544_v9 = vor.u32 4788187, %v543_v36  ;;  %v1056_v25 = vsel %vm3325_vm15, 0, %v3324_v32  ;;  %v312_v57 = vmul.u32 %v305_v35, %v296_v55 }
 0x1f4   :  { %v5064_v24 = vsub.s32 %v941_v27, %v944_v56  ;;  %v651_v11 = vcvt.s32.f32 %v644_v49  ;;  %v851_v31 = vshrl.u32 %v833_v48, %v849_v43  ;;  %v855_v30 = vshll.u32 %v854_v0, 23 }
 0x1f5   :  { %v316_v3 = vsel %vm314_vm5, %v315_v53, %v5038_v5  ;;  %v540_v29 = vor.u32 %v539_v7, %v538_v10  ;;  %v750_v21 = vadd.s32 127, %v749_v44  ;;  %v445_v60 = vxor.u32 2147483648, %v444_v59 }
 0x1f6   :  { %v947_v23 = vsub.s32 0, %v5064_v24  ;;  %v317_v26 = vadd.s32 %v316_v3, %v312_v57  ;;  %v850_v63 = vshll.u32 %v4870_v51, %v848_v38  ;;  %v1061_v16 = vsub.s32 4294967266, %v1056_v25 }
 0x1f7   :  { %v652_v54 = vmul.f32 %v651_v11, %v649_v37  ;;  %v545_v28 = vand.u32 2147483647, %v544_v9  ;;  %vm363_vm6 = vcmp.lt.s32.totalorder %v4473_v34, 0  ;;  %v856_v32 = vor.u32 4788187, %v855_v30 }
 0x1f8   :  { %v3319_v27 = vmin.u32 %v947_v23, %v5064_v24  ;;  %v318_v45 = vadd.s32 536870912, %v317_v26  ;;  %v852_v14 = vor.u32 %v851_v31, %v850_v63  ;;  %v745_v35 = vsub.s32 32, %v5028_v4 }
 0x1f9   :  { %v547_v22 = vcvt.s32.f32 %v540_v29  ;;  %v751_v12 = vshll.u32 %v750_v21, 23  ;;  %v446_v51 = vsel %vm363_vm6, %v445_v60, %v444_v59  ;;  %v729_v38 = vadd.s32 %v4821_v42, %v4828_v50 }
 0x1fa   :  { %v949_v33 = vclz %v3319_v27  ;;  %v5072_v58 = vshrl.u32 %v318_v45, 30  ;;  %v1057_v5 = vsub.s32 32, %v1056_v25  ;;  %v1062_v61 = vadd.s32 127, %v1061_v16  ;;  %v6773_v27 = vld [vmem:[#allocation20_spill] sm:$0xff] }
 0x1fb   :  { %vm571_vm7 = vcmp.lt.s32.totalorder %v4479_v39, 0  ;;  %v653_v19 = vxor.u32 2147483648, %v652_v54  ;;  %v548_v8 = vmul.f32 %v547_v22, %v545_v28  ;;  %v857_v43 = vand.u32 2147483647, %v856_v32 }
 0x1fc   :  { %v3320_v49 = vadd.s32 4294967294, %v949_v33  ;;  %v320_v36 = vshll.u32 %v5072_v58, 30  ;;  %v859_v0 = vcvt.s32.f32 %v852_v14  ;;  %v747_v55 = vshrl.u32 %v729_v38, %v745_v35  ;;  %v6774_v14 = vld [vmem:[#allocation21_spill] sm:$0xff] }
 0x1fd   :  { %v1041_v37 = vadd.s32 %v4903_v41, %v4911_v2  ;;  %v746_v59 = vshll.u32 %v4900_v6, %v5028_v4  ;;  %v752_v7 = vor.u32 4788187, %v751_v12  ;;  %v1063_v44 = vshll.u32 %v1062_v61, 23 }
 0x1fe   :  { %vm3321_vm8 = vcmp.lt.s32.totalorder %v3320_v49, 0  ;;  %v5084_v42 = vsub.s32 %v317_v26, %v320_v36  ;;  %v937_v56 = vadd.s32 %v4986_v15, %v4995_v62  ;;  %v447_v57 = vsub.s32 4, %v4627_v13 }
 0x1ff   :  { %v1059_v50 = vshrl.u32 %v1041_v37, %v1057_v5  ;;  %v952_v10 = vsel %vm3321_vm8, 0, %v3320_v49  ;;  %v549_v41 = vxor.u32 2147483648, %v548_v8  ;;  %v860_v2 = vmul.f32 %v859_v0, %v857_v43 }
 0x200   :  { %v953_v48 = vsub.s32 32, %v952_v10  ;;  %v957_v53 = vsub.s32 4294967266, %v952_v10  ;;  %v323_v9 = vsub.s32 0, %v5084_v42  ;;  %v748_v11 = vor.u32 %v747_v55, %v746_v59 }
 0x201   :  { %v1058_v6 = vshll.u32 %v4964_v17, %v1056_v25  ;;  %v954_v4 = vshll.u32 %v5064_v24, %v952_v10  ;;  %v753_v29 = vand.u32 2147483647, %v752_v7  ;;  %v1064_v62 = vor.u32 4788187, %v1063_v44  ;;  %v6779_v10 = vld [vmem:[#allocation22_spill] sm:$0xff] }
 0x202   :  { %v955_v31 = vshrl.u32 %v937_v56, %v953_v48  ;;  %v958_v30 = vadd.s32 127, %v957_v53  ;;  %v3295_v3 = vmin.u32 %v323_v9, %v5084_v42  ;;  %v6770_v21 = vand.u32 2147483647, %v4473_v34  ;;  %v6780_v53 = vld [vmem:[#allocation23_spill] sm:$0xff] }
 0x203   :  { %v1060_v15 = vor.u32 %v1059_v50, %v1058_v6  ;;  %v448_v17 = vsel %vm363_vm6, %v447_v57, %v4627_v13  ;;  %v654_v25 = vsel %vm571_vm7, %v653_v19, %v652_v54  ;;  %vm467_vm10 = vcmp.lt.s32.totalorder %v4488_v47, 0  ;;  %v6778_v19 = vld [vmem:[#allocation24_spill] sm:$0xff] }
 0x204   :  { %vm5095_vm9 = vcmp.le.f32.partialorder %v6770_v21, 0.7853982  ;;  %v956_v26 = vor.u32 %v955_v31, %v954_v4  ;;  %v959_v60 = vshll.u32 %v958_v30, 23  ;;  %v325_v63 = vclz %v3295_v3 }
 0x205   :  { %v755_v24 = vcvt.s32.f32 %v748_v11  ;;  %v449_v16 = vsel %vm5095_vm9, %v4473_v34, %v446_v51  ;;  %v550_v28 = vsel %vm467_vm10, %v549_v41, %v548_v8  ;;  %vm779_vm11 = vcmp.lt.s32.totalorder %v6773_v27, 0 }
 0x206   :  { %v861_v45 = vxor.u32 2147483648, %v860_v2  ;;  %vm675_vm12 = vcmp.lt.s32.totalorder %v6774_v14, 0  ;;  %v960_v32 = vor.u32 4788187, %v959_v60  ;;  %v3296_v13 = vadd.s32 4294967294, %v325_v63 }
 0x207   :  { %v756_v35 = vmul.f32 %v755_v24, %v753_v29  ;;  %v1065_v22 = vand.u32 2147483647, %v1064_v62  ;;  %v1067_v54 = vcvt.s32.f32 %v1060_v15  ;;  %v450_v12 = vsel %vm5095_vm9, 0, %v448_v17 }
 0x208   :  { %v961_v33 = vand.u32 2147483647, %v960_v32  ;;  %v963_v38 = vcvt.s32.f32 %v956_v26  ;;  %vm3297_vm13 = vcmp.lt.s32.totalorder %v3296_v13, 0  ;;  %4021 = vcosq.f32 %v449_v16 }
 0x209   :  { %v328_v51 = vsel %vm3297_vm13, 0, %v3296_v13  ;;  %4023 = vsinq.f32 %v449_v16  ;;  %v6775_v5 = vand.u32 2147483647, %v4488_v47  ;;  %v551_v8 = vsub.s32 4, %v6778_v19 }
 0x20a   :  { %v964_v49 = vmul.f32 %v963_v38, %v961_v33  ;;  %v313_v36 = vadd.s32 %v5037_v1, %v5035_v40  ;;  %v329_v43 = vsub.s32 32, %v328_v51  ;;  %v333_v0 = vsub.s32 4294967266, %v328_v51  ;;  %v6781_v40 = vld [vmem:[#allocation19_spill] sm:$0xff] }
 0x20b   :  { %vm5116_vm14 = vcmp.le.f32.partialorder %v6775_v5, 0.7853982  ;;  %v757_v55 = vxor.u32 2147483648, %v756_v35  ;;  %v1068_v37 = vmul.f32 %v1067_v54, %v1065_v22  ;;  %v454_v59 = vadd.s32 3, %v450_v12  ;;  %v6794_v54 = vld [vmem:[#allocation26_spill] sm:$0xff] }
 0x20c   :  { %v553_v7 = vsel %vm5116_vm14, %v4488_v47, %v550_v28  ;;  %v330_v50 = vshll.u32 %v5084_v42, %v328_v51  ;;  %v331_v44 = vshrl.u32 %v313_v36, %v329_v43  ;;  %v334_v56 = vadd.s32 127, %v333_v0 }
 0x20d   :  { %v655_v48 = vsub.s32 4, %v6779_v10  ;;  %vm987_vm0 = vcmp.lt.s32.totalorder %v6780_v53, 0  ;;  %vm883_vm1 = vcmp.lt.s32.totalorder %v4887_v20, 0  ;;  %vm259_vm2 = vcmp.lt.s32.totalorder %v6781_v40, 0 }
 0x20e   :  { %v552_v1 = vsel %vm467_vm10, %v551_v8, %v6778_v19  ;;  %v6782_v9 = vand.u32 2147483647, %v4479_v39  ;;  %v965_v42 = vxor.u32 2147483648, %v964_v49  ;;  %v332_v41 = vor.u32 %v331_v44, %v330_v50 }
 0x20f   :  { %v335_v11 = vshll.u32 %v334_v56, 23  ;;  %v862_v4 = vsel %vm779_vm11, %v861_v45, %v860_v2  ;;  %v758_v31 = vsel %vm675_vm12, %v757_v55, %v756_v35  ;;  %v1069_v30 = vxor.u32 2147483648, %v1068_v37 }
 0x210   :  { %vm5136_vm3 = vcmp.le.f32.partialorder %v6782_v9, 0.7853982  ;;  %4025 = vcosq.f32 %v553_v7  ;;  %v6785_v3 = vand.u32 2147483647, %v6781_v40  ;;  %v455_v62 = vand.u32 3, %v454_v59 }
 0x211   :  { %v657_v6 = vsel %vm5136_vm3, %v4479_v39, %v654_v25  ;;  %v336_v15 = vor.u32 4788187, %v335_v11  ;;  %4027 = vsinq.f32 %v553_v7  ;;  %v656_v21 = vsel %vm571_vm7, %v655_v48, %v6779_v10 }
 0x212   :  { %vm5149_vm4 = vcmp.le.f32.partialorder %v6785_v3, 0.7853982  ;;  %v343_v2 = vsub.s32 4, %v5072_v58  ;;  %v554_v23 = vsel %vm5116_vm14, 0, %v552_v1  ;;  %4029 = vcosq.f32 %v657_v6  ;;  %v4022_v63 = vpop.eup %4021 }
 0x213   :  { %v6788_v26 = vand.u32 2147483647, %v6774_v14  ;;  %v966_v17 = vsel %vm883_vm1, %v965_v42, %v964_v49  ;;  %v337_v25 = vand.u32 2147483647, %v336_v15  ;;  %v339_v24 = vcvt.s32.f32 %v332_v41  ;;  %v4024_v28 = vpop.eup %4023 }
 0x214   :  { %v1070_v45 = vsel %vm987_vm0, %v1069_v30, %v1068_v37  ;;  %v658_v32 = vsel %vm5136_vm3, 0, %v656_v21  ;;  %4031 = vsinq.f32 %v657_v6  ;;  %v6791_v13 = vand.u32 2147483647, %v6773_v27  ;;  %v6798_v37 = vld [vmem:[#allocation25_spill] sm:$0xff] }
 0x215   :  { %vm5161_vm15 = vcmp.le.f32.partialorder %v6788_v26, 0.7853982  ;;  %v340_v22 = vmul.f32 %v339_v24, %v337_v25  ;;  %vm456_vm6 = vcmp.lt.s32.totalorder %v455_v62, 2  ;;  %v759_v12 = vsub.s32 4, %v6794_v54 }
 0x216   :  { %v761_v16 = vsel %vm5161_vm15, %v6774_v14, %v758_v31  ;;  %vm5176_vm5 = vcmp.le.f32.partialorder %v6791_v13, 0.7853982  ;;  %v6795_v38 = vand.u32 2147483647, %v4887_v20  ;;  %v461_v5 = vxor.u32 2147483648, %v4022_v63 }
 0x217   :  { %v865_v33 = vsel %vm5176_vm5, %v6773_v27, %v862_v4  ;;  %v558_v61 = vadd.s32 3, %v554_v23  ;;  %4033 = vcosq.f32 %v761_v16  ;;  %v341_v8 = vxor.u32 2147483648, %v340_v22  ;;  %v6802_v23 = vld [vmem:[#allocation27_spill] sm:$0xff] }
 0x218   :  { %vm5186_vm7 = vcmp.le.f32.partialorder %v6795_v38, 0.7853982  ;;  %v344_v49 = vsel %vm259_vm2, %v343_v2, %v5072_v58  ;;  %v458_v36 = vxor.u32 2147483648, %v4024_v28  ;;  %4035 = vsinq.f32 %v761_v16 }
 0x219   :  { %v969_v19 = vsel %vm5186_vm7, %v4887_v20, %v966_v17  ;;  %vm457_vm8 = vcmp.eq.s32.totalorder %v455_v62, 0  ;;  %vm460_vm9 = vcmp.eq.s32.totalorder %v455_v62, 2  ;;  %v662_v43 = vadd.s32 3, %v658_v32 }
 0x21a   :  { %4037 = vcosq.f32 %v865_v33  ;;  %v342_v0 = vsel %vm259_vm2, %v341_v8, %v340_v22  ;;  %v760_v55 = vsel %vm675_vm12, %v759_v12, %v6794_v54  ;;  %v863_v59 = vsub.s32 4, %v6798_v37  ;;  %v4026_v7 = vpop.eup %4025 }
 0x21b   :  { %4039 = vcosq.f32 %v969_v19  ;;  %v345_v58 = vsel %vm5149_vm4, %v6781_v40, %v342_v0  ;;  %v346_v50 = vsel %vm5149_vm4, 0, %v344_v49  ;;  %v967_v44 = vsub.s32 4, %v5049_v46  ;;  %v4028_v56 = vpop.eup %4027 }
 0x21c   :  { %4041 = vsinq.f32 %v969_v19  ;;  %v459_v10 = vsel %vm457_vm8, %v4022_v63, %v458_v36  ;;  %v462_v48 = vsel %vm460_vm9, %v461_v5, %v4024_v28  ;;  %v559_v1 = vand.u32 3, %v558_v61  ;;  %v4030_v9 = vpop.eup %4029 }
 0x21d   :  { %4043 = vcosq.f32 %v345_v58  ;;  %v5208_v57 = vand.u32 3, %v662_v43  ;;  %v762_v42 = vsel %vm5161_vm15, 0, %v760_v55  ;;  %v6799_v41 = vand.u32 2147483647, %v6780_v53 }
 0x21e   :  { %4045 = vsinq.f32 %v345_v58  ;;  %v350_v6 = vadd.s32 3, %v346_v50  ;;  %v864_v4 = vsel %vm779_vm11, %v863_v59, %v6798_v37  ;;  %v4032_v30 = vpop.eup %4031  ;;  %v463_v3 = vsel %vm456_vm6, %v459_v10, %v462_v48 }
 0x21f   :  { %vm5214_vm10 = vcmp.le.f32.partialorder %v6799_v41, 0.7853982  ;;  %4047 = vsinq.f32 %v865_v33  ;;  %v562_v29 = vxor.u32 2147483648, %v4028_v56  ;;  %v565_v15 = vxor.u32 2147483648, %v4026_v7 }
 0x220   :  { %v1073_v31 = vsel %vm5214_vm10, %v6780_v53, %v1070_v45  ;;  %v968_v21 = vsel %vm883_vm1, %v967_v44, %v5049_v46  ;;  %vm453_vm12 = vweird.f32 %v4473_v34  ;;  %vm560_vm13 = vcmp.lt.s32.totalorder %v559_v1, 2 }
 0x221   :  { %v766_v2 = vadd.s32 3, %v762_v42  ;;  %v1071_v26 = vsub.s32 4, %v6802_v23  ;;  %v4034_v60 = vpop.eup %4033  ;;  %vm561_vm11 = vcmp.eq.s32.totalorder %v559_v1, 0  ;;  %vm564_vm14 = vcmp.eq.s32.totalorder %v559_v1, 2 }
 0x222   :  { %v866_v63 = vsel %vm5176_vm5, 0, %v864_v4  ;;  %4049 = vcosq.f32 %v1073_v31  ;;  %v4036_v62 = vpop.eup %4035  ;;  %v351_v17 = vand.u32 3, %v350_v6  ;;  %v464_v25 = vsel %vm453_vm12, nan, %v463_v3 }
 0x223   :  { %vm557_vm2 = vweird.f32 %v4488_v47  ;;  %v970_v46 = vsel %vm5186_vm7, 0, %v968_v21  ;;  %4051 = vsinq.f32 %v1073_v31  ;;  %vm349_vm1 = vweird.f32 %v6781_v40 }
 0x224   :  { %v5235_v34 = vpop.eup %4037  ;;  %v563_v24 = vsel %vm561_vm11, %v4026_v7, %v562_v29  ;;  %v566_v16 = vsel %vm564_vm14, %v565_v15, %v4028_v56  ;;  %vm664_vm3 = vcmp.lt.s32.totalorder %v5208_v57, 2  ;;  %v666_v28 = vxor.u32 2147483648, %v4032_v30 }
 0x225   :  { %v669_v45 = vxor.u32 2147483648, %v4030_v9  ;;  %v4040_v32 = vpop.eup %4039  ;;  %vm665_vm4 = vcmp.eq.s32.totalorder %v5208_v57, 0  ;;  %v767_v13 = vand.u32 3, %v766_v2  ;;  %v870_v35 = vadd.s32 3, %v866_v63 }
 0x226   :  { %v1072_v22 = vsel %vm987_vm0, %v1071_v26, %v6802_v23  ;;  %v4042_v54 = vpop.eup %4041  ;;  %vm668_vm15 = vcmp.eq.s32.totalorder %v5208_v57, 2  ;;  %v770_v12 = vxor.u32 2147483648, %v4036_v62  ;;  %v773_v33 = vxor.u32 2147483648, %v4034_v60 }
 0x227   :  { %v974_v38 = vadd.s32 3, %v970_v46  ;;  %v4044_v51 = vpop.eup %4043  ;;  %vm352_vm5 = vcmp.lt.s32.totalorder %v351_v17, 2  ;;  %vm353_vm6 = vcmp.eq.s32.totalorder %v351_v17, 0  ;;  %vm356_vm7 = vcmp.eq.s32.totalorder %v351_v17, 2 }
 0x228   :  { %v567_v5 = vsel %vm560_vm13, %v563_v24, %v566_v16  ;;  %v4046_v61 = vpop.eup %4045  ;;  %v357_v19 = vxor.u32 2147483648, %v4044_v51  ;;  %v667_v8 = vsel %vm665_vm4, %v4030_v9, %v666_v28  ;;  %v670_v49 = vsel %vm668_vm15, %v669_v45, %v4032_v30 }
 0x229   :  { %v1074_v36 = vsel %vm5214_vm10, 0, %v1072_v22  ;;  %v4048_v43 = vpop.eup %4047  ;;  %v354_v0 = vxor.u32 2147483648, %v4046_v61  ;;  %vm769_vm0 = vcmp.eq.s32.totalorder %v767_v13, 0  ;;  %vm772_vm8 = vcmp.eq.s32.totalorder %v767_v13, 2 }
 0x22a   :  { %v871_v55 = vand.u32 3, %v870_v35  ;;  %v358_v37 = vsel %vm356_vm7, %v357_v19, %v4046_v61  ;;  %v771_v59 = vsel %vm769_vm0, %v4034_v60, %v770_v12  ;;  %v774_v7 = vsel %vm772_vm8, %v773_v33, %v4036_v62 }
 0x22b   :  { %v975_v58 = vand.u32 3, %v974_v38  ;;  %v355_v50 = vsel %vm353_vm6, %v4044_v51, %v354_v0  ;;  %v978_v44 = vxor.u32 2147483648, %v4042_v54  ;;  %v981_v56 = vxor.u32 2147483648, %v4040_v32 }
 0x22c   :  { %v1078_v10 = vadd.s32 3, %v1074_v36  ;;  %v4050_v48 = vpop.eup %4049  ;;  %v359_v1 = vsel %vm352_vm5, %v355_v50, %v358_v37  ;;  %v568_v9 = vsel %vm557_vm2, nan, %v567_v5  ;;  %v874_v42 = vxor.u32 2147483648, %v4048_v43 }
 0x22d   :  { %v877_v41 = vxor.u32 2147483648, %v5235_v34  ;;  %v4052_v11 = vpop.eup %4051  ;;  %v360_v6 = vsel %vm349_vm1, nan, %v359_v1  ;;  %v671_v4 = vsel %vm664_vm3, %v667_v8, %v670_v49  ;;  %vm765_vm9 = vweird.f32 %v6774_v14 }
 0x22e   :  { %vm768_vm10 = vcmp.lt.s32.totalorder %v767_v13, 2  ;;  %3590 = vmatprep.mubr.f32.mxu1 %v360_v6  ;;  %vm873_vm12 = vcmp.eq.s32.totalorder %v871_v55, 0  ;;  %vm977_vm13 = vcmp.eq.s32.totalorder %v975_v58, 0  ;;  %vm980_vm11 = vcmp.eq.s32.totalorder %v975_v58, 2 }
 0x22f   :  { %v775_v31 = vsel %vm768_vm10, %v771_v59, %v774_v7  ;;  %3591 = vmatmul.mubr.f32.vlgmr.msra.gmra.mrb[0].mxu1 %v464_v25  ;;  %vm876_vm14 = vcmp.eq.s32.totalorder %v871_v55, 2  ;;  %v979_v47 = vsel %vm977_vm13, %v4040_v32, %v978_v44  ;;  %v982_v30 = vsel %vm980_vm11, %v981_v56, %v4042_v54  ;;  %v5269_v25 = vld [vmem:[%s6694_s4] ss:$0 sm:$0xff] }
 0x230   :  { %v1079_v3 = vand.u32 3, %v1078_v10  ;;  %3593 = vmatprep.mubr.f32.mxu1 %v568_v9  ;;  %v875_v40 = vsel %vm873_vm12, %v5235_v34, %v874_v42  ;;  %v878_v29 = vsel %vm876_vm14, %v877_v41, %v4048_v43  ;;  %v1082_v15 = vxor.u32 2147483648, %v4052_v11 }
 0x231   :  { %v1085_v57 = vxor.u32 2147483648, %v4050_v48  ;;  %vm661_vm2 = vweird.f32 %v4479_v39  ;;  %v776_v21 = vsel %vm765_vm9, nan, %v775_v31  ;;  %vm976_vm1 = vcmp.lt.s32.totalorder %v975_v58, 2 }
 0x232   :  { %v672_v2 = vsel %vm661_vm2, nan, %v671_v4  ;;  %vm872_vm3 = vcmp.lt.s32.totalorder %v871_v55, 2  ;;  %v983_v23 = vsel %vm976_vm1, %v979_v47, %v982_v30  ;;  %vm1081_vm4 = vcmp.eq.s32.totalorder %v1079_v3, 0 }
 0x233   :  { %3594 = vmatmul.mubr.f32.gmra.mrb[2].mxu1 %v672_v2  ;;  %v879_v26 = vsel %vm872_vm3, %v875_v40, %v878_v29  ;;  %vm1084_vm15 = vcmp.eq.s32.totalorder %v1079_v3, 2  ;;  %vm973_vm5 = vweird.f32 %v4887_v20  ;;  %v1083_v60 = vsel %vm1081_vm4, %v4050_v48, %v1082_v15 }
 0x234   :  { %3596 = vmatprep.mubr.f32.mxu1 %v776_v21  ;;  %v1086_v63 = vsel %vm1084_vm15, %v1085_v57, %v4052_v11  ;;  %vm869_vm6 = vweird.f32 %v6773_v27  ;;  %v984_v62 = vsel %vm973_vm5, nan, %v983_v23  ;;  %vm1080_vm7 = vcmp.lt.s32.totalorder %v1079_v3, 2 }
 0x235   :  { %v880_v39 = vsel %vm869_vm6, nan, %v879_v26  ;;  %v1087_v14 = vsel %vm1080_vm7, %v1083_v60, %v1086_v63  ;;  %vm1077_vm0 = vweird.f32 %v6780_v53  ;;  %v6803_v30 = vmov 2475754826  }
 0x236   :  { %v1088_v17 = vsel %vm1077_vm0, nan, %v1087_v14  ;;  %v6804_v29 = vmov 2131351028   ;;  %v6805_v21 = vmov 920167782  }
 0x237   :  { %3597 = vmatmul.mubr.f32.gmra.mrb[4].mxu1 %v880_v39  ;;  %v6806_v39 = vmov 1326507024  }
 0x238   :  { %3599 = vmatprep.mubr.f32.mxu1 %v984_v62 }
 0x23b   :  { %3600 = vmatmul.mubr.f32.gmra.mrb[6].mxu1 %v1088_v17 }
 0x302   :  { %v3592_v20 = vpop.f32.mrb[0].mxu1 }
 0x303   :  { %v5272_v46 = vadd.f32 %v3592_v20, %v5269_v25  ;;  %v1178_v27 = vpop.f32.mrb[1].mxu1 }
 0x304   :  { %v5275_v34 = vadd.f32 %v5269_v25, %v1178_v27 }
 0x305   :  { %v1321_v24 = vand.u32 2147483647, %v5272_v46  ;;  %v1324_v16 = vand.u32 2139095040, %v5272_v46 }
 0x306   :  { %v1217_v53 = vand.u32 2147483647, %v5275_v34  ;;  %v1220_v28 = vand.u32 2139095040, %v5275_v34  ;;  %v3595_v45 = vpop.f32.mrb[2].mxu1 }
 0x307   :  { %v1325_v32 = vshrl.u32 %v1324_v16, 23  ;;  %v1328_v13 = vand.u32 8388607, %v1321_v24  ;;  %v5284_v35 = vadd.f32 %v3595_v45, %v5269_v25  ;;  %v1188_v22 = vpop.f32.mrb[3].mxu1 }
 0x308   :  { %v1221_v54 = vshrl.u32 %v1220_v28, 23  ;;  %v1224_v12 = vand.u32 8388607, %v1217_v53  ;;  %v5289_v33 = vadd.f32 %v5269_v25, %v1188_v22 }
 0x309   :  { %v3331_v38 = vadd.s32 4294967169, %v1325_v32  ;;  %v1529_v51 = vand.u32 2147483647, %v5284_v35  ;;  %v1329_v5 = vor.u32 8388608, %v1328_v13  ;;  %v1532_v19 = vand.u32 2139095040, %v5284_v35 }
 0x30a   :  { %v3327_v61 = vadd.s32 4294967169, %v1221_v54  ;;  %v5293_v8 = vpop.f32.mrb[4].mxu1  ;;  %v1225_v36 = vor.u32 8388608, %v1224_v12  ;;  %v1428_v59 = vand.u32 2139095040, %v5289_v33  ;;  %v1425_v7 = vand.u32 2147483647, %v5289_v33 }
 0x30b   :  { %v1331_v49 = vadd.s32 1, %v3331_v38  ;;  %v5295_v43 = vpop.f32.mrb[5].mxu1  ;;  %v1533_v55 = vshrl.u32 %v1532_v19, 23  ;;  %v5299_v37 = vand.u32 8388607, %v1529_v51  ;;  %v5303_v50 = vshll.u32 %v1329_v5, 8 }
 0x30c   :  { %v1227_v0 = vadd.s32 1, %v3327_v61  ;;  %v5307_v9 = vshll.u32 %v1225_v36, 8  ;;  %v5314_v4 = vshrl.u32 %v1428_v59, 23 }
 0x30d   :  { %vm1332_vm8 = vcmp.gt.s32.totalorder %v1331_v49, 0  ;;  %v3339_v44 = vadd.s32 4294967169, %v1533_v55  ;;  %v1537_v6 = vor.u32 8388608, %v5299_v37 }
 0x30e   :  { %v1333_v58 = vsel %vm1332_vm8, %v1331_v49, 0  ;;  %vm1228_vm9 = vcmp.gt.s32.totalorder %v1227_v0, 0  ;;  %v5305_v56 = vpop.f32.mrb[6].mxu1 }
 0x30f   :  { %v1334_v10 = vshrl.u32 %v1333_v58, 5  ;;  %v1335_v48 = vand.u32 31, %v1333_v58  ;;  %v1229_v1 = vsel %vm1228_vm9, %v1227_v0, 0  ;;  %v5309_v42 = vpop.f32.mrb[7].mxu1  ;;  %v5318_v40 = vadd.s32 1, %v3339_v44 }
 0x310   :  { %v5311_v41 = vshrl.u32 %v1229_v1, 5  ;;  %v1231_v11 = vand.u32 31, %v1229_v1 }
 0x311   :  { %v1336_v31 = vsub.s32 32, %v1335_v48  ;;  %v1338_v47 = vshll.u32 %v6763_v52, %v1335_v48  ;;  %v1341_v3 = vshll.u32 %v6803_v30, %v1335_v48  ;;  %v1344_v15 = vshll.u32 %v6804_v29, %v1335_v48 }
 0x312   :  { %v1347_v57 = vshll.u32 %v6760_v18, %v1335_v48  ;;  %v1350_v2 = vshll.u32 %v6805_v21, %v1335_v48  ;;  %vm1353_vm10 = vcmp.lt.s32.totalorder %v1334_v10, 1  ;;  %vm1354_vm12 = vcmp.lt.s32.totalorder %v1334_v10, 2 }
 0x313   :  { %v1339_v23 = vshrl.u32 %v6803_v30, %v1336_v31  ;;  %v1342_v26 = vshrl.u32 %v6804_v29, %v1336_v31  ;;  %v1345_v60 = vshrl.u32 %v6760_v18, %v1336_v31  ;;  %v1337_v63 = vshrl.u32 %v6763_v52, %v1336_v31 }
 0x314   :  { %v1348_v62 = vshrl.u32 %v6805_v21, %v1336_v31  ;;  %v1351_v14 = vshrl.u32 %v6806_v39, %v1336_v31  ;;  %vm1355_vm13 = vcmp.lt.s32.totalorder %v1334_v10, 3  ;;  %v1232_v16 = vsub.s32 32, %v1231_v11 }
 0x315   :  { %v1340_v17 = vor.u32 %v1339_v23, %v1338_v47  ;;  %v1343_v20 = vor.u32 %v1342_v26, %v1341_v3  ;;  %v1346_v27 = vor.u32 %v1345_v60, %v1344_v15  ;;  %vm1356_vm11 = vcmp.lt.s32.totalorder %v1334_v10, 4 }
 0x316   :  { %v1349_v28 = vor.u32 %v1348_v62, %v1347_v57  ;;  %v1352_v45 = vor.u32 %v1351_v14, %v1350_v2  ;;  %v1234_v32 = vshll.u32 %v6763_v52, %v1231_v11  ;;  %v1237_v19 = vshll.u32 %v6803_v30, %v1231_v11 }
 0x317   :  { %v1357_v13 = vsel %vm1353_vm10, %v1337_v63, %v1340_v17  ;;  %v1358_v22 = vsel %vm1356_vm11, %v1346_v27, 2102212464  ;;  %v1361_v54 = vsel %vm1353_vm10, %v1340_v17, %v1343_v20  ;;  %v1365_v12 = vsel %vm1353_vm10, %v1343_v20, %v1346_v27 }
 0x318   :  { %v1359_v38 = vsel %vm1355_vm13, %v1343_v20, %v1358_v22  ;;  %v1362_v5 = vsel %vm1356_vm11, %v1349_v28, 920167782  ;;  %v1366_v61 = vsel %vm1356_vm11, %v1352_v45, 1326507024  ;;  %v1233_v0 = vshrl.u32 %v6763_v52, %v1232_v16 }
 0x319   :  { %v1363_v49 = vsel %vm1355_vm13, %v1346_v27, %v1362_v5  ;;  %v1367_v36 = vsel %vm1355_vm13, %v1349_v28, %v1366_v61  ;;  %v1235_v55 = vshrl.u32 %v6803_v30, %v1232_v16  ;;  %v1360_v59 = vsel %vm1354_vm12, %v1357_v13, %v1359_v38 }
 0x31a   :  { %v1364_v58 = vsel %vm1354_vm12, %v1361_v54, %v1363_v49  ;;  %v1368_v44 = vsel %vm1354_vm12, %v1365_v12, %v1367_v36  ;;  %v1238_v48 = vshrl.u32 %v6804_v29, %v1232_v16  ;;  %v1240_v2 = vshll.u32 %v6804_v29, %v1231_v11 }
 0x31b   :  { %v5344_v1 = vmul.u32.u64.low %v5303_v50, %v1368_v44  ;;  %v5345_v31 = vmul.u32.u64.high %v5303_v50, %v1368_v44, %v5344_v1  ;;  %v5348_v47 = vmul.u32.u64.low %v5303_v50, %v1364_v58  ;;  %v5349_v3 = vmul.u32.u64.high %v5303_v50, %v1364_v58, %v5348_v47 }
 0x31c   :  { %v1236_v15 = vor.u32 %v1235_v55, %v1234_v32  ;;  %v1239_v57 = vor.u32 %v1238_v48, %v1237_v19  ;;  %v1241_v23 = vshrl.u32 %v6760_v18, %v1232_v16  ;;  %v1376_v10 = vmul.u32 %v5303_v50, %v1360_v59 }
 0x31d   :  { %v1243_v26 = vshll.u32 %v6760_v18, %v1231_v11  ;;  %v1244_v60 = vshrl.u32 %v6805_v21, %v1232_v16  ;;  %v1247_v63 = vshrl.u32 %v6806_v39, %v1232_v16  ;;  %v1246_v14 = vshll.u32 %v6805_v21, %v1231_v11 }
 0x31e   :  { %v1242_v62 = vor.u32 %v1241_v23, %v1240_v2  ;;  %vm1249_vm14 = vcmp.lt.s32.totalorder %v5311_v41, 1  ;;  %vm1250_vm2 = vcmp.lt.s32.totalorder %v5311_v41, 2  ;;  %vm1378_vm1 = vc.u32 %v5345_v31, %v5348_v47 }
 0x31f   :  { %v1379_v17 = vadd.s32 1, %v5349_v3  ;;  %v1245_v20 = vor.u32 %v1244_v60, %v1243_v26  ;;  %vm1251_vm3 = vcmp.lt.s32.totalorder %v5311_v41, 3  ;;  %v1248_v50 = vor.u32 %v1247_v63, %v1246_v14 }
 0x320   :  { %vm1252_vm4 = vcmp.lt.s32.totalorder %v5311_v41, 4  ;;  %v1253_v27 = vsel %vm1249_vm14, %v1233_v0, %v1236_v15  ;;  %v1257_v16 = vsel %vm1249_vm14, %v1236_v15, %v1239_v57  ;;  %v1261_v32 = vsel %vm1249_vm14, %v1239_v57, %v1242_v62 }
 0x321   :  { %v1380_v28 = vsel %vm1378_vm1, %v1379_v17, %v5349_v3  ;;  %v1254_v11 = vsel %vm1252_vm4, %v1242_v62, 2102212464  ;;  %v1258_v45 = vsel %vm1252_vm4, %v1245_v20, 920167782  ;;  %v1262_v12 = vsel %vm1252_vm4, %v1248_v50, 1326507024 }
 0x322   :  { %v1381_v13 = vadd.s32 %v1380_v28, %v1376_v10  ;;  %v1255_v22 = vsel %vm1251_vm3, %v1239_v57, %v1254_v11  ;;  %v1259_v54 = vsel %vm1251_vm3, %v1242_v62, %v1258_v45  ;;  %v1263_v61 = vsel %vm1251_vm3, %v1245_v20, %v1262_v12 }
 0x323   :  { %v1256_v38 = vsel %vm1250_vm2, %v1253_v27, %v1255_v22  ;;  %v1260_v5 = vsel %vm1250_vm2, %v1257_v16, %v1259_v54  ;;  %vm1540_vm15 = vcmp.gt.s32.totalorder %v5318_v40, 0  ;;  %v1264_v49 = vsel %vm1250_vm2, %v1261_v32, %v1263_v61 }
 0x324   :  { %v1382_v19 = vadd.s32 536870912, %v1381_v13  ;;  %v5375_v36 = vmul.u32.u64.low %v5307_v9, %v1260_v5  ;;  %v5376_v0 = vmul.u32.u64.high %v5307_v9, %v1260_v5, %v5375_v36  ;;  %v1541_v58 = vsel %vm1540_vm15, %v5318_v40, 0 }
 0x325   :  { %v5380_v55 = vmul.u32.u64.low %v5307_v9, %v1264_v49  ;;  %v5381_v59 = vmul.u32.u64.high %v5307_v9, %v1264_v49, %v5380_v55  ;;  %v3335_v44 = vadd.s32 4294967169, %v5314_v4  ;;  %v1543_v1 = vand.u32 31, %v1541_v58 }
 0x326   :  { %v5385_v48 = vshrl.u32 %v1382_v19, 30  ;;  %v1272_v3 = vmul.u32 %v5307_v9, %v1256_v38  ;;  %v5390_v41 = vshll.u32 %v1537_v6, 8  ;;  %v5394_v15 = vand.u32 8388607, %v1425_v7 }
 0x327   :  { %v1275_v2 = vadd.s32 1, %v5376_v0  ;;  %v1542_v40 = vshrl.u32 %v1541_v58, 5  ;;  %v1544_v23 = vsub.s32 32, %v1543_v1  ;;  %vm1274_vm5 = vc.u32 %v5381_v59, %v5375_v36 }
 0x328   :  { %v1384_v57 = vshll.u32 %v5385_v48, 30  ;;  %v1546_v4 = vshll.u32 %v6763_v52, %v1543_v1  ;;  %v1549_v9 = vshll.u32 %v6803_v30, %v1543_v1  ;;  %v1435_v37 = vadd.s32 1, %v3335_v44 }
 0x329   :  { %v1276_v10 = vsel %vm1274_vm5, %v1275_v2, %v5376_v0  ;;  %v1547_v26 = vshrl.u32 %v6803_v30, %v1544_v23  ;;  %v1552_v60 = vshll.u32 %v6804_v29, %v1543_v1  ;;  %v1550_v62 = vshrl.u32 %v6804_v29, %v1544_v23 }
 0x32a   :  { %v5402_v6 = vsub.s32 %v1381_v13, %v1384_v57  ;;  %v1277_v63 = vadd.s32 %v1276_v10, %v1272_v3  ;;  %v1553_v14 = vshrl.u32 %v6760_v18, %v1544_v23  ;;  %v1555_v17 = vshll.u32 %v6760_v18, %v1543_v1 }
 0x32b   :  { %v1548_v50 = vor.u32 %v1547_v26, %v1546_v4  ;;  %v1556_v27 = vshrl.u32 %v6805_v21, %v1544_v23  ;;  %v1558_v16 = vshll.u32 %v6805_v21, %v1543_v1  ;;  %v1551_v11 = vor.u32 %v1550_v62, %v1549_v9 }
 0x32c   :  { %v1387_v20 = vsub.s32 0, %v5402_v6  ;;  %v1278_v28 = vadd.s32 536870912, %v1277_v63  ;;  %v1554_v45 = vor.u32 %v1553_v14, %v1552_v60  ;;  %v1559_v32 = vshrl.u32 %v6806_v39, %v1544_v23 }
 0x32d   :  { %v1545_v22 = vshrl.u32 %v6763_v52, %v1544_v23  ;;  %v1557_v54 = vor.u32 %v1556_v27, %v1555_v17  ;;  %vm1561_vm6 = vcmp.lt.s32.totalorder %v1542_v40, 1  ;;  %vm1563_vm7 = vcmp.lt.s32.totalorder %v1542_v40, 3 }
 0x32e   :  { %v3332_v13 = vmin.u32 %v1387_v20, %v5402_v6  ;;  %v5416_v12 = vshrl.u32 %v1278_v28, 30  ;;  %v1560_v38 = vor.u32 %v1559_v32, %v1558_v16  ;;  %vm1564_vm0 = vcmp.lt.s32.totalorder %v1542_v40, 4 }
 0x32f   :  { %v1565_v61 = vsel %vm1561_vm6, %v1545_v22, %v1548_v50  ;;  %v1566_v19 = vsel %vm1564_vm0, %v1554_v45, 2102212464  ;;  %v1569_v49 = vsel %vm1561_vm6, %v1548_v50, %v1551_v11  ;;  %v1570_v58 = vsel %vm1564_vm0, %v1557_v54, 920167782 }
 0x330   :  { %v1389_v5 = vclz %v3332_v13  ;;  %v1280_v0 = vshll.u32 %v5416_v12, 30  ;;  %v1567_v55 = vsel %vm1563_vm7, %v1551_v11, %v1566_v19  ;;  %v1573_v44 = vsel %vm1561_vm6, %v1551_v11, %v1554_v45 }
 0x331   :  { %vm1562_vm8 = vcmp.lt.s32.totalorder %v1542_v40, 2  ;;  %v1571_v3 = vsel %vm1563_vm7, %v1554_v45, %v1570_v58  ;;  %v1574_v57 = vsel %vm1564_vm0, %v1560_v38, 1326507024  ;;  %vm1436_vm10 = vcmp.gt.s32.totalorder %v1435_v37, 0 }
 0x332   :  { %v3333_v1 = vadd.s32 4294967294, %v1389_v5  ;;  %v5421_v2 = vsub.s32 %v1277_v63, %v1280_v0  ;;  %v1568_v23 = vsel %vm1562_vm8, %v1565_v61, %v1567_v55  ;;  %v1572_v4 = vsel %vm1562_vm8, %v1569_v49, %v1571_v3 }
 0x333   :  { %v1575_v9 = vsel %vm1563_vm7, %v1557_v54, %v1574_v57  ;;  %v5425_v26 = vmul.u32.u64.low %v5390_v41, %v1572_v4  ;;  %v5426_v60 = vmul.u32.u64.high %v5390_v41, %v1572_v4, %v5425_v26  ;;  %v1377_v63 = vadd.s32 %v5348_v47, %v5345_v31 }
 0x334   :  { %vm3334_vm9 = vcmp.lt.s32.totalorder %v3333_v1, 0  ;;  %v1576_v10 = vsel %vm1562_vm8, %v1573_v44, %v1575_v9  ;;  %v1283_v14 = vsub.s32 0, %v5421_v2  ;;  %v1584_v16 = vmul.u32 %v5390_v41, %v1568_v23 }
 0x335   :  { %v1392_v62 = vsel %vm3334_vm9, 0, %v3333_v1  ;;  %v5431_v17 = vmul.u32.u64.low %v5390_v41, %v1576_v10  ;;  %v5432_v20 = vmul.u32.u64.high %v5390_v41, %v1576_v10, %v5431_v17  ;;  %v1437_v28 = vsel %vm1436_vm10, %v1435_v37, 0 }
 0x336   :  { %v1393_v50 = vsub.s32 32, %v1392_v62  ;;  %v1397_v40 = vsub.s32 4294967266, %v1392_v62  ;;  %v3328_v27 = vmin.u32 %v1283_v14, %v5421_v2  ;;  %v5440_v11 = vadd.f32 %v5293_v8, %v5269_v25 }
 0x337   :  { %v1394_v45 = vshll.u32 %v5402_v6, %v1392_v62  ;;  %v1587_v22 = vadd.s32 1, %v5426_v60  ;;  %vm1586_vm12 = vc.u32 %v5432_v20, %v5425_v26  ;;  %v5446_v31 = vshrl.u32 %v1437_v28, 5 }
 0x338   :  { %v1395_v32 = vshrl.u32 %v1377_v63, %v1393_v50  ;;  %v1398_v13 = vadd.s32 127, %v1397_v40  ;;  %v1285_v54 = vclz %v3328_v27  ;;  %v1439_v47 = vand.u32 31, %v1437_v28 }
 0x339   :  { %v1588_v37 = vsel %vm1586_vm12, %v1587_v22, %v5426_v60  ;;  %v1433_v8 = vor.u32 8388608, %v5394_v15  ;;  %vm1323_vm13 = vcmp.lt.s32.totalorder %v5272_v46, 0  ;;  %v6746_v19 = vand.u32 2147483647, %v5440_v11 }
 0x33a   :  { %v1396_v38 = vor.u32 %v1395_v32, %v1394_v45  ;;  %v1399_v41 = vshll.u32 %v1398_v13, 23  ;;  %v3329_v6 = vadd.s32 4294967294, %v1285_v54  ;;  %v1589_v5 = vadd.s32 %v1588_v37, %v1584_v16 }
 0x33b   :  { %v1440_v61 = vsub.s32 32, %v1439_v47  ;;  %vm5454_vm11 = vcmp.le.f32.partialorder %v1321_v24, 0.7853982  ;;  %v1273_v55 = vadd.s32 %v5375_v36, %v5381_v59  ;;  %v1442_v58 = vshll.u32 %v6763_v52, %v1439_v47 }
 0x33c   :  { %v1400_v0 = vor.u32 4788187, %v1399_v41  ;;  %v1740_v44 = vand.u32 2139095040, %v5440_v11  ;;  %v1403_v1 = vcvt.s32.f32 %v1396_v38  ;;  %vm3330_vm14 = vcmp.lt.s32.totalorder %v3329_v6, 0 }
 0x33d   :  { %v1590_v3 = vadd.s32 536870912, %v1589_v5  ;;  %v1443_v57 = vshrl.u32 %v6803_v30, %v1440_v61  ;;  %vm1457_vm2 = vcmp.lt.s32.totalorder %v5446_v31, 1  ;;  %v1288_v24 = vsel %vm3330_vm14, 0, %v3329_v6 }
 0x33e   :  { %v1401_v23 = vand.u32 2147483647, %v1400_v0  ;;  %v1445_v4 = vshll.u32 %v6803_v30, %v1439_v47  ;;  %v1446_v9 = vshrl.u32 %v6804_v29, %v1440_v61  ;;  %v1289_v10 = vsub.s32 32, %v1288_v24 }
 0x33f   :  { %v1293_v60 = vsub.s32 4294967266, %v1288_v24  ;;  %v5466_v36 = vshrl.u32 %v1590_v3, 30  ;;  %v1449_v59 = vshrl.u32 %v6760_v18, %v1440_v61  ;;  %v1290_v14 = vshll.u32 %v5421_v2, %v1288_v24 }
 0x340   :  { %v1404_v62 = vmul.f32 %v1403_v1, %v1401_v23  ;;  %v1444_v17 = vor.u32 %v1443_v57, %v1442_v58  ;;  %v1448_v63 = vshll.u32 %v6804_v29, %v1439_v47  ;;  %v1291_v50 = vshrl.u32 %v1273_v55, %v1289_v10 }
 0x341   :  { %v1294_v40 = vadd.s32 127, %v1293_v60  ;;  %v1592_v27 = vshll.u32 %v5466_v36, 30  ;;  %v1451_v16 = vshll.u32 %v6760_v18, %v1439_v47  ;;  %v1452_v45 = vshrl.u32 %v6805_v21, %v1440_v61 }
 0x342   :  { %v1405_v28 = vxor.u32 2147483648, %v1404_v62  ;;  %v1454_v32 = vshll.u32 %v6805_v21, %v1439_v47  ;;  %v1455_v13 = vshrl.u32 %v6806_v39, %v1440_v61  ;;  %v1447_v2 = vor.u32 %v1446_v9, %v1445_v4 }
 0x343   :  { %v1295_v22 = vshll.u32 %v1294_v40, 23  ;;  %v5476_v54 = vsub.s32 %v1589_v5, %v1592_v27  ;;  %v1450_v38 = vor.u32 %v1449_v59, %v1448_v63  ;;  %v1441_v37 = vshrl.u32 %v6763_v52, %v1440_v61 }
 0x344   :  { %v1406_v41 = vsel %vm1323_vm13, %v1405_v28, %v1404_v62  ;;  %v1453_v6 = vor.u32 %v1452_v45, %v1451_v16  ;;  %v1456_v0 = vor.u32 %v1455_v13, %v1454_v32  ;;  %v1292_v58 = vor.u32 %v1291_v50, %v1290_v14 }
 0x345   :  { %v1409_v55 = vsel %vm5454_vm11, %v5272_v46, %v1406_v41  ;;  %v1296_v47 = vor.u32 4788187, %v1295_v22  ;;  %v1595_v1 = vsub.s32 0, %v5476_v54  ;;  %vm1459_vm1 = vcmp.lt.s32.totalorder %v5446_v31, 3 }
 0x346   :  { %vm1460_vm3 = vcmp.lt.s32.totalorder %v5446_v31, 4  ;;  %v1461_v5 = vsel %vm1457_vm2, %v1441_v37, %v1444_v17  ;;  %v1741_v3 = vshrl.u32 %v1740_v44, 23  ;;  %v1465_v24 = vsel %vm1457_vm2, %v1444_v17, %v1447_v2 }
 0x347   :  { %v1297_v57 = vand.u32 2147483647, %v1296_v47  ;;  %v3340_v61 = vmin.u32 %v1595_v1, %v5476_v54  ;;  %v1462_v23 = vsel %vm1460_vm3, %v1450_v38, 2102212464  ;;  %v1466_v9 = vsel %vm1460_vm3, %v1453_v6, 920167782 }
 0x348   :  { %v1463_v4 = vsel %vm1459_vm1, %v1447_v2, %v1462_v23  ;;  %v1469_v10 = vsel %vm1457_vm2, %v1447_v2, %v1450_v38  ;;  %v1470_v60 = vsel %vm1460_vm3, %v1456_v0, 1326507024  ;;  %v1299_v59 = vcvt.s32.f32 %v1292_v58 }
 0x349   :  { %v1597_v62 = vclz %v3340_v61  ;;  %vm1458_vm4 = vcmp.lt.s32.totalorder %v5446_v31, 2  ;;  %v1467_v44 = vsel %vm1459_vm1, %v1450_v38, %v1466_v9  ;;  %v1471_v63 = vsel %vm1459_vm1, %v1453_v6, %v1470_v60 }
 0x34a   :  { %v1468_v14 = vsel %vm1458_vm4, %v1465_v24, %v1467_v44  ;;  %v1473_v17 = vshll.u32 %v1433_v8, 8  ;;  %v3347_v50 = vadd.s32 4294967169, %v1741_v3  ;;  %v5503_v40 = vmul.f32 %v1299_v59, %v1297_v57 }
 0x34b   :  { %v3341_v27 = vadd.s32 4294967294, %v1597_v62  ;;  %v1464_v16 = vsel %vm1458_vm4, %v1461_v5, %v1463_v4  ;;  %v1472_v28 = vsel %vm1458_vm4, %v1469_v10, %v1471_v63  ;;  %4053 = vcosq.f32 %v1409_v55 }
 0x34c   :  { %v5505_v45 = vmul.u32.u64.low %v1473_v17, %v1472_v28  ;;  %v5506_v32 = vmul.u32.u64.high %v1473_v17, %v1472_v28, %v5505_v45  ;;  %v5508_v13 = vmul.u32.u64.low %v1473_v17, %v1468_v14  ;;  %v5509_v22 = vmul.u32.u64.high %v1473_v17, %v1468_v14, %v5508_v13 }
 0x34d   :  { %vm3342_vm15 = vcmp.lt.s32.totalorder %v3341_v27, 0  ;;  %v1747_v31 = vadd.s32 1, %v3347_v50  ;;  %4055 = vsinq.f32 %v1409_v55  ;;  %v1585_v15 = vadd.s32 %v5425_v26, %v5432_v20 }
 0x34e   :  { %v1600_v8 = vsel %vm3342_vm15, 0, %v3341_v27  ;;  %v1744_v2 = vand.u32 8388607, %v6746_v19  ;;  %v1480_v37 = vmul.u32 %v1473_v17, %v1464_v16  ;;  %v1301_v6 = vxor.u32 2147483648, %v5503_v40 }
 0x34f   :  { %v1601_v38 = vsub.s32 32, %v1600_v8  ;;  %v1605_v41 = vsub.s32 4294967266, %v1600_v8  ;;  %vm1748_vm5 = vcmp.gt.s32.totalorder %v1747_v31, 0  ;;  %vm1482_vm6 = vc.u32 %v5506_v32, %v5508_v13 }
 0x350   :  { %v1483_v0 = vadd.s32 1, %v5509_v22  ;;  %v1749_v58 = vsel %vm1748_vm5, %v1747_v31, 0  ;;  %v1602_v55 = vshll.u32 %v5476_v54, %v1600_v8  ;;  %v1745_v5 = vor.u32 8388608, %v1744_v2 }
 0x351   :  { %v1603_v47 = vshrl.u32 %v1585_v15, %v1601_v38  ;;  %v1606_v26 = vadd.s32 127, %v1605_v41  ;;  %v1751_v20 = vand.u32 31, %v1749_v58  ;;  %v5524_v3 = vadd.f32 %v5269_v25, %v5295_v43 }
 0x352   :  { %v1484_v1 = vsel %vm1482_vm6, %v1483_v0, %v5509_v22  ;;  %v5528_v57 = vadd.f32 %v5305_v56, %v5269_v25  ;;  %v1750_v9 = vshrl.u32 %v1749_v58, 5  ;;  %vm1219_vm7 = vcmp.lt.s32.totalorder %v5275_v34, 0 }
 0x353   :  { %v1604_v61 = vor.u32 %v1603_v47, %v1602_v55  ;;  %v1607_v23 = vshll.u32 %v1606_v26, 23  ;;  %v1485_v24 = vadd.s32 %v1484_v1, %v1480_v37  ;;  %v1752_v4 = vsub.s32 32, %v1751_v20 }
 0x354   :  { %v1754_v54 = vshll.u32 %v6763_v52, %v1751_v20  ;;  %v1757_v10 = vshll.u32 %v6803_v30, %v1751_v20  ;;  %v1760_v60 = vshll.u32 %v6804_v29, %v1751_v20  ;;  %v1763_v43 = vshll.u32 %v6760_v18, %v1751_v20 }
 0x355   :  { %v1608_v59 = vor.u32 4788187, %v1607_v23  ;;  %v1611_v62 = vcvt.s32.f32 %v1604_v61  ;;  %v1486_v44 = vadd.s32 536870912, %v1485_v24  ;;  %v1755_v14 = vshrl.u32 %v6803_v30, %v1752_v4  ;;  %v5538_v50 = vpop.eup %4053 }
 0x356   :  { %v1758_v56 = vshrl.u32 %v6804_v29, %v1752_v4  ;;  %v1761_v63 = vshrl.u32 %v6760_v18, %v1752_v4  ;;  %v1764_v17 = vshrl.u32 %v6805_v21, %v1752_v4  ;;  %v1766_v28 = vshll.u32 %v6805_v21, %v1751_v20 }
 0x357   :  { %v1609_v27 = vand.u32 2147483647, %v1608_v59  ;;  %v5540_v16 = vshrl.u32 %v1486_v44, 30  ;;  %v1767_v45 = vshrl.u32 %v6806_v39, %v1752_v4  ;;  %v5544_v22 = vpop.eup %4055  ;;  %v1756_v31 = vor.u32 %v1755_v14, %v1754_v54 }
 0x358   :  { %v1759_v15 = vor.u32 %v1758_v56, %v1757_v10  ;;  %v1762_v8 = vor.u32 %v1761_v63, %v1760_v60  ;;  %v1765_v2 = vor.u32 %v1764_v17, %v1763_v43  ;;  %vm1531_vm0 = vcmp.lt.s32.totalorder %v5284_v35, 0 }
 0x359   :  { %v1612_v38 = vmul.f32 %v1611_v62, %v1609_v27  ;;  %v1488_v41 = vshll.u32 %v5540_v16, 30  ;;  %v1768_v37 = vor.u32 %v1767_v45, %v1766_v28  ;;  %v1785_v0 = vshll.u32 %v1745_v5, 8 }
 0x35a   :  { %v1753_v58 = vshrl.u32 %v6763_v52, %v1752_v4  ;;  %vm1769_vm8 = vcmp.lt.s32.totalorder %v1750_v9, 1  ;;  %vm1772_vm9 = vcmp.lt.s32.totalorder %v1750_v9, 4  ;;  %v6747_v55 = vand.u32 2147483647, %v5524_v3 }
 0x35b   :  { %v5551_v47 = vsub.s32 %v1485_v24, %v1488_v41  ;;  %vm1770_vm10 = vcmp.lt.s32.totalorder %v1750_v9, 2  ;;  %v1774_v26 = vsel %vm1772_vm9, %v1762_v8, 2102212464  ;;  %v1777_v20 = vsel %vm1769_vm8, %v1756_v31, %v1759_v15 }
 0x35c   :  { %vm1771_vm12 = vcmp.lt.s32.totalorder %v1750_v9, 3  ;;  %v1778_v1 = vsel %vm1772_vm9, %v1765_v2, 920167782  ;;  %v1781_v61 = vsel %vm1769_vm8, %v1759_v15, %v1762_v8  ;;  %v1782_v23 = vsel %vm1772_vm9, %v1768_v37, 1326507024 }
 0x35d   :  { %v1613_v54 = vxor.u32 2147483648, %v1612_v38  ;;  %v1491_v10 = vsub.s32 0, %v5551_v47  ;;  %v1773_v60 = vsel %vm1769_vm8, %v1753_v58, %v1756_v31  ;;  %v1779_v5 = vsel %vm1771_vm12, %v1762_v8, %v1778_v1 }
 0x35e   :  { %v1775_v59 = vsel %vm1771_vm12, %v1759_v15, %v1774_v26  ;;  %v1780_v4 = vsel %vm1770_vm10, %v1777_v20, %v1779_v5  ;;  %v1783_v62 = vsel %vm1771_vm12, %v1765_v2, %v1782_v23  ;;  %v1636_v44 = vand.u32 2139095040, %v5524_v3 }
 0x35f   :  { %v3336_v24 = vmin.u32 %v1491_v10, %v5551_v47  ;;  %v1784_v43 = vsel %vm1770_vm10, %v1781_v61, %v1783_v62  ;;  %v5558_v14 = vmul.u32.u64.low %v1785_v0, %v1780_v4  ;;  %v5559_v56 = vmul.u32.u64.high %v1785_v0, %v1780_v4, %v5558_v14 }
 0x360   :  { %v5562_v63 = vmul.u32.u64.low %v1785_v0, %v1784_v43  ;;  %v5563_v17 = vmul.u32.u64.high %v1785_v0, %v1784_v43, %v5562_v63  ;;  %v1637_v27 = vshrl.u32 %v1636_v44, 23  ;;  %v1640_v28 = vand.u32 8388607, %v6747_v55 }
 0x361   :  { %v1493_v45 = vclz %v3336_v24  ;;  %v1776_v31 = vsel %vm1770_vm10, %v1773_v60, %v1775_v59  ;;  %v1948_v15 = vand.u32 2139095040, %v5528_v57  ;;  %v5571_v8 = vadd.f32 %v5269_v25, %v5309_v42 }
 0x362   :  { %v5578_v2 = vsel %vm1219_vm7, %v1301_v6, %v5503_v40  ;;  %v5582_v41 = vsel %vm1531_vm0, %v1613_v54, %v1612_v38  ;;  %v1481_v9 = vadd.s32 %v5508_v13, %v5506_v32  ;;  %v3343_v37 = vadd.s32 4294967169, %v1637_v27 }
 0x363   :  { %v3337_v58 = vadd.s32 4294967294, %v1493_v45  ;;  %v1795_v26 = vadd.s32 1, %v5559_v56  ;;  %v6745_v25 = vand.u32 2147483647, %v5528_v57  ;;  %v1949_v42 = vshrl.u32 %v1948_v15, 23 }
 0x364   :  { %v1792_v20 = vmul.u32 %v1785_v0, %v1776_v31  ;;  %vm1794_vm14 = vc.u32 %v5563_v17, %v5558_v14  ;;  %v1641_v40 = vor.u32 8388608, %v1640_v28  ;;  %v1643_v6 = vadd.s32 1, %v3343_v37 }
 0x365   :  { %vm3338_vm2 = vcmp.lt.s32.totalorder %v3337_v58, 0  ;;  %v1796_v38 = vsel %vm1794_vm14, %v1795_v26, %v5559_v56  ;;  %v3355_v1 = vadd.s32 4294967169, %v1949_v42  ;;  %v6744_v61 = vand.u32 2147483647, %v5571_v8 }
 0x366   :  { %v1496_v32 = vsel %vm3338_vm2, 0, %v3337_v58  ;;  %v1797_v13 = vadd.s32 %v1796_v38, %v1792_v20  ;;  %vm1644_vm1 = vcmp.gt.s32.totalorder %v1643_v6, 0  ;;  %v1844_v23 = vand.u32 2139095040, %v5571_v8 }
 0x367   :  { %v1497_v54 = vsub.s32 32, %v1496_v32  ;;  %v1501_v10 = vsub.s32 4294967266, %v1496_v32  ;;  %v1645_v60 = vsel %vm1644_vm1, %v1643_v6, 0  ;;  %v5595_v0 = vand.u32 8388607, %v6745_v25 }
 0x368   :  { %v1498_v5 = vshll.u32 %v5551_v47, %v1496_v32  ;;  %v1798_v59 = vadd.s32 536870912, %v1797_v13  ;;  %v1647_v4 = vand.u32 31, %v1645_v60  ;;  %v5598_v62 = vshll.u32 %v1641_v40, 8 }
 0x369   :  { %v1499_v44 = vshrl.u32 %v1481_v9, %v1497_v54  ;;  %v1502_v24 = vadd.s32 127, %v1501_v10  ;;  %v1646_v43 = vshrl.u32 %v1645_v60, 5  ;;  %v1955_v56 = vadd.s32 1, %v3355_v1 }
 0x36a   :  { %v5600_v63 = vshrl.u32 %v1798_v59, 30  ;;  %v1648_v27 = vsub.s32 32, %v1647_v4  ;;  %v1650_v28 = vshll.u32 %v6763_v52, %v1647_v4  ;;  %v1845_v45 = vshrl.u32 %v1844_v23, 23 }
 0x36b   :  { %v1500_v31 = vor.u32 %v1499_v44, %v1498_v5  ;;  %v1503_v15 = vshll.u32 %v1502_v24, 23  ;;  %v1653_v37 = vshll.u32 %v6803_v30, %v1647_v4  ;;  %v1656_v47 = vshll.u32 %v6804_v29, %v1647_v4 }
 0x36c   :  { %v1800_v58 = vshll.u32 %v5600_v63, 30  ;;  %v1651_v26 = vshrl.u32 %v6803_v30, %v1648_v27  ;;  %v1654_v9 = vshrl.u32 %v6804_v29, %v1648_v27  ;;  %v1659_v42 = vshll.u32 %v6760_v18, %v1647_v4 }
 0x36d   :  { %v1504_v20 = vor.u32 4788187, %v1503_v15  ;;  %v1507_v40 = vcvt.s32.f32 %v1500_v31  ;;  %v1657_v6 = vshrl.u32 %v6760_v18, %v1648_v27  ;;  %v1660_v38 = vshrl.u32 %v6805_v21, %v1648_v27 }
 0x36e   :  { %v5611_v1 = vsub.s32 %v1797_v13, %v1800_v58  ;;  %v1652_v32 = vor.u32 %v1651_v26, %v1650_v28  ;;  %v1655_v23 = vor.u32 %v1654_v9, %v1653_v37  ;;  %v1662_v54 = vshll.u32 %v6805_v21, %v1647_v4 }
 0x36f   :  { %v1505_v10 = vand.u32 2147483647, %v1504_v20  ;;  %v1658_v60 = vor.u32 %v1657_v6, %v1656_v47  ;;  %v1661_v5 = vor.u32 %v1660_v38, %v1659_v42  ;;  %v1663_v59 = vshrl.u32 %v6806_v39, %v1648_v27 }
 0x370   :  { %vm1427_vm3 = vcmp.lt.s32.totalorder %v5289_v33, 0  ;;  %v1803_v44 = vsub.s32 0, %v5611_v1  ;;  %v1649_v24 = vshrl.u32 %v6763_v52, %v1648_v27  ;;  %vm1665_vm4 = vcmp.lt.s32.totalorder %v1646_v43, 1 }
 0x371   :  { %vm1666_vm15 = vcmp.lt.s32.totalorder %v1646_v43, 2  ;;  %v1508_v31 = vmul.f32 %v1507_v40, %v1505_v10  ;;  %v1664_v13 = vor.u32 %v1663_v59, %v1662_v54  ;;  %vm1667_vm5 = vcmp.lt.s32.totalorder %v1646_v43, 3 }
 0x372   :  { %vm1668_vm6 = vcmp.lt.s32.totalorder %v1646_v43, 4  ;;  %v3348_v28 = vmin.u32 %v1803_v44, %v5611_v1  ;;  %v1673_v15 = vsel %vm1665_vm4, %v1652_v32, %v1655_v23  ;;  %v1669_v47 = vsel %vm1665_vm4, %v1649_v24, %v1652_v32  ;;  %v2049_v24 = vld [vmem:[#allocation8] sm:$0xff] }
 0x373   :  { %v1670_v4 = vsel %vm1668_vm6, %v1658_v60, 2102212464  ;;  %v1674_v37 = vsel %vm1668_vm6, %v1661_v5, 920167782  ;;  %v1677_v9 = vsel %vm1665_vm4, %v1655_v23, %v1658_v60  ;;  %v1678_v6 = vsel %vm1668_vm6, %v1664_v13, 1326507024 }
 0x374   :  { %v1671_v58 = vsel %vm1667_vm5, %v1655_v23, %v1670_v4  ;;  %v1675_v26 = vsel %vm1667_vm5, %v1658_v60, %v1674_v37  ;;  %v1805_v42 = vclz %v3348_v28  ;;  %v1953_v27 = vor.u32 8388608, %v5595_v0  ;;  %v2050_v23 = vld [vmem:[#allocation8 + $0x8] sm:$0xff] }
 0x375   :  { %v1676_v20 = vsel %vm1666_vm15, %v1673_v15, %v1675_v26  ;;  %v1509_v38 = vxor.u32 2147483648, %v1508_v31  ;;  %v1679_v40 = vsel %vm1667_vm5, %v1661_v5, %v1678_v6  ;;  %v1672_v44 = vsel %vm1666_vm15, %v1669_v47, %v1671_v58 }
 0x376   :  { %v5622_v54 = vmul.u32.u64.low %v5598_v62, %v1676_v20  ;;  %v5623_v10 = vmul.u32.u64.high %v5598_v62, %v1676_v20, %v5622_v54  ;;  %v3349_v59 = vadd.s32 4294967294, %v1805_v42  ;;  %v1680_v32 = vsel %vm1666_vm15, %v1677_v9, %v1679_v40 }
 0x377   :  { %vm1956_vm8 = vcmp.gt.s32.totalorder %v1955_v56, 0  ;;  %v5628_v60 = vmul.u32.u64.low %v5598_v62, %v1680_v32  ;;  %v5629_v28 = vmul.u32.u64.high %v5598_v62, %v1680_v32, %v5628_v60  ;;  %v3351_v0 = vadd.s32 4294967169, %v1845_v45 }
 0x378   :  { %v1957_v13 = vsel %vm1956_vm8, %v1955_v56, 0  ;;  %v1793_v5 = vadd.s32 %v5558_v14, %v5563_v17  ;;  %vm3350_vm9 = vcmp.lt.s32.totalorder %v3349_v59, 0  ;;  %v5633_v15 = vshll.u32 %v1953_v27, 8 }
 0x379   :  { %v1959_v4 = vand.u32 31, %v1957_v13  ;;  %v5637_v43 = vsel %vm1427_vm3, %v1509_v38, %v1508_v31  ;;  %v1808_v37 = vsel %vm3350_vm9, 0, %v3349_v59  ;;  %v1691_v47 = vadd.s32 1, %v5623_v10 }
 0x37a   :  { %v3798_v58 = vpack.c.bf16 %v2050_v23, %v2049_v24  ;;  %v1813_v26 = vsub.s32 4294967266, %v1808_v37  ;;  %v1688_v9 = vmul.u32 %v5598_v62, %v1672_v44  ;;  %v1958_v56 = vshrl.u32 %v1957_v13, 5 }
 0x37b   :  { %v1960_v45 = vsub.s32 32, %v1959_v4  ;;  %v1809_v42 = vsub.s32 32, %v1808_v37  ;;  %vm1690_vm10 = vc.u32 %v5629_v28, %v5622_v54  ;;  %v5644_v14 = vand.u32 8388607, %v6744_v61 }
 0x37c   :  { %v1851_v17 = vadd.s32 1, %v3351_v0  ;;  %3799 = vmatprep.subr.bf16.mxu0 %v3798_v58  ;;  %v1810_v31 = vshll.u32 %v5611_v1, %v1808_v37  ;;  %v1814_v20 = vadd.s32 127, %v1813_v26  ;;  %v5648_v6 = vadd.s32 %v5622_v54, %v5629_v28 }
 0x37d   :  { %v1692_v27 = vsel %vm1690_vm10, %v1691_v47, %v5623_v10  ;;  %3801 = vmatpush3.bf16.msra.mxu0 %v3798_v58  ;;  %v1962_v38 = vshll.u32 %v6763_v52, %v1959_v4  ;;  %v1963_v40 = vshrl.u32 %v6803_v30, %v1960_v45  ;;  %v1966_v59 = vshrl.u32 %v6804_v29, %v1960_v45 }
 0x37e   :  { %v1693_v62 = vadd.s32 %v1692_v27, %v1688_v9  ;;  %v1815_v44 = vshll.u32 %v1814_v20, 23  ;;  %v1965_v32 = vshll.u32 %v6803_v30, %v1959_v4  ;;  %v1968_v24 = vshll.u32 %v6804_v29, %v1959_v4 }
 0x37f   :  { %v1969_v1 = vshrl.u32 %v6760_v18, %v1960_v45  ;;  %v1964_v54 = vor.u32 %v1963_v40, %v1962_v38  ;;  %v1971_v60 = vshll.u32 %v6760_v18, %v1959_v4  ;;  %v1972_v10 = vshrl.u32 %v6805_v21, %v1960_v45 }
 0x380   :  { %v1694_v23 = vadd.s32 536870912, %v1693_v62  ;;  %v1811_v28 = vshrl.u32 %v1793_v5, %v1809_v42  ;;  %v1961_v13 = vshrl.u32 %v6763_v52, %v1960_v45  ;;  %v1967_v0 = vor.u32 %v1966_v59, %v1965_v32 }
 0x381   :  { %v1970_v37 = vor.u32 %v1969_v1, %v1968_v24  ;;  %v1973_v58 = vor.u32 %v1972_v10, %v1971_v60  ;;  %v1974_v26 = vshll.u32 %v6805_v21, %v1959_v4  ;;  %v1975_v9 = vshrl.u32 %v6806_v39, %v1960_v45 }
 0x382   :  { %v5660_v47 = vshrl.u32 %v1694_v23, 30  ;;  %v1816_v20 = vor.u32 4788187, %v1815_v44  ;;  %vm1977_vm12 = vcmp.lt.s32.totalorder %v1958_v56, 1  ;;  %vm1979_vm14 = vcmp.lt.s32.totalorder %v1958_v56, 3 }
 0x383   :  { %vm1980_vm2 = vcmp.lt.s32.totalorder %v1958_v56, 4  ;;  %v1976_v38 = vor.u32 %v1975_v9, %v1974_v26  ;;  %v1981_v40 = vsel %vm1977_vm12, %v1961_v13, %v1964_v54  ;;  %v1812_v42 = vor.u32 %v1811_v28, %v1810_v31  ;;  %v2052_v26 = vld [vmem:[#allocation8 + $0x18] sm:$0xff] }
 0x384   :  { %v1696_v27 = vshll.u32 %v5660_v47, 30  ;;  %v1982_v5 = vsel %vm1980_vm2, %v1970_v37, 2102212464  ;;  %v1985_v32 = vsel %vm1977_vm12, %v1964_v54, %v1967_v0  ;;  %v1986_v24 = vsel %vm1980_vm2, %v1973_v58, 920167782 }
 0x385   :  { %v1983_v59 = vsel %vm1979_vm14, %v1967_v0, %v1982_v5  ;;  %vm1978_vm1 = vcmp.lt.s32.totalorder %v1958_v56, 2  ;;  %v1987_v4 = vsel %vm1979_vm14, %v1970_v37, %v1986_v24  ;;  %v1989_v45 = vsel %vm1977_vm12, %v1967_v0, %v1970_v37  ;;  %v2053_v37 = vld [vmem:[#allocation8 + $0x20] sm:$0xff]  ;;  %v2055_v5 = vld [vmem:[#allocation8 + $0x30] sm:$0xff] }
 0x386   :  { %v5668_v1 = vsub.s32 %v1693_v62, %v1696_v27  ;;  %v1817_v44 = vand.u32 2147483647, %v1816_v20  ;;  %v1984_v23 = vsel %vm1978_vm1, %v1981_v40, %v1983_v59  ;;  %v1988_v60 = vsel %vm1978_vm1, %v1985_v32, %v1987_v4  ;;  %v2051_v62 = vld [vmem:[#allocation8 + $0x10] sm:$0xff]  ;;  %v2054_v20 = vld [vmem:[#allocation8 + $0x28] sm:$0xff]  ;;  %v2056_v59 = vld [vmem:[#allocation8 + $0x38] sm:$0xff] }
 0x387   :  { %v1990_v10 = vsel %vm1980_vm2, %v1976_v38, 1326507024  ;;  %v5675_v28 = vmul.u32.u64.low %v5633_v15, %v1988_v60  ;;  %v5676_v54 = vmul.u32.u64.high %v5633_v15, %v1988_v60, %v5675_v28  ;;  %v1819_v9 = vcvt.s32.f32 %v1812_v42 }
 0x388   :  { %v1699_v13 = vsub.s32 0, %v5668_v1  ;;  %v1991_v31 = vsel %vm1979_vm14, %v1973_v58, %v1990_v10  ;;  %v1849_v0 = vor.u32 8388608, %v5644_v14  ;;  %vm1852_vm4 = vcmp.gt.s32.totalorder %v1851_v17, 0 }
 0x389   :  { %v1992_v27 = vsel %vm1978_vm1, %v1989_v45, %v1991_v31  ;;  %v1853_v58 = vsel %vm1852_vm4, %v1851_v17, 0  ;;  %v5685_v32 = vmul.f32 %v1819_v9, %v1817_v44  ;;  %v2000_v24 = vmul.u32 %v5633_v15, %v1984_v23 }
 0x38a   :  { %v3344_v38 = vmin.u32 %v1699_v13, %v5668_v1  ;;  %v5682_v40 = vmul.u32.u64.low %v5633_v15, %v1992_v27  ;;  %v5683_v56 = vmul.u32.u64.high %v5633_v15, %v1992_v27, %v5682_v40  ;;  %v1855_v42 = vand.u32 31, %v1853_v58 }
 0x38b   :  { %v3802_v4 = vpack.c.bf16 %v2052_v26, %v2051_v62  ;;  %v2003_v14 = vadd.s32 1, %v5676_v54  ;;  %v5689_v60 = vshrl.u32 %v1853_v58, 5  ;;  %v3806_v10 = vpack.c.bf16 %v2054_v20, %v2053_v37 }
 0x38c   :  { %v1701_v45 = vclz %v3344_v38  ;;  %v1856_v13 = vsub.s32 32, %v1855_v42  ;;  %v1858_v31 = vshll.u32 %v6763_v52, %v1855_v42  ;;  %v5692_v27 = vshll.u32 %v1849_v0, 8 }
 0x38d   :  { %3803 = vmatprep.subr.bf16.mxu0 %v3802_v4  ;;  %v3810_v17 = vpack.c.bf16 %v2056_v59, %v2055_v5  ;;  %vm2002_vm15 = vc.u32 %v5683_v56, %v5675_v28  ;;  %v1861_v15 = vshll.u32 %v6803_v30, %v1855_v42  ;;  %v1864_v44 = vshll.u32 %v6804_v29, %v1855_v42 }
 0x38e   :  { %v3345_v40 = vadd.s32 4294967294, %v1701_v45  ;;  %3805 = vmatpush3.bf16.msra.mxu0 %v3802_v4  ;;  %v2004_v23 = vsel %vm2002_vm15, %v2003_v14, %v5676_v54  ;;  %v1859_v62 = vshrl.u32 %v6803_v30, %v1856_v13  ;;  %v1862_v26 = vshrl.u32 %v6804_v29, %v1856_v13 }
 0x38f   :  { %v1867_v9 = vshll.u32 %v6760_v18, %v1855_v42  ;;  %3807 = vmatprep.subr.bf16.mxu0 %v3806_v10  ;;  %v2005_v0 = vadd.s32 %v2004_v23, %v2000_v24  ;;  %v1865_v37 = vshrl.u32 %v6760_v18, %v1856_v13  ;;  %v1868_v20 = vshrl.u32 %v6805_v21, %v1856_v13 }
 0x390   :  { %vm3346_vm5 = vcmp.lt.s32.totalorder %v3345_v40, 0  ;;  %v1857_v58 = vshrl.u32 %v6763_v52, %v1856_v13  ;;  %v1860_v5 = vor.u32 %v1859_v62, %v1858_v31  ;;  %v1863_v59 = vor.u32 %v1862_v26, %v1861_v15 }
 0x391   :  { %v1704_v38 = vsel %vm3346_vm5, 0, %v3345_v40  ;;  %v2006_v45 = vadd.s32 536870912, %v2005_v0  ;;  %v1870_v14 = vshll.u32 %v6805_v21, %v1855_v42  ;;  %v1866_v25 = vor.u32 %v1865_v37, %v1864_v44  ;;  %v2058_v44 = vld [vmem:[#allocation8 + $0x48] sm:$0xff] }
 0x392   :  { %v1705_v4 = vsub.s32 32, %v1704_v38  ;;  %v1709_v54 = vsub.s32 4294967266, %v1704_v38  ;;  %3809 = vmatpush3.bf16.msra.mxu0 %v3806_v10  ;;  %v1706_v61 = vshll.u32 %v5668_v1, %v1704_v38  ;;  %v1869_v19 = vor.u32 %v1868_v20, %v1867_v9  ;;  %v2059_v38 = vld [vmem:[#allocation8 + $0x50] sm:$0xff] }
 0x393   :  { %v1871_v24 = vshrl.u32 %v6806_v39, %v1856_v13  ;;  %3811 = vmatprep.subr.bf16.mxu0 %v3810_v17  ;;  %v5709_v55 = vshrl.u32 %v2006_v45, 30  ;;  %vm1873_vm6 = vcmp.lt.s32.totalorder %v5689_v60, 1  ;;  %vm5714_vm8 = vcmp.le.f32.partialorder %v1217_v53, 0.7853982  ;;  %v2057_v53 = vld [vmem:[#allocation8 + $0x40] sm:$0xff] }
 0x394   :  { %v1707_v23 = vshrl.u32 %v5648_v6, %v1705_v4  ;;  %v1710_v40 = vadd.s32 127, %v1709_v54  ;;  %vm1875_vm9 = vcmp.lt.s32.totalorder %v5689_v60, 3  ;;  %vm1876_vm10 = vcmp.lt.s32.totalorder %v5689_v60, 4 }
 0x395   :  { %v1872_v42 = vor.u32 %v1871_v24, %v1870_v14  ;;  %v1877_v1 = vsel %vm1873_vm6, %v1857_v58, %v1860_v5  ;;  %v2008_v13 = vshll.u32 %v5709_v55, 30  ;;  %v1878_v15 = vsel %vm1876_vm10, %v1866_v25, 2102212464  ;;  %v2060_v58 = vld [vmem:[#allocation8 + $0x58] sm:$0xff] }
 0x396   :  { %v1708_v6 = vor.u32 %v1707_v23, %v1706_v61  ;;  %v1711_v10 = vshll.u32 %v1710_v40, 23  ;;  %3813 = vmatpush3.bf16.msra.mxu0 %v3810_v17  ;;  %vm1874_vm12 = vcmp.lt.s32.totalorder %v5689_v60, 2  ;;  %v1879_v62 = vsel %vm1875_vm9, %v1863_v59, %v1878_v15  ;;  %v2061_v23 = vld [vmem:[#allocation8 + $0x60] sm:$0xff]  ;;  %v2062_v40 = vld [vmem:[#allocation8 + $0x68] sm:$0xff] }
 0x397   :  { %v1881_v26 = vsel %vm1873_vm6, %v1860_v5, %v1863_v59  ;;  %v1882_v61 = vsel %vm1876_vm10, %v1869_v19, 920167782  ;;  %v5732_v20 = vsub.s32 %v2005_v0, %v2008_v13  ;;  %v1885_v17 = vsel %vm1873_vm6, %v1863_v59, %v1866_v25 }
 0x398   :  { %v1712_v9 = vor.u32 4788187, %v1711_v10  ;;  %v1715_v37 = vcvt.s32.f32 %v1708_v6  ;;  %v1880_v4 = vsel %vm1874_vm12, %v1877_v1, %v1879_v62  ;;  %v1883_v54 = vsel %vm1875_vm9, %v1866_v25, %v1882_v61  ;;  %v2064_v62 = vld [vmem:[#allocation8 + $0x78] sm:$0xff] }
 0x399   :  { %v1886_v5 = vsel %vm1876_vm10, %v1872_v42, 1326507024  ;;  %v3814_v45 = vpack.c.bf16 %v2058_v44, %v2057_v53  ;;  %v2011_v24 = vsub.s32 0, %v5732_v20  ;;  %v1884_v0 = vsel %vm1874_vm12, %v1881_v26, %v1883_v54  ;;  %v2063_v44 = vld [vmem:[#allocation8 + $0x70] sm:$0xff] }
 0x39a   :  { %v1713_v14 = vand.u32 2147483647, %v1712_v9  ;;  %v1887_v59 = vsel %vm1875_vm9, %v1869_v19, %v1886_v5  ;;  %v5750_v25 = vmul.u32.u64.low %v5692_v27, %v1884_v0  ;;  %v5751_v6 = vmul.u32.u64.high %v5692_v27, %v1884_v0, %v5750_v25 }
 0x39b   :  { %v1888_v1 = vsel %vm1874_vm12, %v1885_v17, %v1887_v59  ;;  %3815 = vmatprep.subr.bf16.mxu0 %v3814_v45  ;;  %v3818_v42 = vpack.c.bf16 %v2060_v58, %v2059_v38  ;;  %v3356_v13 = vmin.u32 %v2011_v24, %v5732_v20  ;;  %v1821_v19 = vxor.u32 2147483648, %v5685_v32 }
 0x39c   :  { %v5754_v10 = vmul.f32 %v1715_v37, %v1713_v14  ;;  %v5758_v15 = vmul.u32.u64.low %v5692_v27, %v1888_v1  ;;  %v5759_v53 = vmul.u32.u64.high %v5692_v27, %v1888_v1, %v5758_v15  ;;  %3817 = vmatpush3.bf16.msra.mxu0 %v3814_v45  ;;  %v3822_v60 = vpack.c.bf16 %v2062_v40, %v2061_v23 }
 0x39d   :  { %3819 = vmatprep.subr.bf16.mxu0 %v3818_v42  ;;  %v1303_v26 = vsub.s32 4, %v5416_v12  ;;  %v1305_v61 = vsel %vm5714_vm8, %v5275_v34, %v5578_v2  ;;  %v2001_v9 = vadd.s32 %v5675_v28, %v5683_v56  ;;  %v2013_v37 = vclz %v3356_v13 }
 0x39e   :  { %4057 = vcosq.f32 %v1305_v61  ;;  %v1407_v17 = vsub.s32 4, %v5385_v48  ;;  %v1896_v38 = vmul.u32 %v5692_v27, %v1880_v4  ;;  %v1899_v58 = vadd.s32 1, %v5751_v6 }
 0x39f   :  { %v1304_v54 = vsel %vm1219_vm7, %v1303_v26, %v5416_v12  ;;  %4059 = vsinq.f32 %v1305_v61  ;;  %v1717_v5 = vxor.u32 2147483648, %v5754_v10  ;;  %v3357_v45 = vadd.s32 4294967294, %v2013_v37 }
 0x3a0   :  { %vm1898_vm14 = vc.u32 %v5759_v53, %v5750_v25  ;;  %3821 = vmatpush3.bf16.msra.mxu0 %v3818_v42  ;;  %v3826_v2 = vpack.c.bf16 %v2064_v62, %v2063_v44  ;;  %v1306_v56 = vsel %vm5714_vm8, 0, %v1304_v54  ;;  %v1408_v27 = vsel %vm1323_vm13, %v1407_v17, %v5385_v48 }
 0x3a1   :  { %v1900_v28 = vsel %vm1898_vm14, %v1899_v58, %v5751_v6  ;;  %3823 = vmatprep.subr.bf16.mxu0 %v3822_v60  ;;  %v1418_v12 = vxor.u32 2147483648, %v5544_v22  ;;  %vm3358_vm7 = vcmp.lt.s32.totalorder %v3357_v45, 0  ;;  %v1310_v14 = vadd.s32 3, %v1306_v56 }
 0x3a2   :  { %v1901_v4 = vadd.s32 %v1900_v28, %v1896_v38  ;;  %v1410_v24 = vsel %vm5454_vm11, 0, %v1408_v27  ;;  %v2016_v0 = vsel %vm3358_vm7, 0, %v3357_v45  ;;  %v1421_v23 = vxor.u32 2147483648, %v5538_v50 }
 0x3a3   :  { %v1414_v59 = vadd.s32 3, %v1410_v24  ;;  %v1511_v40 = vsub.s32 4, %v5540_v16  ;;  %v2017_v31 = vsub.s32 32, %v2016_v0  ;;  %v2021_v1 = vsub.s32 4294967266, %v2016_v0 }
 0x3a4   :  { %v1902_v6 = vadd.s32 536870912, %v1901_v4  ;;  %3825 = vmatpush3.bf16.msra.mxu0 %v3822_v60  ;;  %vm1413_vm13 = vweird.f32 %v5272_v46  ;;  %vm5792_vm2 = vcmp.le.f32.partialorder %v1425_v7, 0.7853982  ;;  %v2018_v49 = vshll.u32 %v5732_v20, %v2016_v0 }
 0x3a5   :  { %3827 = vmatprep.subr.bf16.mxu0 %v3826_v2  ;;  %vm1309_vm11 = vweird.f32 %v5275_v34  ;;  %v1311_v42 = vand.u32 3, %v1310_v14  ;;  %v1415_v13 = vand.u32 3, %v1414_v59  ;;  %v1512_v15 = vsel %vm1427_vm3, %v1511_v40, %v5540_v16 }
 0x3a6   :  { %v2019_v60 = vshrl.u32 %v2001_v9, %v2017_v31  ;;  %v2022_v44 = vadd.s32 127, %v2021_v1  ;;  %v5801_v62 = vshrl.u32 %v1902_v6, 30  ;;  %v1513_v7 = vsel %vm5792_vm2, %v5289_v33, %v5637_v43 }
 0x3a7   :  { %vm1312_vm1 = vcmp.lt.s32.totalorder %v1311_v42, 2  ;;  %vm1313_vm4 = vcmp.eq.s32.totalorder %v1311_v42, 0  ;;  %vm1316_vm15 = vcmp.eq.s32.totalorder %v1311_v42, 2  ;;  %v1514_v20 = vsel %vm5792_vm2, 0, %v1512_v15 }
 0x3a8   :  { %v4058_v26 = vpop.eup %4057  ;;  %v2020_v61 = vor.u32 %v2019_v60, %v2018_v49  ;;  %v2023_v37 = vshll.u32 %v2022_v44, 23  ;;  %v1904_v16 = vshll.u32 %v5801_v62, 30  ;;  %3829 = vmatpush3.bf16.msra.mxu0 %v3826_v2  ;;  %vm1417_vm3 = vcmp.eq.s32.totalorder %v1415_v13, 0 }
 0x3a9   :  { %v4060_v9 = vpop.eup %4059  ;;  %v1317_v17 = vxor.u32 2147483648, %v4058_v26  ;;  %vm1416_vm5 = vcmp.lt.s32.totalorder %v1415_v13, 2  ;;  %v1419_v38 = vsel %vm1417_vm3, %v5538_v50, %v1418_v12  ;;  %4061 = vcosq.f32 %v1513_v7 }
 0x3aa   :  { %v2024_v43 = vor.u32 4788187, %v2023_v37  ;;  %v5811_v58 = vsub.s32 %v1901_v4, %v1904_v16  ;;  %v1314_v54 = vxor.u32 2147483648, %v4060_v9  ;;  %vm1420_vm6 = vcmp.eq.s32.totalorder %v1415_v13, 2 }
 0x3ab   :  { %v2027_v45 = vcvt.s32.f32 %v2020_v61  ;;  %v1318_v28 = vsel %vm1316_vm15, %v1317_v17, %v4060_v9  ;;  %v1422_v56 = vsel %vm1420_vm6, %v1421_v23, %v5544_v22  ;;  %4063 = vsinq.f32 %v1513_v7 }
 0x3ac   :  { %v2025_v27 = vand.u32 2147483647, %v2024_v43  ;;  %v1907_v2 = vsub.s32 0, %v5811_v58  ;;  %v1315_v14 = vsel %vm1313_vm4, %v4058_v26, %v1314_v54  ;;  %v1423_v24 = vsel %vm1416_vm5, %v1419_v38, %v1422_v56 }
 0x3ad   :  { %v1319_v50 = vsel %vm1312_vm1, %v1315_v14, %v1318_v28  ;;  %v1424_v12 = vsel %vm1413_vm13, nan, %v1423_v24  ;;  %v1518_v4 = vadd.s32 3, %v1514_v20  ;;  %vm5822_vm8 = vcmp.le.f32.partialorder %v1529_v51, 0.7853982 }
 0x3ae   :  { %v5826_v22 = vmul.f32 %v2027_v45, %v2025_v27  ;;  %v3352_v59 = vmin.u32 %v1907_v2, %v5811_v58  ;;  %v1320_v23 = vsel %vm1309_vm11, nan, %v1319_v50  ;;  %v1615_v40 = vsub.s32 4, %v5466_v36 }
 0x3af   :  { %vm1739_vm9 = vcmp.lt.s32.totalorder %v5440_v11, 0  ;;  %vm1635_vm10 = vcmp.lt.s32.totalorder %v5524_v3, 0  ;;  %3634 = vmatprep.mubr.f32.mxu0 %v1320_v23  ;;  %v1519_v46 = vand.u32 3, %v1518_v4  ;;  %v1617_v51 = vsel %vm5822_vm8, %v5284_v35, %v5582_v41 }
 0x3b0   :  { %v1718_v34 = vsel %vm1635_vm10, %v1717_v5, %v5754_v10  ;;  %v1909_v31 = vclz %v3352_v59  ;;  %3635 = vmatmul.mubr.f32.vlgmr.msra.gmra.mrb[8].mxu0 %v1424_v12  ;;  %v1616_v1 = vsel %vm1531_vm0, %v1615_v40, %v5466_v36  ;;  %4065 = vcosq.f32 %v1617_v51 }
 0x3b1   :  { %v1822_v6 = vsel %vm1739_vm9, %v1821_v19, %v5685_v32  ;;  %v1897_v41 = vadd.s32 %v5750_v25, %v5759_v53  ;;  %vm1517_vm12 = vweird.f32 %v5289_v33  ;;  %v1618_v10 = vsel %vm5822_vm8, 0, %v1616_v1 }
 0x3b2   :  { %v2029_v5 = vxor.u32 2147483648, %v5826_v22  ;;  %v3353_v48 = vadd.s32 4294967294, %v1909_v31  ;;  %4067 = vsinq.f32 %v1617_v51  ;;  %v6815_v36 = vand.u32 2147483647, %v5524_v3 }
 0x3b3   :  { %v4062_v42 = vpop.eup %4061  ;;  %vm1520_vm14 = vcmp.lt.s32.totalorder %v1519_v46, 2  ;;  %v1622_v32 = vadd.s32 3, %v1618_v10  ;;  %v1719_v25 = vsub.s32 4, %v5660_v47  ;;  %vm1521_vm13 = vcmp.eq.s32.totalorder %v1519_v46, 0 }
 0x3b4   :  { %vm5859_vm0 = vcmp.le.f32.partialorder %v6815_v36, 0.7853982  ;;  %vm3354_vm7 = vcmp.lt.s32.totalorder %v3353_v48, 0  ;;  %v1525_v19 = vxor.u32 2147483648, %v4062_v42  ;;  %v1823_v44 = vsub.s32 4, %v5600_v63 }
 0x3b5   :  { %v1721_v53 = vsel %vm5859_vm0, %v5524_v3, %v1718_v34  ;;  %v4064_v13 = vpop.eup %4063  ;;  %v1912_v15 = vsel %vm3354_vm7, 0, %v3353_v48  ;;  %v1720_v60 = vsel %vm1635_vm10, %v1719_v25, %v5660_v47  ;;  %vm1524_vm2 = vcmp.eq.s32.totalorder %v1519_v46, 2 }
 0x3b6   :  { %4069 = vcosq.f32 %v1721_v53  ;;  %v1913_v7 = vsub.s32 32, %v1912_v15  ;;  %v1917_v20 = vsub.s32 4294967266, %v1912_v15  ;;  %v1522_v26 = vxor.u32 2147483648, %v4064_v13 }
 0x3b7   :  { %4071 = vsinq.f32 %v1721_v53  ;;  %v1914_v61 = vshll.u32 %v5811_v58, %v1912_v15  ;;  %v1526_v37 = vsel %vm1524_vm2, %v1525_v19, %v4064_v13  ;;  %v1623_v16 = vand.u32 3, %v1622_v32  ;;  %v2189_v15 = vld [vmem:[#allocation10 + $0x60] sm:$0xff] }
 0x3b8   :  { %v6818_v9 = vand.u32 2147483647, %v5440_v11  ;;  %v1915_v38 = vshrl.u32 %v1897_v41, %v1913_v7  ;;  %v1918_v43 = vadd.s32 127, %v1917_v20  ;;  %v1523_v47 = vsel %vm1521_vm13, %v4062_v42, %v1522_v26  ;;  %v2177_v26 = vld [vmem:[#allocation10] sm:$0xff] }
 0x3b9   :  { %v1722_v54 = vsel %vm5859_vm0, 0, %v1720_v60  ;;  %v1527_v45 = vsel %vm1520_vm14, %v1523_v47, %v1526_v37  ;;  %v1824_v58 = vsel %vm1739_vm9, %v1823_v44, %v5600_v63  ;;  %vm1947_vm1 = vcmp.lt.s32.totalorder %v5528_v57, 0 }
 0x3ba   :  { %vm5874_vm11 = vcmp.le.f32.partialorder %v6818_v9, 0.7853982  ;;  %v1726_v28 = vadd.s32 3, %v1722_v54  ;;  %v4066_v27 = vpop.eup %4065  ;;  %v1916_v2 = vor.u32 %v1915_v38, %v1914_v61  ;;  %v1919_v14 = vshll.u32 %v1918_v43, 23  ;;  %v2178_v61 = vld [vmem:[#allocation10 + $0x8] sm:$0xff]  ;;  %v2179_v38 = vld [vmem:[#allocation10 + $0x10] sm:$0xff] }
 0x3bb   :  { %v1825_v56 = vsel %vm5874_vm11, %v5440_v11, %v1822_v6  ;;  %v1528_v24 = vsel %vm1517_vm12, nan, %v1527_v45  ;;  %vm1843_vm4 = vcmp.lt.s32.totalorder %v5571_v8, 0  ;;  %v1629_v50 = vxor.u32 2147483648, %v4066_v27  ;;  %v2180_v43 = vld [vmem:[#allocation10 + $0x18] sm:$0xff] }
 0x3bc   :  { %3637 = vmatprep.mubr.f32.mxu0 %v1528_v24  ;;  %v1727_v12 = vand.u32 3, %v1726_v28  ;;  %v1826_v63 = vsel %vm5874_vm11, 0, %v1824_v58  ;;  %4073 = vcosq.f32 %v1825_v56  ;;  %v4068_v4 = vpop.eup %4067  ;;  %v1920_v0 = vor.u32 4788187, %v1919_v14 }
 0x3bd   :  { %vm1621_vm15 = vweird.f32 %v5284_v35  ;;  %vm1628_vm3 = vcmp.eq.s32.totalorder %v1623_v16, 2  ;;  %4075 = vsinq.f32 %v1825_v56  ;;  %v2030_v33 = vsel %vm1947_vm1, %v2029_v5, %v5826_v22  ;;  %v2182_v56 = vld [vmem:[#allocation10 + $0x28] sm:$0xff] }
 0x3be   :  { %v1626_v59 = vxor.u32 2147483648, %v4068_v4  ;;  %v1630_v23 = vsel %vm1628_vm3, %v1629_v50, %v4068_v4  ;;  %vm1725_vm5 = vweird.f32 %v5524_v3  ;;  %v1921_v46 = vand.u32 2147483647, %v1920_v0  ;;  %v2183_v4 = vld [vmem:[#allocation10 + $0x30] sm:$0xff]  ;;  %v2184_v0 = vld [vmem:[#allocation10 + $0x38] sm:$0xff] }
 0x3bf   :  { %v1923_v51 = vcvt.s32.f32 %v1916_v2  ;;  %vm1625_vm6 = vcmp.eq.s32.totalorder %v1623_v16, 0  ;;  %v1830_v34 = vadd.s32 3, %v1826_v63  ;;  %vm1624_vm8 = vcmp.lt.s32.totalorder %v1623_v16, 2 }
 0x3c0   :  { %v4070_v40 = vpop.eup %4069  ;;  %v1627_v1 = vsel %vm1625_vm6, %v4066_v27, %v1626_v59  ;;  %vm1732_vm9 = vcmp.eq.s32.totalorder %v1727_v12, 2  ;;  %v1927_v36 = vsub.s32 4, %v5801_v62  ;;  %vm1728_vm10 = vcmp.lt.s32.totalorder %v1727_v12, 2 }
 0x3c1   :  { %v4072_v31 = vpop.eup %4071  ;;  %v1733_v6 = vxor.u32 2147483648, %v4070_v40  ;;  %v1924_v41 = vmul.f32 %v1923_v51, %v1921_v46  ;;  %v1631_v10 = vsel %vm1624_vm8, %v1627_v1, %v1630_v23  ;;  %vm1729_vm12 = vcmp.eq.s32.totalorder %v1727_v12, 0 }
 0x3c2   :  { %v1730_v48 = vxor.u32 2147483648, %v4072_v31  ;;  %v1632_v22 = vsel %vm1621_vm15, nan, %v1631_v10  ;;  %v1831_v32 = vand.u32 3, %v1830_v34  ;;  %v6821_v25 = vand.u32 2147483647, %v5528_v57 }
 0x3c3   :  { %v1734_v5 = vsel %vm1732_vm9, %v1733_v6, %v4072_v31  ;;  %v1925_v49 = vxor.u32 2147483648, %v1924_v41  ;;  %3638 = vmatmul.mubr.f32.gmra.mrb[10].mxu0 %v1632_v22  ;;  %v6824_v13 = vand.u32 2147483647, %v5571_v8  ;;  %v2031_v35 = vsub.s32 4, %v5709_v55  ;;  %v2186_v31 = vld [vmem:[#allocation10 + $0x48] sm:$0xff] }
 0x3c4   :  { %v1731_v42 = vsel %vm1729_vm12, %v4070_v40, %v1730_v48  ;;  %vm5904_vm0 = vcmp.le.f32.partialorder %v6821_v25, 0.7853982  ;;  %v1928_v20 = vsel %vm1843_vm4, %v1927_v36, %v5801_v62  ;;  %vm1836_vm7 = vcmp.eq.s32.totalorder %v1831_v32, 2 }
 0x3c5   :  { %v1735_v19 = vsel %vm1728_vm10, %v1731_v42, %v1734_v5  ;;  %vm5910_vm14 = vcmp.le.f32.partialorder %v6824_v13, 0.7853982  ;;  %v2033_v60 = vsel %vm5904_vm0, %v5528_v57, %v2030_v33  ;;  %v1926_v44 = vsel %vm1843_vm4, %v1925_v49, %v1924_v41  ;;  %v2187_v42 = vld [vmem:[#allocation10 + $0x50] sm:$0xff] }
 0x3c6   :  { %v1736_v7 = vsel %vm1725_vm5, nan, %v1735_v19  ;;  %4077 = vcosq.f32 %v2033_v60  ;;  %v4074_v37 = vpop.eup %4073  ;;  %v1929_v16 = vsel %vm5910_vm14, %v5571_v8, %v1926_v44  ;;  %v2032_v9 = vsel %vm1947_vm1, %v2031_v35, %v5709_v55  ;;  %v2181_v55 = vld [vmem:[#allocation10 + $0x20] sm:$0xff]  ;;  %v2190_v35 = vld [vmem:[#allocation10 + $0x68] sm:$0xff]  ;;  %v2191_v44 = vld [vmem:[#allocation10 + $0x70] sm:$0xff] }
 0x3c7   :  { %3640 = vmatprep.mubr.f32.mxu0 %v1736_v7  ;;  %4079 = vsinq.f32 %v2033_v60  ;;  %v4076_v3 = vpop.eup %4075  ;;  %v1837_v17 = vxor.u32 2147483648, %v4074_v37  ;;  %v2034_v62 = vsel %vm5904_vm0, 0, %v2032_v9  ;;  %v1930_v54 = vsel %vm5910_vm14, 0, %v1928_v20 }
 0x3c8   :  { %4081 = vcosq.f32 %v1929_v16  ;;  %v1834_v47 = vxor.u32 2147483648, %v4076_v3  ;;  %v3830_v45 = vpack.c.bf16 %v2178_v61, %v2177_v26  ;;  %vm1833_vm13 = vcmp.eq.s32.totalorder %v1831_v32, 0 }
 0x3c9   :  { %4083 = vsinq.f32 %v1929_v16  ;;  %v1838_v28 = vsel %vm1836_vm7, %v1837_v17, %v4076_v3  ;;  %v2038_v58 = vadd.s32 3, %v2034_v62  ;;  %vm1832_vm2 = vcmp.lt.s32.totalorder %v1831_v32, 2  ;;  %v2188_v32 = vld [vmem:[#allocation10 + $0x58] sm:$0xff] }
 0x3ca   :  { %v1835_v27 = vsel %vm1833_vm13, %v4074_v37, %v1834_v47  ;;  %3831 = vmatprep.subr.bf16.mxu1 %v3830_v45  ;;  %v3834_v2 = vpack.c.bf16 %v2180_v43, %v2179_v38  ;;  %vm1829_vm11 = vweird.f32 %v5440_v11  ;;  %v1934_v24 = vadd.s32 3, %v1930_v54  ;;  %v2185_v11 = vld [vmem:[#allocation10 + $0x40] sm:$0xff] }
 0x3cb   :  { %v1839_v14 = vsel %vm1832_vm2, %v1835_v27, %v1838_v28  ;;  %3833 = vmatpush3.bf16.msra.mxu1 %v3830_v45  ;;  %v3838_v12 = vpack.c.bf16 %v2182_v56, %v2181_v55  ;;  %v2039_v63 = vand.u32 3, %v2038_v58  ;;  %v3842_v46 = vpack.c.bf16 %v2184_v0, %v2183_v4  ;;  %v5944_v55 = vld [vmem:[%s6698_s8] ss:$0 sm:$0xff] }
 0x3cc   :  { %v1840_v50 = vsel %vm1829_vm11, nan, %v1839_v14  ;;  %3835 = vmatprep.subr.bf16.mxu1 %v3834_v2  ;;  %v1935_v59 = vand.u32 3, %v1934_v24  ;;  %v3846_v22 = vpack.c.bf16 %v2186_v31, %v2185_v11  ;;  %vm1933_vm8 = vweird.f32 %v5571_v8  ;;  %v2192_v8 = vld [vmem:[#allocation10 + $0x78] sm:$0xff] }
 0x3cd   :  { %3641 = vmatmul.mubr.f32.gmra.mrb[12].mxu0 %v1840_v50  ;;  %vm2044_vm1 = vcmp.eq.s32.totalorder %v2039_v63, 2  ;;  %vm2041_vm4 = vcmp.eq.s32.totalorder %v2039_v63, 0  ;;  %vm2040_vm5 = vcmp.lt.s32.totalorder %v2039_v63, 2  ;;  %vm2037_vm9 = vweird.f32 %v5528_v57  ;;  %v3359_v57 = vld [vmem:[%s6696_s6] ss:$0 sm:$0xff] }
 0x3ce   :  { %vm1940_vm15 = vcmp.eq.s32.totalorder %v1935_v59, 2  ;;  %vm1937_vm3 = vcmp.eq.s32.totalorder %v1935_v59, 0  ;;  %vm1936_vm6 = vcmp.lt.s32.totalorder %v1935_v59, 2  ;;  %v3850_v13 = vpack.c.bf16 %v2188_v32, %v2187_v42 }
 0x3cf   :  { %3837 = vmatpush3.bf16.msra.mxu1 %v3834_v2  ;;  %v3854_v60 = vpack.c.bf16 %v2190_v35, %v2189_v15  ;;  %v3858_v7 = vpack.c.bf16 %v2192_v8, %v2191_v44 }
 0x3d0   :  { %v4078_v33 = vpop.eup %4077  ;;  %3839 = vmatprep.subr.bf16.mxu1 %v3838_v12 }
 0x3d1   :  { %v4080_v23 = vpop.eup %4079  ;;  %v2045_v40 = vxor.u32 2147483648, %v4078_v33 }
 0x3d2   :  { %v4082_v51 = vpop.eup %4081  ;;  %v2042_v34 = vxor.u32 2147483648, %v4080_v23 }
 0x3d3   :  { %v4084_v1 = vpop.eup %4083  ;;  %v1941_v6 = vxor.u32 2147483648, %v4082_v51  ;;  %v2046_v41 = vsel %vm2044_vm1, %v2045_v40, %v4080_v23  ;;  %3841 = vmatpush3.bf16.msra.mxu1 %v3838_v12 }
 0x3d4   :  { %v1938_v10 = vxor.u32 2147483648, %v4084_v1  ;;  %v2043_v48 = vsel %vm2041_vm4, %v4078_v33, %v2042_v34  ;;  %3843 = vmatprep.subr.bf16.mxu1 %v3842_v46 }
 0x3d5   :  { %v1942_v36 = vsel %vm1940_vm15, %v1941_v6, %v4084_v1  ;;  %v2047_v49 = vsel %vm2040_vm5, %v2043_v48, %v2046_v41 }
 0x3d6   :  { %v1939_v5 = vsel %vm1937_vm3, %v4082_v51, %v1938_v10  ;;  %v2048_v19 = vsel %vm2037_vm9, nan, %v2047_v49 }
 0x3d7   :  { %v1943_v25 = vsel %vm1936_vm6, %v1939_v5, %v1942_v36  ;;  %3845 = vmatpush3.bf16.msra.mxu1 %v3842_v46 }
 0x3d8   :  { %v1944_v53 = vsel %vm1933_vm8, nan, %v1943_v25  ;;  %3847 = vmatprep.subr.bf16.mxu1 %v3846_v22 }
 0x3d9   :  { %3643 = vmatprep.mubr.f32.mxu0 %v1944_v53 }
 0x3da   :  { %3644 = vmatmul.mubr.f32.gmra.mrb[14].mxu0 %v2048_v19 }
 0x3db   :  { %3849 = vmatpush3.bf16.msra.mxu1 %v3846_v22 }
 0x3dc   :  { %3851 = vmatprep.subr.bf16.mxu1 %v3850_v13 }
 0x3df   :  { %3853 = vmatpush3.bf16.msra.mxu1 %v3850_v13 }
 0x3e0   :  { %3855 = vmatprep.subr.bf16.mxu1 %v3854_v60 }
 0x3e3   :  { %3857 = vmatpush3.bf16.msra.mxu1 %v3854_v60 }
 0x3e4   :  { %3859 = vmatprep.subr.bf16.mxu1 %v3858_v7 }
 0x3e7   :  { %3861 = vmatpush3.bf16.msra.mxu1 %v3858_v7 }
 0x483   :  { %v3636_v20 = vpop.f32.mrb[8].mxu0 }
 0x484   :  { %v2138_v26 = vpop.f32.mrb[9].mxu0  ;;  %v2144_v37 = vadd.f32 %v3636_v20, %v3359_v57 }
 0x485   :  { %v2139_v61 = vadd.f32 %v3359_v57, %v2138_v26 }
 0x487   :  { %3678 = vmatprep.mubr.f32.mxu1 %v2139_v61 }
 0x488   :  { %3679 = vmatmul.mubr.f32.vlgmr.msra.gmra.mrb[8].mxu1 %v2144_v37 }
 0x496   :  { %v3639_v16 = vpop.f32.mrb[10].mxu0 }
 0x497   :  { %v2148_v9 = vpop.f32.mrb[11].mxu0  ;;  %v2154_v17 = vadd.f32 %v3639_v16, %v3359_v57 }
 0x498   :  { %v2149_v3 = vadd.f32 %v3359_v57, %v2148_v9 }
 0x49a   :  { %3681 = vmatprep.mubr.f32.mxu1 %v2149_v3 }
 0x49b   :  { %3682 = vmatmul.mubr.f32.gmra.mrb[10].mxu1 %v2154_v17 }
 0x4a0   :  { %v3642_v62 = vpop.f32.mrb[12].mxu0 }
 0x4a1   :  { %v2158_v38 = vpop.f32.mrb[13].mxu0  ;;  %v2164_v47 = vadd.f32 %v3642_v62, %v3359_v57 }
 0x4a2   :  { %v2159_v43 = vadd.f32 %v3359_v57, %v2158_v38 }
 0x4a4   :  { %3684 = vmatprep.mubr.f32.mxu1 %v2159_v43 }
 0x4a5   :  { %3685 = vmatmul.mubr.f32.gmra.mrb[12].mxu1 %v2164_v47 }
 0x4ad   :  { %v3645_v54 = vpop.f32.mrb[14].mxu0 }
 0x4ae   :  { %v2168_v45 = vpop.f32.mrb[15].mxu0  ;;  %v2174_v58 = vadd.f32 %v3645_v54, %v3359_v57 }
 0x4af   :  { %v2169_v28 = vadd.f32 %v3359_v57, %v2168_v45 }
 0x4b1   :  { %3687 = vmatprep.mubr.f32.mxu1 %v2169_v28 }
 0x4b2   :  { %3688 = vmatmul.mubr.f32.gmra.mrb[14].mxu1 %v2174_v58 }
 0x55b   :  { %v3680_v56 = vpop.f32.mrb[8].mxu1 }
 0x55c   :  { %v5947_v27 = vadd.f32 %v3680_v56, %v5944_v55  ;;  %v2266_v2 = vpop.f32.mrb[9].mxu1 }
 0x55d   :  { %v5950_v14 = vadd.f32 %v5944_v55, %v2266_v2 }
 0x55e   :  { %v2409_v24 = vand.u32 2147483647, %v5947_v27  ;;  %v2412_v50 = vand.u32 2139095040, %v5947_v27 }
 0x55f   :  { %v2305_v12 = vand.u32 2147483647, %v5950_v14  ;;  %v2308_v63 = vand.u32 2139095040, %v5950_v14 }
 0x560   :  { %v2413_v4 = vshrl.u32 %v2412_v50, 23  ;;  %v2416_v0 = vand.u32 8388607, %v2409_v24 }
 0x561   :  { %v2309_v33 = vshrl.u32 %v2308_v63, 23  ;;  %v2312_v59 = vand.u32 8388607, %v2305_v12 }
 0x562   :  { %v3365_v23 = vadd.s32 4294967169, %v2413_v4  ;;  %v2417_v51 = vor.u32 8388608, %v2416_v0 }
 0x563   :  { %v3361_v40 = vadd.s32 4294967169, %v2309_v33  ;;  %v2313_v34 = vor.u32 8388608, %v2312_v59 }
 0x564   :  { %v2419_v46 = vadd.s32 1, %v3365_v23  ;;  %v5960_v10 = vshll.u32 %v2417_v51, 8 }
 0x565   :  { %v2315_v11 = vadd.s32 1, %v3361_v40  ;;  %v5962_v48 = vshll.u32 %v2313_v34, 8 }
 0x566   :  { %vm2420_vm10 = vcmp.gt.s32.totalorder %v2419_v46, 0 }
 0x567   :  { %v2421_v31 = vsel %vm2420_vm10, %v2419_v46, 0  ;;  %vm2316_vm12 = vcmp.gt.s32.totalorder %v2315_v11, 0  ;;  %vm2411_vm10 = vcmp.lt.s32.totalorder %v5947_v27, 0 }
 0x568   :  { %v2422_v1 = vshrl.u32 %v2421_v31, 5  ;;  %v2423_v6 = vand.u32 31, %v2421_v31  ;;  %v2317_v41 = vsel %vm2316_vm12, %v2315_v11, 0 }
 0x569   :  { %v5965_v5 = vshrl.u32 %v2317_v41, 5  ;;  %v2319_v49 = vand.u32 31, %v2317_v41 }
 0x56a   :  { %v2424_v36 = vsub.s32 32, %v2423_v6  ;;  %v2426_v22 = vshll.u32 %v6763_v52, %v2423_v6  ;;  %v2429_v42 = vshll.u32 %v6803_v30, %v2423_v6  ;;  %v2432_v32 = vshll.u32 %v6804_v29, %v2423_v6 }
 0x56b   :  { %v2435_v25 = vshll.u32 %v6760_v18, %v2423_v6  ;;  %v2438_v53 = vshll.u32 %v6805_v21, %v2423_v6  ;;  %vm2441_vm0 = vcmp.lt.s32.totalorder %v2422_v1, 1  ;;  %vm2442_vm14 = vcmp.lt.s32.totalorder %v2422_v1, 2 }
 0x56c   :  { %v2427_v19 = vshrl.u32 %v6803_v30, %v2424_v36  ;;  %v2430_v13 = vshrl.u32 %v6804_v29, %v2424_v36  ;;  %v2433_v15 = vshrl.u32 %v6760_v18, %v2424_v36  ;;  %v2425_v35 = vshrl.u32 %v6763_v52, %v2424_v36 }
 0x56d   :  { %v2436_v60 = vshrl.u32 %v6805_v21, %v2424_v36  ;;  %v2439_v44 = vshrl.u32 %v6806_v39, %v2424_v36  ;;  %v2320_v26 = vsub.s32 32, %v2319_v49  ;;  %vm2443_vm7 = vcmp.lt.s32.totalorder %v2422_v1, 3 }
 0x56e   :  { %v5977_v8 = vpop.f32.mrb[10].mxu1  ;;  %v2428_v7 = vor.u32 %v2427_v19, %v2426_v22  ;;  %v2431_v57 = vor.u32 %v2430_v13, %v2429_v42  ;;  %v2434_v20 = vor.u32 %v2433_v15, %v2432_v32  ;;  %vm2444_vm13 = vcmp.lt.s32.totalorder %v2422_v1, 4 }
 0x56f   :  { %v5979_v61 = vpop.f32.mrb[11].mxu1  ;;  %v2437_v37 = vor.u32 %v2436_v60, %v2435_v25  ;;  %v2440_v16 = vor.u32 %v2439_v44, %v2438_v53  ;;  %v2322_v54 = vshll.u32 %v6763_v52, %v2319_v49  ;;  %v2323_v58 = vshrl.u32 %v6803_v30, %v2320_v26 }
 0x570   :  { %v2445_v9 = vsel %vm2441_vm0, %v2425_v35, %v2428_v7  ;;  %v2446_v3 = vsel %vm2444_vm13, %v2434_v20, 2102212464  ;;  %v2449_v17 = vsel %vm2441_vm0, %v2428_v7, %v2431_v57  ;;  %v2453_v62 = vsel %vm2441_vm0, %v2431_v57, %v2434_v20 }
 0x571   :  { %v2447_v38 = vsel %vm2443_vm7, %v2431_v57, %v2446_v3  ;;  %v2450_v43 = vsel %vm2444_vm13, %v2437_v37, 920167782  ;;  %v2454_v47 = vsel %vm2444_vm13, %v2440_v16, 1326507024  ;;  %v2325_v56 = vshll.u32 %v6803_v30, %v2319_v49 }
 0x572   :  { %v2451_v45 = vsel %vm2443_vm7, %v2434_v20, %v2450_v43  ;;  %v2455_v28 = vsel %vm2443_vm7, %v2437_v37, %v2454_v47  ;;  %v2448_v2 = vsel %vm2442_vm14, %v2445_v9, %v2447_v38  ;;  %v2326_v4 = vshrl.u32 %v6804_v29, %v2320_v26 }
 0x573   :  { %v2452_v50 = vsel %vm2442_vm14, %v2449_v17, %v2451_v45  ;;  %v2456_v63 = vsel %vm2442_vm14, %v2453_v62, %v2455_v28  ;;  %v2324_v40 = vor.u32 %v2323_v58, %v2322_v54  ;;  %v2328_v51 = vshll.u32 %v6804_v29, %v2319_v49 }
 0x574   :  { %v5992_v0 = vmul.u32.u64.low %v5960_v10, %v2456_v63  ;;  %v5993_v33 = vmul.u32.u64.high %v5960_v10, %v2456_v63, %v5992_v0  ;;  %v5996_v59 = vmul.u32.u64.low %v5960_v10, %v2452_v50  ;;  %v5997_v23 = vmul.u32.u64.high %v5960_v10, %v2452_v50, %v5996_v59 }
 0x575   :  { %v2327_v46 = vor.u32 %v2326_v4, %v2325_v56  ;;  %v2329_v34 = vshrl.u32 %v6760_v18, %v2320_v26  ;;  %v2321_v11 = vshrl.u32 %v6763_v52, %v2320_v26  ;;  %v2331_v31 = vshll.u32 %v6760_v18, %v2319_v49 }
 0x576   :  { %v2332_v1 = vshrl.u32 %v6805_v21, %v2320_v26  ;;  %v2335_v6 = vshrl.u32 %v6806_v39, %v2320_v26  ;;  %v2464_v41 = vmul.u32 %v5960_v10, %v2448_v2  ;;  %v2334_v22 = vshll.u32 %v6805_v21, %v2319_v49 }
 0x577   :  { %v2330_v36 = vor.u32 %v2329_v34, %v2328_v51  ;;  %vm2337_vm2 = vcmp.lt.s32.totalorder %v5965_v5, 1  ;;  %vm2466_vm11 = vc.u32 %v5993_v33, %v5996_v59  ;;  %v2467_v32 = vadd.s32 1, %v5997_v23 }
 0x578   :  { %v3686_v42 = vpop.f32.mrb[12].mxu1  ;;  %v2333_v25 = vor.u32 %v2332_v1, %v2331_v31  ;;  %vm2338_vm1 = vcmp.lt.s32.totalorder %v5965_v5, 2  ;;  %v2336_v19 = vor.u32 %v2335_v6, %v2334_v22  ;;  %vm2339_vm4 = vcmp.lt.s32.totalorder %v5965_v5, 3 }
 0x579   :  { %v2286_v53 = vpop.f32.mrb[13].mxu1  ;;  %vm2340_vm15 = vcmp.lt.s32.totalorder %v5965_v5, 4  ;;  %v2345_v10 = vsel %vm2337_vm2, %v2324_v40, %v2327_v46  ;;  %v2468_v49 = vsel %vm2466_vm11, %v2467_v32, %v5997_v23  ;;  %v2349_v35 = vsel %vm2337_vm2, %v2327_v46, %v2330_v36 }
 0x57a   :  { %v2342_v13 = vsel %vm2340_vm15, %v2330_v36, 2102212464  ;;  %v2346_v15 = vsel %vm2340_vm15, %v2333_v25, 920167782  ;;  %v2469_v60 = vadd.s32 %v2468_v49, %v2464_v41  ;;  %v2341_v44 = vsel %vm2337_vm2, %v2321_v11, %v2324_v40 }
 0x57b   :  { %v2347_v7 = vsel %vm2339_vm4, %v2330_v36, %v2346_v15  ;;  %v2350_v57 = vsel %vm2340_vm15, %v2336_v19, 1326507024  ;;  %v2343_v20 = vsel %vm2339_vm4, %v2327_v46, %v2342_v13  ;;  %v6026_v16 = vadd.f32 %v5977_v8, %v5944_v55 }
 0x57c   :  { %v2348_v26 = vsel %vm2338_vm1, %v2345_v10, %v2347_v7  ;;  %v2351_v37 = vsel %vm2339_vm4, %v2333_v25, %v2350_v57  ;;  %v2470_v9 = vadd.s32 536870912, %v2469_v60  ;;  %v2344_v8 = vsel %vm2338_vm1, %v2341_v44, %v2343_v20 }
 0x57d   :  { %v2352_v3 = vsel %vm2338_vm1, %v2349_v35, %v2351_v37  ;;  %v6031_v17 = vmul.u32.u64.low %v5962_v48, %v2348_v26  ;;  %v6032_v62 = vmul.u32.u64.high %v5962_v48, %v2348_v26, %v6031_v17  ;;  %v2617_v47 = vand.u32 2147483647, %v6026_v16 }
 0x57e   :  { %v6035_v38 = vmul.u32.u64.low %v5962_v48, %v2352_v3  ;;  %v6036_v43 = vmul.u32.u64.high %v5962_v48, %v2352_v3, %v6035_v38  ;;  %v6039_v54 = vshrl.u32 %v2470_v9, 30  ;;  %v2620_v45 = vand.u32 2139095040, %v6026_v16 }
 0x57f   :  { %v6046_v28 = vadd.f32 %v5944_v55, %v5979_v61  ;;  %v2363_v56 = vadd.s32 1, %v6032_v62  ;;  %v2624_v50 = vand.u32 8388607, %v2617_v47  ;;  %v2360_v63 = vmul.u32 %v5962_v48, %v2344_v8 }
 0x580   :  { %v2472_v58 = vshll.u32 %v6039_v54, 30  ;;  %v2621_v2 = vshrl.u32 %v2620_v45, 23  ;;  %vm2362_vm3 = vc.u32 %v6036_v43, %v6031_v17  ;;  %v6056_v4 = vadd.f32 %v3686_v42, %v5944_v55 }
 0x581   :  { %v2513_v5 = vand.u32 2147483647, %v6046_v28  ;;  %v2364_v61 = vsel %vm2362_vm3, %v2363_v56, %v6032_v62  ;;  %v2516_v40 = vand.u32 2139095040, %v6046_v28  ;;  %v2625_v48 = vor.u32 8388608, %v2624_v50 }
 0x582   :  { %v2473_v0 = vsub.s32 %v2469_v60, %v2472_v58  ;;  %v3373_v23 = vadd.s32 4294967169, %v2621_v2  ;;  %v2365_v51 = vadd.s32 %v2364_v61, %v2360_v63  ;;  %v2825_v36 = vand.u32 2147483647, %v6056_v4 }
 0x583   :  { %v2517_v6 = vshrl.u32 %v2516_v40, 23  ;;  %v6066_v41 = vand.u32 8388607, %v2513_v5  ;;  %v2828_v42 = vand.u32 2139095040, %v6056_v4  ;;  %v2465_v32 = vadd.s32 %v5996_v59, %v5993_v33 }
 0x584   :  { %v2475_v11 = vsub.s32 0, %v2473_v0  ;;  %v2627_v31 = vadd.s32 1, %v3373_v23  ;;  %v2366_v1 = vadd.s32 536870912, %v2365_v51  ;;  %v6075_v10 = vadd.f32 %v5944_v55, %v2286_v53 }
 0x585   :  { %v6060_v46 = vpop.f32.mrb[14].mxu1  ;;  %v6078_v13 = vadd.s32 %v6031_v17, %v6036_v43  ;;  %v6080_v35 = vshll.u32 %v2625_v48, 8  ;;  %v3369_v44 = vadd.s32 4294967169, %v2517_v6  ;;  %v2521_v7 = vor.u32 8388608, %v6066_v41 }
 0x586   :  { %v6062_v34 = vpop.f32.mrb[15].mxu1  ;;  %v3366_v22 = vmin.u32 %v2475_v11, %v2473_v0  ;;  %vm2628_vm5 = vcmp.gt.s32.totalorder %v2627_v31, 0  ;;  %v6072_v25 = vshrl.u32 %v2366_v1, 30  ;;  %v6086_v33 = vand.u32 8388607, %v2825_v36 }
 0x587   :  { %v2629_v19 = vsel %vm2628_vm5, %v2627_v31, 0  ;;  %v2829_v20 = vshrl.u32 %v2828_v42, 23  ;;  %v2523_v42 = vadd.s32 1, %v3369_v44  ;;  %vm6146_vm13 = vcmp.le.f32.partialorder %v2409_v24, 0.7853982 }
 0x588   :  { %v2477_v49 = vclz %v3366_v22  ;;  %v2631_v15 = vand.u32 31, %v2629_v19  ;;  %v2368_v60 = vshll.u32 %v6072_v25, 30  ;;  %v6088_v57 = vshrl.u32 %v2629_v19, 5 }
 0x589   :  { %vm2524_vm7 = vcmp.gt.s32.totalorder %v2523_v42, 0 }
 0x58a   :  { %v3367_v59 = vadd.s32 4294967294, %v2477_v49  ;;  %v2632_v53 = vsub.s32 32, %v2631_v15  ;;  %v6090_v26 = vsub.s32 %v2365_v51, %v2368_v60  ;;  %v2634_v37 = vshll.u32 %v6763_v52, %v2631_v15 }
 0x58b   :  { %v2637_v9 = vshll.u32 %v6803_v30, %v2631_v15  ;;  %v2640_v3 = vshll.u32 %v6804_v29, %v2631_v15  ;;  %v2643_v38 = vshll.u32 %v6760_v18, %v2631_v15  ;;  %v2646_v63 = vshll.u32 %v6805_v21, %v2631_v15 }
 0x58c   :  { %vm3368_vm6 = vcmp.lt.s32.totalorder %v3367_v59, 0  ;;  %v2635_v17 = vshrl.u32 %v6803_v30, %v2632_v53  ;;  %v2638_v62 = vshrl.u32 %v6804_v29, %v2632_v53  ;;  %v2371_v8 = vsub.s32 0, %v6090_v26 }
 0x58d   :  { %v2480_v43 = vsel %vm3368_vm6, 0, %v3367_v59  ;;  %v2641_v45 = vshrl.u32 %v6760_v18, %v2632_v53  ;;  %v2644_v58 = vshrl.u32 %v6805_v21, %v2632_v53  ;;  %v2647_v1 = vshrl.u32 %v6806_v39, %v2632_v53 }
 0x58e   :  { %v2481_v56 = vsub.s32 32, %v2480_v43  ;;  %v2482_v2 = vshll.u32 %v2473_v0, %v2480_v43  ;;  %v2485_v50 = vsub.s32 4294967266, %v2480_v43  ;;  %v3362_v61 = vmin.u32 %v2371_v8, %v6090_v26 }
 0x58f   :  { %v2636_v23 = vor.u32 %v2635_v17, %v2634_v37  ;;  %v2639_v40 = vor.u32 %v2638_v62, %v2637_v9  ;;  %v2645_v51 = vor.u32 %v2644_v58, %v2643_v38  ;;  %v2642_v31 = vor.u32 %v2641_v45, %v2640_v3 }
 0x590   :  { %v2483_v11 = vshrl.u32 %v2465_v32, %v2481_v56  ;;  %v2486_v48 = vadd.s32 127, %v2485_v50  ;;  %v2373_v6 = vclz %v3362_v61  ;;  %v2633_v22 = vshrl.u32 %v6763_v52, %v2632_v53 }
 0x591   :  { %vm2649_vm8 = vcmp.lt.s32.totalorder %v6088_v57, 1  ;;  %v2648_v49 = vor.u32 %v2647_v1, %v2646_v63  ;;  %vm2652_vm9 = vcmp.lt.s32.totalorder %v6088_v57, 4  ;;  %vm2651_vm12 = vcmp.lt.s32.totalorder %v6088_v57, 3 }
 0x592   :  { %v2484_v0 = vor.u32 %v2483_v11, %v2482_v2  ;;  %v2487_v19 = vshll.u32 %v2486_v48, 23  ;;  %v3363_v15 = vadd.s32 4294967294, %v2373_v6  ;;  %v2657_v32 = vsel %vm2649_vm8, %v2636_v23, %v2639_v40 }
 0x593   :  { %v2658_v60 = vsel %vm2652_vm9, %v2645_v51, 920167782  ;;  %vm2650_vm0 = vcmp.lt.s32.totalorder %v6088_v57, 2  ;;  %v2654_v44 = vsel %vm2652_vm9, %v2642_v31, 2102212464  ;;  %v2653_v37 = vsel %vm2649_vm8, %v2633_v22, %v2636_v23 }
 0x594   :  { %v2488_v59 = vor.u32 4788187, %v2487_v19  ;;  %v2659_v53 = vsel %vm2651_vm12, %v2642_v31, %v2658_v60  ;;  %vm3364_vm14 = vcmp.lt.s32.totalorder %v3363_v15, 0  ;;  %v2661_v3 = vsel %vm2649_vm8, %v2639_v40, %v2642_v31 }
 0x595   :  { %v2660_v9 = vsel %vm2650_vm0, %v2657_v32, %v2659_v53  ;;  %v2491_v62 = vcvt.s32.f32 %v2484_v0  ;;  %v2376_v38 = vsel %vm3364_vm14, 0, %v3363_v15  ;;  %v2662_v43 = vsel %vm2652_vm9, %v2648_v49, 1326507024 }
 0x596   :  { %v2489_v17 = vand.u32 2147483647, %v2488_v59  ;;  %v2377_v8 = vsub.s32 32, %v2376_v38  ;;  %v2381_v45 = vsub.s32 4294967266, %v2376_v38  ;;  %v2655_v58 = vsel %vm2651_vm12, %v2639_v40, %v2654_v44 }
 0x597   :  { %v2663_v56 = vsel %vm2651_vm12, %v2645_v51, %v2662_v43  ;;  %v6133_v63 = vmul.u32.u64.low %v6080_v35, %v2660_v9  ;;  %v6134_v61 = vmul.u32.u64.high %v6080_v35, %v2660_v9, %v6133_v63  ;;  %v3381_v31 = vadd.s32 4294967169, %v2829_v20 }
 0x598   :  { %v2492_v2 = vmul.f32 %v2491_v62, %v2489_v17  ;;  %v2664_v50 = vsel %vm2650_vm0, %v2661_v3, %v2663_v56  ;;  %v2382_v23 = vadd.s32 127, %v2381_v45  ;;  %v2656_v40 = vsel %vm2650_vm0, %v2653_v37, %v2655_v58 }
 0x599   :  { %v6138_v11 = vmul.u32.u64.low %v6080_v35, %v2664_v50  ;;  %v6139_v48 = vmul.u32.u64.high %v6080_v35, %v2664_v50, %v6138_v11  ;;  %v2833_v51 = vor.u32 8388608, %v6086_v33  ;;  %v2379_v22 = vshrl.u32 %v6078_v13, %v2377_v8 }
 0x59a   :  { %v2493_v1 = vxor.u32 2147483648, %v2492_v2  ;;  %v2383_v0 = vshll.u32 %v2382_v23, 23  ;;  %v2525_v19 = vsel %vm2524_vm7, %v2523_v42, 0  ;;  %v2675_v49 = vadd.s32 1, %v6134_v61 }
 0x59b   :  { %v2527_v57 = vand.u32 31, %v2525_v19  ;;  %v6156_v15 = vshll.u32 %v2521_v7, 8  ;;  %v2378_v33 = vshll.u32 %v6090_v26, %v2376_v38  ;;  %v2672_v13 = vmul.u32 %v6080_v35, %v2656_v40 }
 0x59c   :  { %v2494_v20 = vsel %vm2411_vm10, %v2493_v1, %v2492_v2  ;;  %v6750_v42 = vand.u32 2147483647, %v6075_v10  ;;  %vm2674_vm2 = vc.u32 %v6139_v48, %v6133_v63  ;;  %v2835_v60 = vadd.s32 1, %v3381_v31 }
 0x59d   :  { %v6161_v24 = vsel %vm6146_vm13, %v5947_v27, %v2494_v20  ;;  %v2528_v32 = vsub.s32 32, %v2527_v57  ;;  %v6168_v59 = vshll.u32 %v2833_v51, 8  ;;  %v2380_v41 = vor.u32 %v2379_v22, %v2378_v33 }
 0x59e   :  { %v2384_v7 = vor.u32 4788187, %v2383_v0  ;;  %v2676_v44 = vsel %vm2674_vm2, %v2675_v49, %v6134_v61  ;;  %v2530_v53 = vshll.u32 %v6763_v52, %v2527_v57  ;;  %v2533_v35 = vshll.u32 %v6803_v30, %v2527_v57 }
 0x59f   :  { %v2677_v37 = vadd.s32 %v2676_v44, %v2672_v13  ;;  %v2531_v26 = vshrl.u32 %v6803_v30, %v2528_v32  ;;  %v2534_v9 = vshrl.u32 %v6804_v29, %v2528_v32  ;;  %v2526_v3 = vshrl.u32 %v2525_v19, 5 }
 0x5a0   :  { %v2536_v17 = vshll.u32 %v6804_v29, %v2527_v57  ;;  %v2537_v62 = vshrl.u32 %v6760_v18, %v2528_v32  ;;  %v2539_v38 = vshll.u32 %v6760_v18, %v2527_v57  ;;  %v2540_v58 = vshrl.u32 %v6805_v21, %v2528_v32 }
 0x5a1   :  { %v2678_v43 = vadd.s32 536870912, %v2677_v37  ;;  %v2532_v8 = vor.u32 %v2531_v26, %v2530_v53  ;;  %v2535_v45 = vor.u32 %v2534_v9, %v2533_v35  ;;  %v2387_v56 = vcvt.s32.f32 %v2380_v41 }
 0x5a2   :  { %v2538_v2 = vor.u32 %v2537_v62, %v2536_v17  ;;  %v2542_v50 = vshll.u32 %v6805_v21, %v2527_v57  ;;  %v2543_v61 = vshrl.u32 %v6806_v39, %v2528_v32  ;;  %v2385_v23 = vand.u32 2147483647, %v2384_v7 }
 0x5a3   :  { %v6181_v11 = vshrl.u32 %v2678_v43, 30  ;;  %v2529_v31 = vshrl.u32 %v6763_v52, %v2528_v32  ;;  %v2541_v1 = vor.u32 %v2540_v58, %v2539_v38  ;;  %vm2545_vm11 = vcmp.lt.s32.totalorder %v2526_v3, 1 }
 0x5a4   :  { %v2544_v40 = vor.u32 %v2543_v61, %v2542_v50  ;;  %vm2547_vm1 = vcmp.lt.s32.totalorder %v2526_v3, 3  ;;  %vm2548_vm4 = vcmp.lt.s32.totalorder %v2526_v3, 4  ;;  %v2553_v19 = vsel %vm2545_vm11, %v2532_v8, %v2535_v45 }
 0x5a5   :  { %v2680_v51 = vshll.u32 %v6181_v11, 30  ;;  %v2549_v22 = vsel %vm2545_vm11, %v2529_v31, %v2532_v8  ;;  %v2550_v0 = vsel %vm2548_vm4, %v2538_v2, 2102212464  ;;  %v2554_v49 = vsel %vm2548_vm4, %v2541_v1, 920167782 }
 0x5a6   :  { %v2551_v20 = vsel %vm2547_vm1, %v2535_v45, %v2550_v0  ;;  %v2557_v57 = vsel %vm2545_vm11, %v2535_v45, %v2538_v2  ;;  %v2558_v33 = vsel %vm2548_vm4, %v2544_v40, 1326507024  ;;  %vm2546_vm15 = vcmp.lt.s32.totalorder %v2526_v3, 2 }
 0x5a7   :  { %v6185_v13 = vsub.s32 %v2677_v37, %v2680_v51  ;;  %v2555_v41 = vsel %vm2547_vm1, %v2538_v2, %v2554_v49  ;;  %v2559_v7 = vsel %vm2547_vm1, %v2541_v1, %v2558_v33  ;;  %v2552_v32 = vsel %vm2546_vm15, %v2549_v22, %v2551_v20 }
 0x5a8   :  { %v2556_v44 = vsel %vm2546_vm15, %v2553_v19, %v2555_v41  ;;  %v2560_v53 = vsel %vm2546_vm15, %v2557_v57, %v2559_v7  ;;  %vm2836_vm3 = vcmp.gt.s32.totalorder %v2835_v60, 0  ;;  %v2673_v62 = vadd.s32 %v6133_v63, %v6139_v48 }
 0x5a9   :  { %v2683_v26 = vsub.s32 0, %v6185_v13  ;;  %v6189_v35 = vmul.u32.u64.low %v6156_v15, %v2560_v53  ;;  %v6190_v9 = vmul.u32.u64.high %v6156_v15, %v2560_v53, %v6189_v35  ;;  %v2837_v17 = vsel %vm2836_vm3, %v2835_v60, 0 }
 0x5aa   :  { %v6195_v37 = vmul.u32.u64.low %v6156_v15, %v2556_v44  ;;  %v6196_v38 = vmul.u32.u64.high %v6156_v15, %v2556_v44, %v6195_v37  ;;  %v2839_v3 = vand.u32 31, %v2837_v17  ;;  %v6199_v43 = vmul.f32 %v2387_v56, %v2385_v23 }
 0x5ab   :  { %v3374_v8 = vmin.u32 %v2683_v26, %v6185_v13  ;;  %v2568_v45 = vmul.u32 %v6156_v15, %v2552_v32  ;;  %v2838_v58 = vshrl.u32 %v2837_v17, 5  ;;  %v2724_v50 = vand.u32 2139095040, %v6075_v10 }
 0x5ac   :  { %v2840_v2 = vsub.s32 32, %v2839_v3  ;;  %v6206_v60 = vand.u32 8388607, %v6750_v42  ;;  %v6210_v63 = vadd.f32 %v6060_v46, %v5944_v55  ;;  %vm2570_vm5 = vc.u32 %v6190_v9, %v6195_v37 }
 0x5ad   :  { %v2685_v48 = vclz %v3374_v8  ;;  %v2842_v56 = vshll.u32 %v6763_v52, %v2839_v3  ;;  %v2845_v15 = vshll.u32 %v6803_v30, %v2839_v3  ;;  %v2571_v61 = vadd.s32 1, %v6196_v38 }
 0x5ae   :  { %v2843_v23 = vshrl.u32 %v6803_v30, %v2840_v2  ;;  %v2846_v31 = vshrl.u32 %v6804_v29, %v2840_v2  ;;  %v2848_v1 = vshll.u32 %v6804_v29, %v2839_v3  ;;  %v2849_v46 = vshrl.u32 %v6760_v18, %v2840_v2 }
 0x5af   :  { %v3375_v40 = vadd.s32 4294967294, %v2685_v48  ;;  %v2851_v51 = vshll.u32 %v6760_v18, %v2839_v3  ;;  %v2852_v22 = vshrl.u32 %v6805_v21, %v2840_v2  ;;  %v2572_v0 = vsel %vm2570_vm5, %v2571_v61, %v6196_v38 }
 0x5b0   :  { %v2844_v19 = vor.u32 %v2843_v23, %v2842_v56  ;;  %v2854_v20 = vshll.u32 %v6805_v21, %v2839_v3  ;;  %v2855_v49 = vshrl.u32 %v6806_v39, %v2840_v2  ;;  %v2573_v57 = vadd.s32 %v2572_v0, %v2568_v45 }
 0x5b1   :  { %vm3376_vm6 = vcmp.lt.s32.totalorder %v3375_v40, 0  ;;  %v2841_v33 = vshrl.u32 %v6763_v52, %v2840_v2  ;;  %v2850_v41 = vor.u32 %v2849_v46, %v2848_v1  ;;  %v2847_v32 = vor.u32 %v2846_v31, %v2845_v15 }
 0x5b2   :  { %v2688_v7 = vsel %vm3376_vm6, 0, %v3375_v40  ;;  %v2853_v44 = vor.u32 %v2852_v22, %v2851_v51  ;;  %v2856_v53 = vor.u32 %v2855_v49, %v2854_v20  ;;  %v2574_v17 = vadd.s32 536870912, %v2573_v57 }
 0x5b3   :  { %v2689_v26 = vsub.s32 32, %v2688_v7  ;;  %v2693_v35 = vsub.s32 4294967266, %v2688_v7  ;;  %vm2857_vm8 = vcmp.lt.s32.totalorder %v2838_v58, 1  ;;  %v2690_v38 = vshll.u32 %v6185_v13, %v2688_v7 }
 0x5b4   :  { %vm2859_vm9 = vcmp.lt.s32.totalorder %v2838_v58, 3  ;;  %vm2860_vm12 = vcmp.lt.s32.totalorder %v2838_v58, 4  ;;  %v2861_v3 = vsel %vm2857_vm8, %v2841_v33, %v2844_v19  ;;  %v6229_v45 = vshrl.u32 %v2574_v17, 30 }
 0x5b5   :  { %v2691_v8 = vshrl.u32 %v2673_v62, %v2689_v26  ;;  %v2694_v48 = vadd.s32 127, %v2693_v35  ;;  %v2862_v2 = vsel %vm2860_vm12, %v2850_v41, 2102212464  ;;  %v2865_v15 = vsel %vm2857_vm8, %v2844_v19, %v2847_v32 }
 0x5b6   :  { %v2863_v56 = vsel %vm2859_vm9, %v2847_v32, %v2862_v2  ;;  %v2866_v61 = vsel %vm2860_vm12, %v2853_v44, 920167782  ;;  %v2870_v23 = vsel %vm2860_vm12, %v2856_v53, 1326507024  ;;  %v2576_v1 = vshll.u32 %v6229_v45, 30 }
 0x5b7   :  { %v2695_v31 = vshll.u32 %v2694_v48, 23  ;;  %vm2858_vm0 = vcmp.lt.s32.totalorder %v2838_v58, 2  ;;  %v2869_v13 = vsel %vm2857_vm8, %v2847_v32, %v2850_v41  ;;  %v2692_v40 = vor.u32 %v2691_v8, %v2690_v38 }
 0x5b8   :  { %v2867_v46 = vsel %vm2859_vm9, %v2850_v41, %v2866_v61  ;;  %v2871_v62 = vsel %vm2859_vm9, %v2853_v44, %v2870_v23  ;;  %v2725_v51 = vshrl.u32 %v2724_v50, 23  ;;  %v6237_v0 = vsub.s32 %v2573_v57, %v2576_v1 }
 0x5b9   :  { %v2696_v22 = vor.u32 4788187, %v2695_v31  ;;  %v2864_v20 = vsel %vm2858_vm0, %v2861_v3, %v2863_v56  ;;  %v2868_v49 = vsel %vm2858_vm0, %v2865_v15, %v2867_v46  ;;  %v2872_v19 = vsel %vm2858_vm0, %v2869_v13, %v2871_v62 }
 0x5ba   :  { %v6240_v33 = vmul.u32.u64.low %v6168_v59, %v2868_v49  ;;  %v6241_v7 = vmul.u32.u64.high %v6168_v59, %v2868_v49, %v6240_v33  ;;  %v3377_v53 = vadd.s32 4294967169, %v2725_v51  ;;  %v2579_v32 = vsub.s32 0, %v6237_v0 }
 0x5bb   :  { %v2697_v26 = vand.u32 2147483647, %v2696_v22  ;;  %v6246_v41 = vmul.u32.u64.low %v6168_v59, %v2872_v19  ;;  %v6247_v58 = vmul.u32.u64.high %v6168_v59, %v2872_v19, %v6246_v41  ;;  %4085 = vcosq.f32 %v6161_v24 }
 0x5bc   :  { %vm2307_vm14 = vcmp.lt.s32.totalorder %v5950_v14, 0  ;;  %v2731_v50 = vadd.s32 1, %v3377_v53  ;;  %v6749_v57 = vand.u32 2147483647, %v6210_v63  ;;  %v2389_v44 = vxor.u32 2147483648, %v6199_v43 }
 0x5bd   :  { %v2699_v35 = vcvt.s32.f32 %v2692_v40  ;;  %v3370_v17 = vmin.u32 %v2579_v32, %v6237_v0  ;;  %v3036_v38 = vand.u32 2139095040, %v6210_v63  ;;  %v2880_v3 = vmul.u32 %v6168_v59, %v2864_v20 }
 0x5be   :  { %v2883_v8 = vadd.s32 1, %v6241_v7  ;;  %v2729_v48 = vor.u32 8388608, %v6206_v60  ;;  %vm2732_vm7 = vcmp.gt.s32.totalorder %v2731_v50, 0  ;;  %vm2882_vm2 = vc.u32 %v6247_v58, %v6240_v33 }
 0x5bf   :  { %v6258_v2 = vmul.f32 %v2699_v35, %v2697_v26  ;;  %v2581_v56 = vclz %v3370_v17  ;;  %v6264_v15 = vand.u32 8388607, %v6749_v57  ;;  %4087 = vsinq.f32 %v6161_v24 }
 0x5c0   :  { %v2884_v61 = vsel %vm2882_vm2, %v2883_v8, %v6241_v7  ;;  %v2733_v59 = vsel %vm2732_vm7, %v2731_v50, 0  ;;  %v3037_v23 = vshrl.u32 %v3036_v38, 23  ;;  %v6271_v60 = vsel %vm2307_vm14, %v2389_v44, %v6199_v43 }
 0x5c1   :  { %v3371_v31 = vadd.s32 4294967294, %v2581_v56  ;;  %v2885_v1 = vadd.s32 %v2884_v61, %v2880_v3  ;;  %v6273_v13 = vshrl.u32 %v2733_v59, 5  ;;  %v2569_v40 = vadd.s32 %v6195_v37, %v6190_v9 }
 0x5c2   :  { %v2735_v46 = vand.u32 31, %v2733_v59  ;;  %v6277_v62 = vshll.u32 %v2729_v48, 8  ;;  %v6281_v24 = vadd.f32 %v5944_v55, %v6062_v34  ;;  %v2701_v51 = vxor.u32 2147483648, %v6258_v2 }
 0x5c3   :  { %vm3372_vm11 = vcmp.lt.s32.totalorder %v3371_v31, 0  ;;  %v2886_v22 = vadd.s32 536870912, %v2885_v1  ;;  %v3041_v43 = vor.u32 8388608, %v6264_v15  ;;  %vm2753_vm1 = vcmp.lt.s32.totalorder %v6273_v13, 1 }
 0x5c4   :  { %v2584_v20 = vsel %vm3372_vm11, 0, %v3371_v31  ;;  %v2736_v49 = vsub.s32 32, %v2735_v46  ;;  %v3389_v19 = vadd.s32 4294967169, %v3037_v23  ;;  %v2738_v53 = vshll.u32 %v6763_v52, %v2735_v46 }
 0x5c5   :  { %v2585_v7 = vsub.s32 32, %v2584_v20  ;;  %v2589_v9 = vsub.s32 4294967266, %v2584_v20  ;;  %v6286_v37 = vshrl.u32 %v2886_v22, 30  ;;  %v6289_v26 = vpop.eup %4085  ;;  %v2741_v34 = vshll.u32 %v6803_v30, %v2735_v46 }
 0x5c6   :  { %v2739_v55 = vshrl.u32 %v6803_v30, %v2736_v49  ;;  %v2742_v32 = vshrl.u32 %v6804_v29, %v2736_v49  ;;  %v2744_v41 = vshll.u32 %v6804_v29, %v2735_v46  ;;  %v2745_v17 = vshrl.u32 %v6760_v18, %v2736_v49 }
 0x5c7   :  { %v2587_v50 = vshrl.u32 %v2569_v40, %v2585_v7  ;;  %v2590_v44 = vadd.s32 127, %v2589_v9  ;;  %v2888_v35 = vshll.u32 %v6286_v37, 30  ;;  %v2747_v8 = vshll.u32 %v6760_v18, %v2735_v46 }
 0x5c8   :  { %v2740_v38 = vor.u32 %v2739_v55, %v2738_v53  ;;  %v2743_v3 = vor.u32 %v2742_v32, %v2741_v34  ;;  %v2748_v48 = vshrl.u32 %v6805_v21, %v2736_v49  ;;  %v2746_v59 = vor.u32 %v2745_v17, %v2744_v41 }
 0x5c9   :  { %v2591_v56 = vshll.u32 %v2590_v44, 23  ;;  %v6299_v61 = vsub.s32 %v2885_v1, %v2888_v35  ;;  %vm2754_vm4 = vcmp.lt.s32.totalorder %v6273_v13, 2  ;;  %v6302_v23 = vpop.eup %4087  ;;  %v2586_v31 = vshll.u32 %v6237_v0, %v2584_v20 }
 0x5ca   :  { %v2749_v40 = vor.u32 %v2748_v48, %v2747_v8  ;;  %v2750_v22 = vshll.u32 %v6805_v21, %v2735_v46  ;;  %v2751_v7 = vshrl.u32 %v6806_v39, %v2736_v49  ;;  %v2737_v55 = vshrl.u32 %v6763_v52, %v2736_v49 }
 0x5cb   :  { %v2592_v9 = vor.u32 4788187, %v2591_v56  ;;  %v2891_v53 = vsub.s32 0, %v6299_v61  ;;  %vm2756_vm15 = vcmp.lt.s32.totalorder %v6273_v13, 4  ;;  %v2588_v1 = vor.u32 %v2587_v50, %v2586_v31  ;;  %v3137_v31 = vld [vmem:[#allocation11] sm:$0xff] }
 0x5cc   :  { %v2752_v34 = vor.u32 %v2751_v7, %v2750_v22  ;;  %v2758_v32 = vsel %vm2756_vm15, %v2746_v59, 2102212464  ;;  %v2761_v41 = vsel %vm2753_vm1, %v2740_v38, %v2743_v3  ;;  %vm2755_vm3 = vcmp.lt.s32.totalorder %v6273_v13, 3 }
 0x5cd   :  { %v3382_v0 = vmin.u32 %v2891_v53, %v6299_v61  ;;  %v2757_v46 = vsel %vm2753_vm1, %v2737_v55, %v2740_v38  ;;  %v2762_v20 = vsel %vm2756_vm15, %v2749_v40, 920167782  ;;  %v2593_v44 = vand.u32 2147483647, %v2592_v9  ;;  %v3138_v53 = vld [vmem:[#allocation11 + $0x8] sm:$0xff]  ;;  %v3140_v55 = vld [vmem:[#allocation11 + $0x18] sm:$0xff] }
 0x5ce   :  { %v2763_v35 = vsel %vm2755_vm3, %v2746_v59, %v2762_v20  ;;  %v2765_v49 = vsel %vm2753_vm1, %v2743_v3, %v2746_v59  ;;  %v2766_v17 = vsel %vm2756_vm15, %v2752_v34, 1326507024  ;;  %v2759_v8 = vsel %vm2755_vm3, %v2743_v3, %v2758_v32  ;;  %v3139_v59 = vld [vmem:[#allocation11 + $0x10] sm:$0xff] }
 0x5cf   :  { %v2893_v50 = vclz %v3382_v0  ;;  %v2764_v48 = vsel %vm2754_vm4, %v2761_v41, %v2763_v35  ;;  %v2767_v56 = vsel %vm2755_vm3, %v2749_v40, %v2766_v17  ;;  %v6748_v9 = vand.u32 2147483647, %v6281_v24 }
 0x5d0   :  { %v2768_v22 = vsel %vm2754_vm4, %v2765_v49, %v2767_v56  ;;  %v6323_v7 = vmul.u32.u64.low %v6277_v62, %v2764_v48  ;;  %v6324_v38 = vmul.u32.u64.high %v6277_v62, %v2764_v48, %v6323_v7  ;;  %v2595_v34 = vcvt.s32.f32 %v2588_v1 }
 0x5d1   :  { %v3383_v3 = vadd.s32 4294967294, %v2893_v50  ;;  %v6329_v32 = vmul.u32.u64.low %v6277_v62, %v2768_v22  ;;  %v6330_v41 = vmul.u32.u64.high %v6277_v62, %v2768_v22, %v6329_v32  ;;  %v2881_v40 = vadd.s32 %v6240_v33, %v6247_v58 }
 0x5d2   :  { %v2760_v0 = vsel %vm2754_vm4, %v2757_v46, %v2759_v8  ;;  %v3043_v20 = vadd.s32 1, %v3389_v19  ;;  %v2932_v35 = vand.u32 2139095040, %v6281_v24  ;;  %v6337_v49 = vmul.f32 %v2595_v34, %v2593_v44 }
 0x5d3   :  { %vm3384_vm5 = vcmp.lt.s32.totalorder %v3383_v3, 0  ;;  %v3862_v17 = vpack.c.bf16 %v3138_v53, %v3137_v31  ;;  %v3866_v48 = vpack.c.bf16 %v3140_v55, %v3139_v59  ;;  %v2779_v50 = vadd.s32 1, %v6324_v38 }
 0x5d4   :  { %v2896_v1 = vsel %vm3384_vm5, 0, %v3383_v3  ;;  %vm3044_vm6 = vcmp.gt.s32.totalorder %v3043_v20, 0  ;;  %v2933_v56 = vshrl.u32 %v2932_v35, 23  ;;  %v6342_v33 = vshll.u32 %v3041_v43, 8 }
 0x5d5   :  { %v2897_v22 = vsub.s32 32, %v2896_v1  ;;  %v2901_v32 = vsub.s32 4294967266, %v2896_v1  ;;  %v6346_v58 = vand.u32 8388607, %v6748_v9  ;;  %3863 = vmatprep.subr.bf16.mxu0 %v3862_v17  ;;  %3894 = vmatprep.subr.bf16.mxu1 %v3862_v17  ;;  %v2898_v13 = vshll.u32 %v6299_v61, %v2896_v1 }
 0x5d6   :  { %v2776_v19 = vmul.u32 %v6277_v62, %v2760_v0  ;;  %vm2778_vm8 = vc.u32 %v6330_v41, %v6323_v7  ;;  %v3045_v46 = vsel %vm3044_vm6, %v3043_v20, 0  ;;  %3865 = vmatpush3.bf16.msra.mxu0 %v3862_v17  ;;  %3902 = vmatpush3.bf16.msra.mxu1 %v3862_v17  ;;  %v2597_v31 = vxor.u32 2147483648, %v6337_v49 }
 0x5d7   :  { %v2899_v44 = vshrl.u32 %v2881_v40, %v2897_v22  ;;  %v2902_v15 = vadd.s32 127, %v2901_v32  ;;  %v2780_v43 = vsel %vm2778_vm8, %v2779_v50, %v6324_v38  ;;  %v6353_v8 = vshrl.u32 %v3045_v46, 5  ;;  %3867 = vmatprep.subr.bf16.mxu0 %v3866_v48  ;;  %3895 = vmatprep.subr.bf16.mxu1 %v3866_v48 }
 0x5d8   :  { %v2781_v53 = vadd.s32 %v2780_v43, %v2776_v19  ;;  %v3047_v61 = vand.u32 31, %v3045_v46  ;;  %v3385_v59 = vadd.s32 4294967169, %v2933_v56  ;;  %v2937_v34 = vor.u32 8388608, %v6346_v58 }
 0x5d9   :  { %v2900_v62 = vor.u32 %v2899_v44, %v2898_v13  ;;  %v2903_v55 = vshll.u32 %v2902_v15, 23  ;;  %vm3065_vm9 = vcmp.lt.s32.totalorder %v6353_v8, 1  ;;  %vm2827_vm12 = vcmp.lt.s32.totalorder %v6056_v4, 0 }
 0x5da   :  { %v2782_v3 = vadd.s32 536870912, %v2781_v53  ;;  %v3048_v40 = vsub.s32 32, %v3047_v61  ;;  %v3050_v38 = vshll.u32 %v6763_v52, %v3047_v61  ;;  %v3053_v0 = vshll.u32 %v6803_v30, %v3047_v61  ;;  %3869 = vmatpush3.bf16.msra.mxu0 %v3866_v48  ;;  %3903 = vmatpush3.bf16.msra.mxu1 %v3866_v48 }
 0x5db   :  { %vm3066_vm0 = vcmp.lt.s32.totalorder %v6353_v8, 2  ;;  %vm6364_vm7 = vcmp.le.f32.partialorder %v2825_v36, 0.7853982  ;;  %v2904_v35 = vor.u32 4788187, %v2903_v55  ;;  %v2907_v17 = vcvt.s32.f32 %v2900_v62 }
 0x5dc   :  { %v3056_v1 = vshll.u32 %v6804_v29, %v3047_v61  ;;  %v3059_v50 = vshll.u32 %v6760_v18, %v3047_v61  ;;  %v6370_v56 = vshrl.u32 %v2782_v3, 30  ;;  %v3049_v22 = vshrl.u32 %v6763_v52, %v3048_v40 }
 0x5dd   :  { %v3051_v32 = vshrl.u32 %v6803_v30, %v3048_v40  ;;  %v3054_v48 = vshrl.u32 %v6804_v29, %v3048_v40  ;;  %v2905_v58 = vand.u32 2147483647, %v2904_v35  ;;  %v3057_v36 = vshrl.u32 %v6760_v18, %v3048_v40 }
 0x5de   :  { %v3060_v13 = vshrl.u32 %v6805_v21, %v3048_v40  ;;  %v3062_v19 = vshll.u32 %v6805_v21, %v3047_v61  ;;  %v2784_v46 = vshll.u32 %v6370_v56, 30  ;;  %v3063_v43 = vshrl.u32 %v6806_v39, %v3048_v40 }
 0x5df   :  { %v3052_v44 = vor.u32 %v3051_v32, %v3050_v38  ;;  %v3055_v15 = vor.u32 %v3054_v48, %v3053_v0  ;;  %v2908_v62 = vmul.f32 %v2907_v17, %v2905_v58  ;;  %v3058_v55 = vor.u32 %v3057_v36, %v3056_v1  ;;  %v3141_v58 = vld [vmem:[#allocation11 + $0x20] sm:$0xff] }
 0x5e0   :  { %v3061_v3 = vor.u32 %v3060_v13, %v3059_v50  ;;  %vm3067_vm2 = vcmp.lt.s32.totalorder %v6353_v8, 3  ;;  %v6381_v9 = vsub.s32 %v2781_v53, %v2784_v46  ;;  %v3064_v35 = vor.u32 %v3063_v43, %v3062_v19  ;;  %v3142_v46 = vld [vmem:[#allocation11 + $0x28] sm:$0xff] }
 0x5e1   :  { %vm3068_vm11 = vcmp.lt.s32.totalorder %v6353_v8, 4  ;;  %v3069_v57 = vsel %vm3065_vm9, %v3049_v22, %v3052_v44  ;;  %v2909_v61 = vxor.u32 2147483648, %v2908_v62  ;;  %v3073_v38 = vsel %vm3065_vm9, %v3052_v44, %v3055_v15  ;;  %v3143_v44 = vld [vmem:[#allocation11 + $0x30] sm:$0xff] }
 0x5e2   :  { %v3070_v42 = vsel %vm3068_vm11, %v3058_v55, 2102212464  ;;  %v3074_v0 = vsel %vm3068_vm11, %v3061_v3, 920167782  ;;  %v2787_v40 = vsub.s32 0, %v6381_v9  ;;  %v3077_v1 = vsel %vm3065_vm9, %v3055_v15, %v3058_v55 }
 0x5e3   :  { %v3071_v17 = vsel %vm3067_vm2, %v3055_v15, %v3070_v42  ;;  %v3075_v53 = vsel %vm3067_vm2, %v3058_v55, %v3074_v0  ;;  %v2910_v50 = vsel %vm2827_vm12, %v2909_v61, %v2908_v62  ;;  %v3078_v32 = vsel %vm3068_vm11, %v3064_v35, 1326507024  ;;  %v3144_v15 = vld [vmem:[#allocation11 + $0x38] sm:$0xff]  ;;  %v3147_v0 = vld [vmem:[#allocation11 + $0x50] sm:$0xff] }
 0x5e4   :  { %v3076_v22 = vsel %vm3066_vm0, %v3073_v38, %v3075_v53  ;;  %v2939_v48 = vadd.s32 1, %v3385_v59  ;;  %v2913_v36 = vsel %vm6364_vm7, %v6056_v4, %v2910_v50  ;;  %v2777_v42 = vadd.s32 %v6323_v7, %v6330_v41  ;;  %v3145_v7 = vld [vmem:[#allocation11 + $0x40] sm:$0xff]  ;;  %v3146_v38 = vld [vmem:[#allocation11 + $0x48] sm:$0xff] }
 0x5e5   :  { %v3378_v13 = vmin.u32 %v2787_v40, %v6381_v9  ;;  %v3079_v19 = vsel %vm3067_vm2, %v3061_v3, %v3078_v32  ;;  %v3072_v43 = vsel %vm3066_vm0, %v3069_v57, %v3071_v17  ;;  %v6420_v3 = vshll.u32 %v2937_v34, 8  ;;  %v3148_v40 = vld [vmem:[#allocation11 + $0x58] sm:$0xff]  ;;  %v3149_v17 = vld [vmem:[#allocation11 + $0x60] sm:$0xff]  ;;  %v3150_v53 = vld [vmem:[#allocation11 + $0x68] sm:$0xff] }
 0x5e6   :  { %v3080_v59 = vsel %vm3066_vm0, %v3077_v1, %v3079_v19  ;;  %v6412_v62 = vmul.u32.u64.low %v6342_v33, %v3076_v22  ;;  %v6413_v55 = vmul.u32.u64.high %v6342_v33, %v3076_v22, %v6412_v62  ;;  %4089 = vcosq.f32 %v2913_v36 }
 0x5e7   :  { %v2789_v41 = vclz %v3378_v13  ;;  %v6417_v35 = vmul.u32.u64.low %v6342_v33, %v3080_v59  ;;  %v6418_v61 = vmul.u32.u64.high %v6342_v33, %v3080_v59, %v6417_v35  ;;  %vm2940_vm1 = vcmp.gt.s32.totalorder %v2939_v48, 0 }
 0x5e8   :  { %v3870_v57 = vpack.c.bf16 %v3142_v46, %v3141_v58  ;;  %v3874_v8 = vpack.c.bf16 %v3144_v15, %v3143_v44  ;;  %4091 = vsinq.f32 %v2913_v36  ;;  %v3088_v50 = vmul.u32 %v6342_v33, %v3072_v43 }
 0x5e9   :  { %v3379_v1 = vadd.s32 4294967294, %v2789_v41  ;;  %v2941_v22 = vsel %vm2940_vm1, %v2939_v48, 0  ;;  %v3091_v32 = vadd.s32 1, %v6413_v55  ;;  %v3878_v34 = vpack.c.bf16 %v3146_v38, %v3145_v7 }
 0x5ea   :  { %v2943_v13 = vand.u32 31, %v2941_v22  ;;  %3871 = vmatprep.subr.bf16.mxu0 %v3870_v57  ;;  %3896 = vmatprep.subr.bf16.mxu1 %v3870_v57  ;;  %v6424_v19 = vpack.c.bf16 %v3148_v40, %v3147_v0  ;;  %vm3090_vm15 = vc.u32 %v6418_v61, %v6412_v62  ;;  %v6428_v58 = vshrl.u32 %v2941_v22, 5 }
 0x5eb   :  { %vm3380_vm4 = vcmp.lt.s32.totalorder %v3379_v1, 0  ;;  %3873 = vmatpush3.bf16.msra.mxu0 %v3870_v57  ;;  %3904 = vmatpush3.bf16.msra.mxu1 %v3870_v57  ;;  %v6430_v36 = vpack.c.bf16 %v3150_v53, %v3149_v17  ;;  %v3092_v48 = vsel %vm3090_vm15, %v3091_v32, %v6413_v55  ;;  %v2391_v44 = vsub.s32 4, %v6072_v25 }
 0x5ec   :  { %v2792_v33 = vsel %vm3380_vm4, 0, %v3379_v1  ;;  %v2944_v46 = vsub.s32 32, %v2943_v13  ;;  %3875 = vmatprep.subr.bf16.mxu0 %v3874_v8  ;;  %3897 = vmatprep.subr.bf16.mxu1 %v3874_v8  ;;  %v3093_v59 = vadd.s32 %v3092_v48, %v3088_v50  ;;  %v2946_v7 = vshll.u32 %v6763_v52, %v2943_v13 }
 0x5ed   :  { %v2793_v15 = vsub.s32 32, %v2792_v33  ;;  %v2797_v43 = vsub.s32 4294967266, %v2792_v33  ;;  %v2794_v41 = vshll.u32 %v6381_v9, %v2792_v33  ;;  %v2949_v17 = vshll.u32 %v6803_v30, %v2943_v13 }
 0x5ee   :  { %v2945_v35 = vshrl.u32 %v6763_v52, %v2944_v46  ;;  %v2947_v38 = vshrl.u32 %v6803_v30, %v2944_v46  ;;  %v2950_v0 = vshrl.u32 %v6804_v29, %v2944_v46  ;;  %v3094_v57 = vadd.s32 536870912, %v3093_v59 }
 0x5ef   :  { %v2795_v40 = vshrl.u32 %v2777_v42, %v2793_v15  ;;  %v2798_v55 = vadd.s32 127, %v2797_v43  ;;  %3877 = vmatpush3.bf16.msra.mxu0 %v3874_v8  ;;  %3905 = vmatpush3.bf16.msra.mxu1 %v3874_v8  ;;  %v2952_v1 = vshll.u32 %v6804_v29, %v2943_v13  ;;  %v2953_v50 = vshrl.u32 %v6760_v18, %v2944_v46 }
 0x5f0   :  { %v2948_v53 = vor.u32 %v2947_v38, %v2946_v7  ;;  %v2955_v9 = vshll.u32 %v6760_v18, %v2943_v13  ;;  %3879 = vmatprep.subr.bf16.mxu0 %v3878_v34  ;;  %vm6445_vm3 = vcmp.le.f32.partialorder %v2305_v12, 0.7853982  ;;  %v6449_v32 = vshrl.u32 %v3094_v57, 30  ;;  %3898 = vmatprep.subr.bf16.mxu1 %v3878_v34  ;;  %v6452_v8 = vpop.eup %4089 }
 0x5f1   :  { %v2796_v42 = vor.u32 %v2795_v40, %v2794_v41  ;;  %v2799_v22 = vshll.u32 %v2798_v55, 23  ;;  %v2956_v30 = vshrl.u32 %v6805_v21, %v2944_v46  ;;  %v2951_v29 = vor.u32 %v2950_v0, %v2949_v17 }
 0x5f2   :  { %v2954_v33 = vor.u32 %v2953_v50, %v2952_v1  ;;  %v2958_v18 = vshll.u32 %v6805_v21, %v2943_v13  ;;  %v2959_v48 = vshrl.u32 %v6806_v39, %v2944_v46  ;;  %v6456_v15 = vpop.eup %4091  ;;  %vm2619_vm5 = vcmp.lt.s32.totalorder %v6026_v16, 0  ;;  %v3151_v21 = vld [vmem:[#allocation11 + $0x70] sm:$0xff] }
 0x5f3   :  { %vm2515_vm6 = vcmp.lt.s32.totalorder %v6046_v28, 0  ;;  %v2800_v12 = vor.u32 4788187, %v2799_v22  ;;  %v3096_v43 = vshll.u32 %v6449_v32, 30  ;;  %v2957_v7 = vor.u32 %v2956_v30, %v2955_v9  ;;  %3881 = vmatpush3.bf16.msra.mxu0 %v3878_v34  ;;  %3906 = vmatpush3.bf16.msra.mxu1 %v3878_v34  ;;  %v3152_v34 = vld [vmem:[#allocation11 + $0x78] sm:$0xff] }
 0x5f4   :  { %vm2961_vm8 = vcmp.lt.s32.totalorder %v6428_v58, 1  ;;  %v2803_v41 = vcvt.s32.f32 %v2796_v42  ;;  %v2960_v38 = vor.u32 %v2959_v48, %v2958_v18  ;;  %vm2962_vm9 = vcmp.lt.s32.totalorder %v6428_v58, 2  ;;  %3883 = vmatprep.subr.bf16.mxu0 %v6424_v19  ;;  %3899 = vmatprep.subr.bf16.mxu1 %v6424_v19 }
 0x5f5   :  { %vm2964_vm0 = vcmp.lt.s32.totalorder %v6428_v58, 4  ;;  %v2801_v39 = vand.u32 2147483647, %v2800_v12  ;;  %v6466_v13 = vsub.s32 %v3093_v59, %v3096_v43  ;;  %vm2963_vm2 = vcmp.lt.s32.totalorder %v6428_v58, 3 }
 0x5f6   :  { %v2966_v46 = vsel %vm2964_vm0, %v2954_v33, 2102212464  ;;  %vm2723_vm11 = vcmp.lt.s32.totalorder %v6075_v10, 0  ;;  %v2965_v0 = vsel %vm2961_vm8, %v2945_v35, %v2948_v53  ;;  %v2969_v55 = vsel %vm2961_vm8, %v2948_v53, %v2951_v29 }
 0x5f7   :  { %v2967_v40 = vsel %vm2963_vm2, %v2951_v29, %v2966_v46  ;;  %v2970_v59 = vsel %vm2964_vm0, %v2957_v7, 920167782  ;;  %v2804_v57 = vmul.f32 %v2803_v41, %v2801_v39  ;;  %v3099_v17 = vsub.s32 0, %v6466_v13  ;;  %3885 = vmatpush3.bf16.msra.mxu0 %v6424_v19  ;;  %3907 = vmatpush3.bf16.msra.mxu1 %v6424_v19 }
 0x5f8   :  { %v2971_v1 = vsel %vm2963_vm2, %v2954_v33, %v2970_v59  ;;  %v2973_v50 = vsel %vm2961_vm8, %v2951_v29, %v2954_v33  ;;  %v2974_v53 = vsel %vm2964_vm0, %v2960_v38, 1326507024  ;;  %3887 = vmatprep.subr.bf16.mxu0 %v6430_v36  ;;  %v3890_v9 = vpack.c.bf16 %v3152_v34, %v3151_v21  ;;  %3900 = vmatprep.subr.bf16.mxu1 %v6430_v36 }
 0x5f9   :  { %v2972_v35 = vsel %vm2962_vm9, %v2969_v55, %v2971_v1  ;;  %v2392_v42 = vsel %vm2307_vm14, %v2391_v44, %v6072_v25  ;;  %v3390_v22 = vmin.u32 %v3099_v17, %v6466_v13  ;;  %v2968_v19 = vsel %vm2962_vm9, %v2965_v0, %v2967_v40 }
 0x5fa   :  { %v2975_v30 = vsel %vm2963_vm2, %v2957_v7, %v2974_v53  ;;  %v2393_v29 = vsel %vm6445_vm3, %v5950_v14, %v6271_v60  ;;  %v6510_v25 = vmul.u32.u64.low %v6420_v3, %v2972_v35  ;;  %v6511_v44 = vmul.u32.u64.high %v6420_v3, %v2972_v35, %v6510_v25 }
 0x5fb   :  { %v2976_v33 = vsel %vm2962_vm9, %v2973_v50, %v2975_v30  ;;  %v2394_v18 = vsel %vm6445_vm3, 0, %v2392_v42  ;;  %v2805_v48 = vxor.u32 2147483648, %v2804_v57  ;;  %v3101_v12 = vclz %v3390_v22  ;;  %3889 = vmatpush3.bf16.msra.mxu0 %v6430_v36  ;;  %3908 = vmatpush3.bf16.msra.mxu1 %v6430_v36 }
 0x5fc   :  { %v6517_v43 = vmul.u32.u64.low %v6420_v3, %v2976_v33  ;;  %v6518_v7 = vmul.u32.u64.high %v6420_v3, %v2976_v33, %v6517_v43  ;;  %v6527_v60 = vsel %vm2619_vm5, %v2701_v51, %v6258_v2  ;;  %v2598_v58 = vsel %vm2515_vm6, %v2597_v31, %v6337_v49  ;;  %3891 = vmatprep.subr.bf16.mxu0 %v3890_v9  ;;  %3901 = vmatprep.subr.bf16.mxu1 %v3890_v9 }
 0x5fd   :  { %4093 = vcosq.f32 %v2393_v29  ;;  %v2495_v52 = vsub.s32 4, %v6039_v54  ;;  %v3089_v36 = vadd.s32 %v6412_v62, %v6418_v61  ;;  %v3391_v41 = vadd.s32 4294967294, %v3101_v12 }
 0x5fe   :  { %4095 = vsinq.f32 %v2393_v29  ;;  %v2398_v38 = vadd.s32 3, %v2394_v18  ;;  %v2984_v2 = vmul.u32 %v6420_v3, %v2968_v19  ;;  %v2987_v51 = vadd.s32 1, %v6511_v44 }
 0x5ff   :  { %v2496_v21 = vsel %vm2411_vm10, %v2495_v52, %v6039_v54  ;;  %v2599_v49 = vsub.s32 4, %v6229_v45  ;;  %v6545_v31 = vsel %vm2723_vm11, %v2805_v48, %v2804_v57  ;;  %vm3392_vm14 = vcmp.lt.s32.totalorder %v3391_v41, 0  ;;  %3893 = vmatpush3.bf16.msra.mxu0 %v3890_v9  ;;  %3909 = vmatpush3.bf16.msra.mxu1 %v3890_v9 }
 0x600   :  { %vm2986_vm1 = vc.u32 %v6518_v7, %v6510_v25  ;;  %v2498_v62 = vsel %vm6146_vm13, 0, %v2496_v21  ;;  %v3104_v61 = vsel %vm3392_vm14, 0, %v3391_v41  ;;  %v2506_v54 = vxor.u32 2147483648, %v6302_v23 }
 0x601   :  { %v2988_v3 = vsel %vm2986_vm1, %v2987_v51, %v6511_v44  ;;  %vm6555_vm10 = vcmp.le.f32.partialorder %v2513_v5, 0.7853982  ;;  %v3105_v46 = vsub.s32 32, %v3104_v61  ;;  %v3109_v34 = vsub.s32 4294967266, %v3104_v61 }
 0x602   :  { %v2989_v0 = vadd.s32 %v2988_v3, %v2984_v2  ;;  %v2399_v40 = vand.u32 3, %v2398_v38  ;;  %vm2501_vm4 = vweird.f32 %v5947_v27  ;;  %v2502_v6 = vadd.s32 3, %v2498_v62 }
 0x603   :  { %v2509_v55 = vxor.u32 2147483648, %v6289_v26  ;;  %v2600_v59 = vsel %vm2515_vm6, %v2599_v49, %v6229_v45  ;;  %v2601_v5 = vsel %vm6555_vm10, %v6046_v28, %v2598_v58  ;;  %v3107_v57 = vshrl.u32 %v3089_v36, %v3105_v46 }
 0x604   :  { %v3110_v17 = vadd.s32 127, %v3109_v34  ;;  %v2990_v1 = vadd.s32 536870912, %v2989_v0  ;;  %vm2397_vm13 = vweird.f32 %v5950_v14  ;;  %v2602_v50 = vsel %vm6555_vm10, 0, %v2600_v59 }
 0x605   :  { %v3106_v35 = vshll.u32 %v6466_v13, %v3104_v61  ;;  %v2503_v53 = vand.u32 3, %v2502_v6  ;;  %4097 = vcosq.f32 %v2601_v5  ;;  %v2606_v9 = vadd.s32 3, %v2602_v50 }
 0x606   :  { %v3111_v42 = vshll.u32 %v3110_v17, 23  ;;  %v6571_v22 = vshrl.u32 %v2990_v1, 30  ;;  %vm2401_vm15 = vcmp.eq.s32.totalorder %v2399_v40, 0  ;;  %4099 = vsinq.f32 %v2601_v5 }
 0x607   :  { %v4094_v45 = vpop.eup %4093  ;;  %v3108_v19 = vor.u32 %v3107_v57, %v3106_v35  ;;  %vm2404_vm3 = vcmp.eq.s32.totalorder %v2399_v40, 2  ;;  %vm2505_vm6 = vcmp.eq.s32.totalorder %v2503_v53, 0  ;;  %vm2508_vm8 = vcmp.eq.s32.totalorder %v2503_v53, 2 }
 0x608   :  { %v4096_v30 = vpop.eup %4095  ;;  %v3112_v29 = vor.u32 4788187, %v3111_v42  ;;  %v2992_v33 = vshll.u32 %v6571_v22, 30  ;;  %v2405_v44 = vxor.u32 2147483648, %v4094_v45  ;;  %v2607_v18 = vand.u32 3, %v2606_v9 }
 0x609   :  { %v2402_v13 = vxor.u32 2147483648, %v4096_v30  ;;  %vm2504_vm9 = vcmp.lt.s32.totalorder %v2503_v53, 2  ;;  %v2507_v48 = vsel %vm2505_vm6, %v6289_v26, %v2506_v54  ;;  %v2510_v12 = vsel %vm2508_vm8, %v2509_v55, %v6302_v23 }
 0x60a   :  { %v3113_v43 = vand.u32 2147483647, %v3112_v29  ;;  %v6576_v58 = vsub.s32 %v2989_v0, %v2992_v33  ;;  %v2406_v52 = vsel %vm2404_vm3, %v2405_v44, %v4096_v30  ;;  %v2511_v36 = vsel %vm2504_vm9, %v2507_v48, %v2510_v12 }
 0x60b   :  { %v3115_v41 = vcvt.s32.f32 %v3108_v19  ;;  %vm2400_vm0 = vcmp.lt.s32.totalorder %v2399_v40, 2  ;;  %v2403_v38 = vsel %vm2401_vm15, %v4094_v45, %v2402_v13  ;;  %v2512_v2 = vsel %vm2501_vm4, nan, %v2511_v36 }
 0x60c   :  { %v2995_v51 = vsub.s32 0, %v6576_v58  ;;  %v2407_v21 = vsel %vm2400_vm0, %v2403_v38, %v2406_v52  ;;  %vm2608_vm2 = vcmp.lt.s32.totalorder %v2607_v18, 2  ;;  %vm6584_vm14 = vcmp.le.f32.partialorder %v2617_v47, 0.7853982 }
 0x60d   :  { %v2408_v23 = vsel %vm2397_vm13, nan, %v2407_v21  ;;  %vm2609_vm1 = vcmp.eq.s32.totalorder %v2607_v18, 0  ;;  %v2703_v49 = vsub.s32 4, %v6181_v11  ;;  %v2705_v27 = vsel %vm6584_vm14, %v6026_v16, %v6527_v60 }
 0x60e   :  { %v3116_v62 = vmul.f32 %v3115_v41, %v3113_v43  ;;  %v3386_v61 = vmin.u32 %v2995_v51, %v6576_v58  ;;  %3722 = vmatprep.mubr.f32.mxu0 %v2408_v23  ;;  %4101 = vcosq.f32 %v2705_v27  ;;  %v6837_v47 = vand.u32 2147483647, %v6075_v10 }
 0x60f   :  { %v4098_v14 = vpop.eup %4097  ;;  %3723 = vmatmul.mubr.f32.vlgmr.msra.gmra.mrb[16].mxu0 %v2512_v2  ;;  %v2704_v54 = vsel %vm2619_vm5, %v2703_v49, %v6181_v11  ;;  %4103 = vsinq.f32 %v2705_v27  ;;  %v2807_v60 = vsub.s32 4, %v6370_v56  ;;  %vm2612_vm4 = vcmp.eq.s32.totalorder %v2607_v18, 2 }
 0x610   :  { %vm6598_vm10 = vcmp.le.f32.partialorder %v6837_v47, 0.7853982  ;;  %v4100_v46 = vpop.eup %4099  ;;  %v2997_v34 = vclz %v3386_v61  ;;  %v2613_v0 = vxor.u32 2147483648, %v4098_v14  ;;  %v2706_v40 = vsel %vm6584_vm14, 0, %v2704_v54 }
 0x611   :  { %v2809_v39 = vsel %vm6598_vm10, %v6075_v10, %v6545_v31  ;;  %v2610_v6 = vxor.u32 2147483648, %v4100_v46  ;;  %v2710_v55 = vadd.s32 3, %v2706_v40  ;;  %v2808_v11 = vsel %vm2723_vm11, %v2807_v60, %v6370_v56 }
 0x612   :  { %4105 = vcosq.f32 %v2809_v39  ;;  %v3387_v59 = vadd.s32 4294967294, %v2997_v34  ;;  %v2614_v5 = vsel %vm2612_vm4, %v2613_v0, %v4100_v46  ;;  %v2810_v57 = vsel %vm6598_vm10, 0, %v2808_v11 }
 0x613   :  { %4107 = vsinq.f32 %v2809_v39  ;;  %v3117_v31 = vxor.u32 2147483648, %v3116_v62  ;;  %v2611_v17 = vsel %vm2609_vm1, %v4098_v14, %v2610_v6  ;;  %v2711_v1 = vand.u32 3, %v2710_v55 }
 0x614   :  { %v2814_v50 = vadd.s32 3, %v2810_v57  ;;  %vm3388_vm5 = vcmp.lt.s32.totalorder %v3387_v59, 0  ;;  %vm2605_vm13 = vweird.f32 %v6046_v28  ;;  %v2615_v35 = vsel %vm2608_vm2, %v2611_v17, %v2614_v5 }
 0x615   :  { %v2911_v53 = vsub.s32 4, %v6286_v37  ;;  %vm3035_vm11 = vcmp.lt.s32.totalorder %v6210_v63, 0  ;;  %v3000_v56 = vsel %vm3388_vm5, 0, %v3387_v59  ;;  %v2616_v9 = vsel %vm2605_vm13, nan, %v2615_v35 }
 0x616   :  { %v2985_v42 = vadd.s32 %v6510_v25, %v6518_v7  ;;  %v3001_v45 = vsub.s32 32, %v3000_v56  ;;  %v3005_v19 = vsub.s32 4294967266, %v3000_v56  ;;  %3725 = vmatprep.mubr.f32.mxu0 %v2616_v9  ;;  %vm2709_vm15 = vweird.f32 %v6026_v16 }
 0x617   :  { %v3118_v30 = vsel %vm3035_vm11, %v3117_v31, %v3116_v62  ;;  %vm2712_vm3 = vcmp.lt.s32.totalorder %v2711_v1, 2  ;;  %v2815_v28 = vand.u32 3, %v2814_v50  ;;  %v2912_v29 = vsel %vm2827_vm12, %v2911_v53, %v6286_v37 }
 0x618   :  { %v4102_v33 = vpop.eup %4101  ;;  %v3002_v44 = vshll.u32 %v6576_v58, %v3000_v56  ;;  %v3003_v18 = vshrl.u32 %v2985_v42, %v3001_v45  ;;  %v3006_v13 = vadd.s32 127, %v3005_v19  ;;  %vm2813_vm6 = vweird.f32 %v6075_v10 }
 0x619   :  { %v2914_v25 = vsel %vm6364_vm7, 0, %v2912_v29  ;;  %v4104_v7 = vpop.eup %4103  ;;  %vm2713_vm8 = vcmp.eq.s32.totalorder %v2711_v1, 0  ;;  %vm2716_vm9 = vcmp.eq.s32.totalorder %v2711_v1, 2  ;;  %v2717_v48 = vxor.u32 2147483648, %v4102_v33 }
 0x61a   :  { %vm2917_vm0 = vweird.f32 %v6056_v4  ;;  %v2922_v12 = vxor.u32 2147483648, %v6456_v15  ;;  %v3004_v43 = vor.u32 %v3003_v18, %v3002_v44  ;;  %v3007_v37 = vshll.u32 %v3006_v13, 23 }
 0x61b   :  { %v2714_v52 = vxor.u32 2147483648, %v4104_v7  ;;  %v2918_v36 = vadd.s32 3, %v2914_v25  ;;  %v2718_v41 = vsel %vm2716_vm9, %v2717_v48, %v4104_v7  ;;  %vm2816_vm12 = vcmp.lt.s32.totalorder %v2815_v28, 2  ;;  %v3393_v7 = vld [vmem:[%s6700_s10] ss:$0 sm:$0xff]  ;;  %s3278_s10 = sshll.u32 %s4295_s20, 4  ;;  %s3279_s10 = int_to_ptr.vmem [resolvable:$true] %s3278_s10 }
 0x61c   :  { %v4106_v58 = vpop.eup %4105  ;;  %vm2817_vm2 = vcmp.eq.s32.totalorder %v2815_v28, 0  ;;  %v2925_v38 = vxor.u32 2147483648, %v6452_v8  ;;  %v3008_v2 = vor.u32 4788187, %v3007_v37  ;;  %vm2820_vm7 = vcmp.eq.s32.totalorder %v2815_v28, 2  ;;  %s4249_s19 = scalar_lea.vmem %s3279_s10, 1024  ;;  %p4254_p7 = scmp.lt.s32.totalorder %s3279_s10, %s3279_s10 }
 0x61d   :  { %v4108_v20 = vpop.eup %4107  ;;  %v2715_v51 = vsel %vm2713_vm8, %v4102_v33, %v2714_v52  ;;  %v2821_v21 = vxor.u32 2147483648, %v4106_v58  ;;  %v2919_v49 = vand.u32 3, %v2918_v36  ;;  %v3015_v27 = vsub.s32 4, %v6571_v22  ;;  %p4250_p6 = scmp.ne.s32.totalorder %s3279_s10, %s4249_s19  ;;  %p4255_p8 = scmp.lt.s32.totalorder %s4249_s19, %s4249_s19 }
 0x61e   :  { %v2719_v26 = vsel %vm2712_vm3, %v2715_v51, %v2718_v41  ;;  %v2818_v23 = vxor.u32 2147483648, %v4108_v20  ;;  %v3009_v62 = vand.u32 2147483647, %v3008_v2  ;;  %v3011_v61 = vcvt.s32.f32 %v3004_v43 }
 0x61f   :  { %v2720_v47 = vsel %vm2709_vm15, nan, %v2719_v26  ;;  %v2822_v3 = vsel %vm2820_vm7, %v2821_v21, %v4108_v20  ;;  %vm2920_vm14 = vcmp.lt.s32.totalorder %v2919_v49, 2  ;;  %vm2921_vm1 = vcmp.eq.s32.totalorder %v2919_v49, 0  ;;  %p4256_p9 = por %p4255_p8, %p4254_p7 }
 0x620   :  { %3726 = vmatmul.mubr.f32.gmra.mrb[18].mxu0 %v2720_v47  ;;  %v2819_v14 = vsel %vm2817_vm2, %v4106_v58, %v2818_v23  ;;  %vm2924_vm10 = vcmp.eq.s32.totalorder %v2919_v49, 2  ;;  %v3012_v54 = vmul.f32 %v3011_v61, %v3009_v62  ;;  %v2923_v39 = vsel %vm2921_vm1, %v6452_v8, %v2922_v12 }
 0x621   :  { %v2823_v60 = vsel %vm2816_vm12, %v2819_v14, %v2822_v3  ;;  %v2926_v46 = vsel %vm2924_vm10, %v2925_v38, %v6456_v15  ;;  %v6840_v16 = vand.u32 2147483647, %v6210_v63  ;;  %v3119_v6 = vsub.s32 4, %v6449_v32  ;;  %p4257_p10 = pnand %p4256_p9, %p4250_p6 }
 0x622   :  { %v2824_v34 = vsel %vm2813_vm6, nan, %v2823_v60  ;;  %v2927_v0 = vsel %vm2920_vm14, %v2923_v39, %v2926_v46  ;;  %v3013_v55 = vxor.u32 2147483648, %v3012_v54  ;;  %vm2931_vm5 = vcmp.lt.s32.totalorder %v6281_v24, 0 }
 0x623   :  { %vm6650_vm4 = vcmp.le.f32.partialorder %v6840_v16, 0.7853982  ;;  %3728 = vmatprep.mubr.f32.mxu1 %v2824_v34  ;;  %v2928_v11 = vsel %vm2917_vm0, nan, %v2927_v0  ;;  %v3120_v10 = vsel %vm3035_vm11, %v3119_v6, %v6449_v32  ;;  %v6843_v59 = vand.u32 2147483647, %v6281_v24 }
 0x624   :  { %v3121_v8 = vsel %vm6650_vm4, %v6210_v63, %v3118_v30  ;;  %3729 = vmatmul.mubr.f32.vlgmr.msra.gmra.mrb[16].mxu1 %v2928_v11  ;;  %v3014_v15 = vsel %vm2931_vm5, %v3013_v55, %v3012_v54  ;;  %v3016_v5 = vsel %vm2931_vm5, %v3015_v27, %v6571_v22  ;;  %v3122_v57 = vsel %vm6650_vm4, 0, %v3120_v10 }
 0x625   :  { %4109 = vcosq.f32 %v3121_v8  ;;  %vm2930_vm13 = vcmp.le.f32.partialorder %v6843_v59, 0.7853982  ;;  %v3126_v17 = vadd.s32 3, %v3122_v57  ;;  %vm3021_vm0 = vweird.f32 %v6281_v24 }
 0x626   :  { %4111 = vsinq.f32 %v3121_v8  ;;  %v3017_v4 = vsel %vm2930_vm13, %v6281_v24, %v3014_v15  ;;  %v3018_v31 = vsel %vm2930_vm13, 0, %v3016_v5  ;;  %vm3125_vm12 = vweird.f32 %v6210_v63 }
 0x627   :  { %4113 = vcosq.f32 %v3017_v4  ;;  %v3022_v1 = vadd.s32 3, %v3018_v31  ;;  %v3127_v50 = vand.u32 3, %v3126_v17 }
 0x628   :  { %4115 = vsinq.f32 %v3017_v4 }
 0x629   :  { %v3023_v53 = vand.u32 3, %v3022_v1  ;;  %vm3129_vm11 = vcmp.eq.s32.totalorder %v3127_v50, 0  ;;  %vm3132_vm15 = vcmp.eq.s32.totalorder %v3127_v50, 2  ;;  %vm3128_vm8 = vcmp.lt.s32.totalorder %v3127_v50, 2 }
 0x62b   :  { %vm3028_vm3 = vcmp.eq.s32.totalorder %v3023_v53, 2  ;;  %vm3025_vm6 = vcmp.eq.s32.totalorder %v3023_v53, 0  ;;  %vm3024_vm9 = vcmp.lt.s32.totalorder %v3023_v53, 2 }
 0x62f   :  { %v4110_v32 = vpop.eup %4109 }
 0x630   :  { %v4112_v35 = vpop.eup %4111  ;;  %v3133_v56 = vxor.u32 2147483648, %v4110_v32 }
 0x631   :  { %v3130_v9 = vxor.u32 2147483648, %v4112_v35  ;;  %v4114_v42 = vpop.eup %4113 }
 0x632   :  { %v4116_v22 = vpop.eup %4115  ;;  %v3029_v45 = vxor.u32 2147483648, %v4114_v42  ;;  %v3134_v30 = vsel %vm3132_vm15, %v3133_v56, %v4112_v35 }
 0x633   :  { %v3131_v19 = vsel %vm3129_vm11, %v4110_v32, %v3130_v9  ;;  %v3026_v28 = vxor.u32 2147483648, %v4116_v22 }
 0x634   :  { %v3030_v29 = vsel %vm3028_vm3, %v3029_v45, %v4116_v22  ;;  %v3135_v44 = vsel %vm3128_vm8, %v3131_v19, %v3134_v30 }
 0x635   :  { %v3027_v33 = vsel %vm3025_vm6, %v4114_v42, %v3026_v28  ;;  %v3136_v25 = vsel %vm3125_vm12, nan, %v3135_v44 }
 0x636   :  { %v3031_v18 = vsel %vm3024_vm9, %v3027_v33, %v3030_v29 }
 0x637   :  { %v3032_v13 = vsel %vm3021_vm0, nan, %v3031_v18 }
 0x638   :  { %3731 = vmatprep.mubr.f32.mxu1 %v3032_v13 }
 0x639   :  { %3732 = vmatmul.mubr.f32.gmra.mrb[18].mxu1 %v3136_v25 }
 0x6e2   :  { %v3724_v48 = vpop.f32.mrb[16].mxu0 }
 0x6e3   :  { %v3232_v12 = vadd.f32 %v3724_v48, %v3393_v7  ;;  %v3226_v43 = vpop.f32.mrb[17].mxu0 }
 0x6e4   :  { %v3227_v37 = vadd.f32 %v3393_v7, %v3226_v43 }
 0x6e5   :  { %3266 = vst [vmem:[#allocation13 + $0x8] sm:$0xff] %v3232_v12 }
 0x6e6   :  { %3265 = vst [vmem:[#allocation13] sm:$0xff] %v3227_v37 }
 0x6f3   :  { %v3727_v52 = vpop.f32.mrb[18].mxu0 }
 0x6f4   :  { %v3242_v36 = vadd.f32 %v3727_v52, %v3393_v7  ;;  %v3236_v24 = vpop.f32.mrb[19].mxu0 }
 0x6f5   :  { %v3237_v58 = vadd.f32 %v3393_v7, %v3236_v24 }
 0x6f6   :  { %3268 = vst [vmem:[#allocation13 + $0x18] sm:$0xff] %v3242_v36 }
 0x6f7   :  { %3267 = vst [vmem:[#allocation13 + $0x10] sm:$0xff] %v3237_v58  ;;  %v3730_v63 = vpop.f32.mrb[16].mxu1 }
 0x6f8   :  { %v3252_v41 = vadd.f32 %v3730_v63, %v3393_v7  ;;  %v3246_v38 = vpop.f32.mrb[17].mxu1 }
 0x6f9   :  { %v3247_v20 = vadd.f32 %v3393_v7, %v3246_v38 }
 0x6fa   :  { %3270 = vst [vmem:[#allocation13 + $0x28] sm:$0xff] %v3252_v41 }
 0x6fb   :  { %3269 = vst [vmem:[#allocation13 + $0x20] sm:$0xff] %v3247_v20 }
 0x70c   :  { %v3733_v2 = vpop.f32.mrb[18].mxu1 }
 0x70d   :  { %v3262_v51 = vadd.f32 %v3733_v2, %v3393_v7  ;;  %v3256_v21 = vpop.f32.mrb[19].mxu1 }
 0x70e   :  { %v3257_v26 = vadd.f32 %v3393_v7, %v3256_v21 }
 0x70f   :  { %3272 = vst [vmem:[#allocation13 + $0x38] sm:$0xff] %v3262_v51 }
 0x710   :  { %3271 = vst [vmem:[#allocation13 + $0x30] sm:$0xff] %v3257_v26 }
 0x711   :  { %4260 = shalt.err (!%p4257_p10)
}
 0x712   :  { %s4261_s3 = scalar_lea.hbm %s6701_s11, 1024 }
 0x713   :  { %p4262_p11 = scmp.ne.s32.totalorder %s6701_s11, %s4261_s3  ;;  %p4265_p12 = scmp.lt.u32.totalorder %s4261_s3, %s6701_s11 }
 0x715   :  { %p4267_p13 = pnand %p4265_p12, %p4262_p11 }
 0x717   :  { %4270 = shalt.err (!%p4267_p13)
}
 0x718   :  { %3284 = dma.vmem_to_hbm [thread:$0]  %s3279_s10, 1024, %s6701_s11, [#allocation4], %s4283_s29, %s4283_s29, %s4284_s30  }
 0x719   :  { %4279 = dma.done.wait [#allocation4], 1024  }
 0x71a   :  { %4280 = vsyncadd [#allocation4], 4294966272 }
 0x71b   :  { %3288 = vsyncpa [#allocation3], 1 }
 0x71c   :  { %3289 = vsyncpa [#allocation6], 1 }
 0x71d   :  { %3290 = vsyncpa [#allocation9], 1 }
 0x71e   :  { %3291 = vsyncpa [#allocation12], 1 }
 0x71f   :  { %3292 = vsyncpa [#allocation4], 1 }

</bundles_post_ra>
